<compile_context>
chip_gen: v7x
topology: tpu7x:2x2x1
jax: 0.10.0
libtpu: 0.0.40
codegen_flags: <defaults>
</compile_context>

<pallas_src>
import functools
import math

import jax
import jax.numpy as jnp
from jax import lax
from jax.experimental import pallas as pl
from jax.experimental.pallas import tpu as pltpu


# ----------------------------------------------------------------------------
# Fused kernel: 2-layer GRU (wavefront) + PE + L-layer post-LN encoder + decoder
# ----------------------------------------------------------------------------
def _gru_cell(gi, gh, h_prev, H):
    """PyTorch GRU cell given input-gates gi=(B,3H) and hidden-gates gh=(B,3H); f32 math."""
    r = jax.nn.sigmoid(gi[:, :H] + gh[:, :H])
    z = jax.nn.sigmoid(gi[:, H:2 * H] + gh[:, H:2 * H])
    n = jnp.tanh(gi[:, 2 * H:] + r * gh[:, 2 * H:])
    return (1.0 - z) * n + z * h_prev


def _add_ln(x, r, g, b, eps):
    """Post-LN residual: LayerNorm(x + r) * g + b, statistics in f32."""
    y = x + r
    mean = jnp.mean(y, axis=-1, keepdims=True)
    c = y - mean
    var = jnp.mean(c * c, axis=-1, keepdims=True)
    return c * lax.rsqrt(var + eps) * g + b


def _fused_forward_kernel(
        x_ref,                                             # (T*B, D) f32, time-major rows t*B+b
        w_ih0_ref, w_hh0_ref, b_ih0_ref, b_hh0_ref,        # GRU layer 0: (D,3H)/(H,3H) bf16, (1,3H) f32
        w_ih1_ref, w_hh1_ref, b_ih1_ref, b_hh1_ref,        # GRU layer 1: (H,3H)/(H,3H) bf16, (1,3H) f32
        pe_ref,                                            # (T, H) f32 positional encoding
        wqkv_ref, bqkv_ref, wo_ref, bo_ref,                # (L,H,3H) bf16, (L,1,3H) f32, (L,H,H) bf16, (L,1,H) f32
        ln1g_ref, ln1b_ref,                                # (L,1,H) f32
        w1_ref, b1_ref, w2_ref, b2_ref,                    # (L,H,F) bf16, (L,1,F) f32, (L,F,H) bf16, (L,1,H) f32
        ln2g_ref, ln2b_ref,                                # (L,1,H) f32
        dec_w_ref, dec_b_ref,                              # (H,1) bf16, (1,1) f32
        o_ref,                                             # (B, 1) f32 output
        y1_ref,                                            # (T*B, H) f32 VMEM scratch: GRU output, time-major
        *, T, B, H, L, nh, eps):
    bf16 = jnp.bfloat16
    f32 = jnp.float32
    R = T * B
    hd = H // nh
    scale = 1.0 / math.sqrt(hd)

    # ---------------- GRU stack (wavefront over the 2 layers) ----------------
    # Hoisted weight loads and bias broadcasts (JAX does not CSE broadcast_in_dim).
    w_hh0 = w_hh0_ref[...]
    w_ih1 = w_ih1_ref[...]
    w_hh1 = w_hh1_ref[...]
    bh0 = jnp.broadcast_to(b_hh0_ref[...], (B, 3 * H))
    bi1 = jnp.broadcast_to(b_ih1_ref[...], (B, 3 * H))
    bh1 = jnp.broadcast_to(b_hh1_ref[...], (B, 3 * H))

    # Layer-0 input gates for the whole sequence: one (T*B, D) @ (D, 3H) matmul, off the recurrence.
    gi0 = jnp.dot(x_ref[...].astype(bf16), w_ih0_ref[...],
                  preferred_element_type=f32) + b_ih0_ref[...]               # (T*B, 3H) f32

    h0 = jnp.zeros((B, H), f32)
    h1 = jnp.zeros((B, H), f32)
    y0_prev = None
    for t in range(T + 1):                                  # static unroll: one basic block
        if t >= 1:
            # layer-1 step t-1: gi1 depends only on y0_{t-1} (off the h1 serial chain);
            # gh1 is the only matmul on the layer-1 critical path.
            ti = t - 1
            gi1 = jnp.dot(y0_prev.astype(bf16), w_ih1, preferred_element_type=f32) + bi1
            gh1 = jnp.dot(h1.astype(bf16), w_hh1, preferred_element_type=f32) + bh1
            h1 = _gru_cell(gi1, gh1, h1, H)
            # Full (B, H) store per step, time-major; positional encoding folded in (store-only path).
            y1_ref[ti * B:(ti + 1) * B, :] = h1 + pe_ref[ti:ti + 1, :]
        if t < T:
            # layer-0 step t (independent of the layer-1 step above -> overlapping MXU pushes).
            gh0 = jnp.dot(h0.astype(bf16), w_hh0, preferred_element_type=f32) + bh0
            h0 = _gru_cell(gi0[t * B:(t + 1) * B, :], gh0, h0, H)
            y0_prev = h0

    # ---------------- Transformer encoder (time-major rows throughout) ----------------
    # Cross-batch attention mask: row i / col j may interact only if they belong to the same
    # batch element (i % B == j % B) — replaces the per-batch SDPA loop with one masked SDPA.
    ri = lax.broadcasted_iota(jnp.int32, (R, R), 0)
    ci = lax.broadcasted_iota(jnp.int32, (R, R), 1)
    amask = jnp.where((ri % B) == (ci % B), jnp.float32(0.0), jnp.float32(-1e30))

    y = y1_ref[...]                                                           # (R, H) f32
    for l in range(L):
        # ---- self-attention: QKV proj (bias folded), single bf16 cast, per-head masked SDPA ----
        qkv = jnp.dot(y.astype(bf16), wqkv_ref[l],
                      preferred_element_type=f32) + bqkv_ref[l]               # (R, 3H) f32
        qkv_bf = qkv.astype(bf16)                                             # cast once per layer
        wo = wo_ref[l]                                                        # (H, H) bf16
        attn = jnp.zeros((R, H), f32)
        for hi in range(nh):
            c0, c1 = hi * hd, (hi + 1) * hd
            q = qkv_bf[:, c0:c1]                                              # (R, hd)
            k = qkv_bf[:, H + c0:H + c1]                                      # (R, hd)
            v = qkv_bf[:, 2 * H + c0:2 * H + c1]                              # (R, hd)
            # q · kᵀ without materializing a transpose (contract the last dims).
            s = lax.dot_general(q, k, (((1,), (1,)), ((), ())),
                                preferred_element_type=f32) * scale + amask   # (R, R) f32
            s = s - jnp.max(s, axis=-1, keepdims=True)
            p = jnp.exp(s)
            p = p * pl.reciprocal(jnp.sum(p, axis=-1, keepdims=True), approx=False)
            oh = jnp.dot(p.astype(bf16), v, preferred_element_type=f32)       # (R, hd)
            # Fold the head-merge into the out-projection: sum_h oh_h @ Wo[h*hd:(h+1)*hd, :].
            attn = attn + jnp.dot(oh.astype(bf16), wo[c0:c1, :], preferred_element_type=f32)
        attn = attn + bo_ref[l]
        y = _add_ln(y, attn, ln1g_ref[l], ln1b_ref[l], eps)

        # ---- feed-forward (ReLU); dropout = identity in eval ----
        ff = jnp.dot(y.astype(bf16), w1_ref[l], preferred_element_type=f32) + b1_ref[l]   # (R, F)
        ff = jnp.maximum(ff, 0.0)
        ff = jnp.dot(ff.astype(bf16), w2_ref[l], preferred_element_type=f32) + b2_ref[l]  # (R, H)
        y = _add_ln(y, ff, ln2g_ref[l], ln2b_ref[l], eps)

    # ---------------- decoder on the last time step ----------------
    # Time-major layout => the last time step of every batch element is the final contiguous B rows.
    last = y[(T - 1) * B:, :]                                                 # (B, H)
    o_ref[...] = jnp.dot(last.astype(bf16), dec_w_ref[...],
                         preferred_element_type=f32) + dec_b_ref[...]         # (B, 1)


# ----------------------------------------------------------------------------
# Wrapper / model forward
# ----------------------------------------------------------------------------
def transformer_rnn_forward(params, input_x, *, num_heads):
    """input_x: (B, T, d_feat) -> (B, 1). Mirrors TransformerRNN_1.forward (eval mode)."""
    B, T, D = input_x.shape
    H = params["gru0_w_hh"].shape[0]
    L = params["in_proj_w"].shape[0]

    # One tiny XLA transpose to present the time-major 2-D view; everything else is in-kernel.
    x_tm = jnp.transpose(input_x, (1, 0, 2)).reshape(T * B, D).astype(jnp.float32)
    pe = params["pe"][:T]                                                     # (T, H) f32

    inputs = (x_tm,
              params["gru0_w_ih"], params["gru0_w_hh"], params["gru0_b_ih"], params["gru0_b_hh"],
              params["gru1_w_ih"], params["gru1_w_hh"], params["gru1_b_ih"], params["gru1_b_hh"],
              pe,
              params["in_proj_w"], params["in_proj_b"],
              params["out_proj_w"], params["out_proj_b"],
              params["ln1_g"], params["ln1_b"],
              params["ff_w1"], params["ff_b1"], params["ff_w2"], params["ff_b2"],
              params["ln2_g"], params["ln2_b"],
              params["dec_w"], params["dec_b"])

    # Single invocation (no grid): every array is placed whole in VMEM, no double-buffering.
    return pl.pallas_call(
        functools.partial(_fused_forward_kernel, T=T, B=B, H=H, L=L, nh=num_heads, eps=1e-5),
        out_shape=jax.ShapeDtypeStruct((B, 1), jnp.float32),
        scratch_shapes=[pltpu.VMEM((T * B, H), jnp.float32)],
    )(*inputs)


# ----------------------------------------------------------------------------
# Deterministic parameter construction (kernel-ready layouts: (in, out), bf16 weights)
# ----------------------------------------------------------------------------
def _xavier_uniform(key, shape):
    fan_out, fan_in = shape
    bound = math.sqrt(6.0 / (fan_in + fan_out))
    return jax.random.uniform(key, shape, jnp.float32, -bound, bound)


def make_positional_encoding(max_len, hidden):
    position = jnp.arange(max_len, dtype=jnp.float32)[:, None]
    div_term = jnp.exp(jnp.arange(0, hidden, 2, dtype=jnp.float32) * (-math.log(10000.0) / hidden))
    pe = jnp.zeros((max_len, hidden), jnp.float32)
    pe = pe.at[:, 0::2].set(jnp.sin(position * div_term))
    pe = pe.at[:, 1::2].set(jnp.cos(position * div_term))
    return pe  # (max_len, hidden)


def init_params(key, d_feat=6, hidden=64, rnn_layers=2, transformer_layers=2,
                dim_ff=2048, max_len=1000):
    assert rnn_layers == 2, "fused kernel is specialized to the module default of 2 GRU layers"
    keys = iter(jax.random.split(key, 64))
    H, L, F = hidden, transformer_layers, dim_ff
    p = {}

    # GRU: PyTorch layout (3H, Din) -> pre-transposed (Din, 3H), bf16 for the MXU.
    # (Module's init_weights applies xavier_uniform to GRU weights and zeros to biases.)
    for layer in range(rnn_layers):
        din = d_feat if layer == 0 else H
        p[f"gru{layer}_w_ih"] = _xavier_uniform(next(keys), (3 * H, din)).T.astype(jnp.bfloat16)
        p[f"gru{layer}_w_hh"] = _xavier_uniform(next(keys), (3 * H, H)).T.astype(jnp.bfloat16)
        p[f"gru{layer}_b_ih"] = jnp.zeros((1, 3 * H), jnp.float32)
        p[f"gru{layer}_b_hh"] = jnp.zeros((1, 3 * H), jnp.float32)

    # Transformer encoder layers, stacked along a leading layer dim.
    def stack(make):
        return jnp.stack([make() for _ in range(L)], axis=0)

    p["in_proj_w"] = stack(lambda: _xavier_uniform(next(keys), (3 * H, H)).T).astype(jnp.bfloat16)  # (L, H, 3H)
    p["in_proj_b"] = jnp.zeros((L, 1, 3 * H), jnp.float32)
    p["out_proj_w"] = stack(lambda: _xavier_uniform(next(keys), (H, H)).T).astype(jnp.bfloat16)     # (L, H, H)
    p["out_proj_b"] = jnp.zeros((L, 1, H), jnp.float32)
    p["ln1_g"] = jnp.ones((L, 1, H), jnp.float32)
    p["ln1_b"] = jnp.zeros((L, 1, H), jnp.float32)
    p["ff_w1"] = stack(lambda: _xavier_uniform(next(keys), (F, H)).T).astype(jnp.bfloat16)          # (L, H, F)
    p["ff_b1"] = jnp.zeros((L, 1, F), jnp.float32)
    p["ff_w2"] = stack(lambda: _xavier_uniform(next(keys), (H, F)).T).astype(jnp.bfloat16)          # (L, F, H)
    p["ff_b2"] = jnp.zeros((L, 1, H), jnp.float32)
    p["ln2_g"] = jnp.ones((L, 1, H), jnp.float32)
    p["ln2_b"] = jnp.zeros((L, 1, H), jnp.float32)

    p["dec_w"] = _xavier_uniform(next(keys), (1, H)).T.astype(jnp.bfloat16)                         # (H, 1)
    p["dec_b"] = jnp.zeros((1, 1), jnp.float32)
    p["pe"] = make_positional_encoding(max_len, H)                                                  # (max_len, H)
    return p


# ----------------------------------------------------------------------------
if __name__ == "__main__":
    D_FEAT, HIDDEN, NUM_HEADS = 6, 64, 2
    RNN_LAYERS, TRANS_LAYERS, DIM_FF = 2, 2, 2048
    BATCH, SEQ = 2, 8

    key = jax.random.PRNGKey(0)
    pkey, xkey = jax.random.split(key)
    params = init_params(pkey, d_feat=D_FEAT, hidden=HIDDEN, rnn_layers=RNN_LAYERS,
                         transformer_layers=TRANS_LAYERS, dim_ff=DIM_FF)

    input_x = jax.random.normal(xkey, (BATCH, SEQ, D_FEAT), jnp.float32)

    fwd = jax.jit(functools.partial(transformer_rnn_forward, num_heads=NUM_HEADS))
    out = jax.block_until_ready(fwd(params, input_x))

    assert out.shape == (BATCH, 1), out.shape
    assert bool(jnp.all(jnp.isfinite(out)))
    print("KERNEL_OK")
</pallas_src>

<mosaic_0001>
module attributes {stable_mosaic.version = 11 : i64} {
  func.func @_fused_forward_kernel(%arg0: memref<16x6xf32, #tpu.memory_space<vmem>>, %arg1: memref<6x192xbf16, #tpu.memory_space<vmem>>, %arg2: memref<64x192xbf16, #tpu.memory_space<vmem>>, %arg3: memref<1x192xf32, #tpu.memory_space<vmem>>, %arg4: memref<1x192xf32, #tpu.memory_space<vmem>>, %arg5: memref<64x192xbf16, #tpu.memory_space<vmem>>, %arg6: memref<64x192xbf16, #tpu.memory_space<vmem>>, %arg7: memref<1x192xf32, #tpu.memory_space<vmem>>, %arg8: memref<1x192xf32, #tpu.memory_space<vmem>>, %arg9: memref<8x64xf32, #tpu.memory_space<vmem>>, %arg10: memref<2x64x192xbf16, #tpu.memory_space<vmem>>, %arg11: memref<2x1x192xf32, #tpu.memory_space<vmem>>, %arg12: memref<2x64x64xbf16, #tpu.memory_space<vmem>>, %arg13: memref<2x1x64xf32, #tpu.memory_space<vmem>>, %arg14: memref<2x1x64xf32, #tpu.memory_space<vmem>>, %arg15: memref<2x1x64xf32, #tpu.memory_space<vmem>>, %arg16: memref<2x64x2048xbf16, #tpu.memory_space<vmem>>, %arg17: memref<2x1x2048xf32, #tpu.memory_space<vmem>>, %arg18: memref<2x2048x64xbf16, #tpu.memory_space<vmem>>, %arg19: memref<2x1x64xf32, #tpu.memory_space<vmem>>, %arg20: memref<2x1x64xf32, #tpu.memory_space<vmem>>, %arg21: memref<2x1x64xf32, #tpu.memory_space<vmem>>, %arg22: memref<64x1xbf16, #tpu.memory_space<vmem>>, %arg23: memref<1x1xf32, #tpu.memory_space<vmem>>, %arg24: memref<2x1xf32, #tpu.memory_space<vmem>>, %arg25: memref<16x64xf32, #tpu.memory_space<vmem>>) attributes {dimension_semantics = [], scalar_prefetch = 0 : i64, scratch_operands = 1 : i64, tpu.core_type = #tpu.core_type<tc>} {
    %c0 = arith.constant 0 : index
    %c0_0 = arith.constant 0 : index
    %0 = vector.load %arg2[%c0, %c0_0] : memref<64x192xbf16, #tpu.memory_space<vmem>>, vector<64x192xbf16>
    %c0_1 = arith.constant 0 : index
    %c0_2 = arith.constant 0 : index
    %1 = vector.load %arg5[%c0_1, %c0_2] : memref<64x192xbf16, #tpu.memory_space<vmem>>, vector<64x192xbf16>
    %c0_3 = arith.constant 0 : index
    %c0_4 = arith.constant 0 : index
    %2 = vector.load %arg6[%c0_3, %c0_4] : memref<64x192xbf16, #tpu.memory_space<vmem>>, vector<64x192xbf16>
    %c0_5 = arith.constant 0 : index
    %c0_6 = arith.constant 0 : index
    %3 = vector.load %arg4[%c0_5, %c0_6] : memref<1x192xf32, #tpu.memory_space<vmem>>, vector<1x192xf32>
    %4 = vector.shape_cast %3 : vector<1x192xf32> to vector<1x192xf32>
    %5 = vector.broadcast %4 : vector<1x192xf32> to vector<2x192xf32>
    %c0_7 = arith.constant 0 : index
    %c0_8 = arith.constant 0 : index
    %6 = vector.load %arg7[%c0_7, %c0_8] : memref<1x192xf32, #tpu.memory_space<vmem>>, vector<1x192xf32>
    %7 = vector.shape_cast %6 : vector<1x192xf32> to vector<1x192xf32>
    %8 = vector.broadcast %7 : vector<1x192xf32> to vector<2x192xf32>
    %c0_9 = arith.constant 0 : index
    %c0_10 = arith.constant 0 : index
    %9 = vector.load %arg8[%c0_9, %c0_10] : memref<1x192xf32, #tpu.memory_space<vmem>>, vector<1x192xf32>
    %10 = vector.shape_cast %9 : vector<1x192xf32> to vector<1x192xf32>
    %11 = vector.broadcast %10 : vector<1x192xf32> to vector<2x192xf32>
    %c0_11 = arith.constant 0 : index
    %c0_12 = arith.constant 0 : index
    %12 = vector.load %arg0[%c0_11, %c0_12] : memref<16x6xf32, #tpu.memory_space<vmem>>, vector<16x6xf32>
    %13 = arith.truncf %12 : vector<16x6xf32> to vector<16x6xbf16>
    %c0_13 = arith.constant 0 : index
    %c0_14 = arith.constant 0 : index
    %14 = vector.load %arg1[%c0_13, %c0_14] : memref<6x192xbf16, #tpu.memory_space<vmem>>, vector<6x192xbf16>
    %cst = arith.constant dense<0.000000e+00> : vector<16x192xf32>
    %15 = tpu.matmul %13, %14, %cst {dimension_numbers = #tpu.dot_dimension_numbers<[1], [0], [0], [1], [0, 0, 1, 1], [], []>} : vector<16x6xbf16>, vector<6x192xbf16>, vector<16x192xf32> -> vector<16x192xf32>
    %c0_15 = arith.constant 0 : index
    %c0_16 = arith.constant 0 : index
    %16 = vector.load %arg3[%c0_15, %c0_16] : memref<1x192xf32, #tpu.memory_space<vmem>>, vector<1x192xf32>
    %17 = vector.broadcast %16 : vector<1x192xf32> to vector<16x192xf32>
    %18 = arith.addf %15, %17 : vector<16x192xf32>
    %cst_17 = arith.constant 0.000000e+00 : f32
    %19 = vector.broadcast %cst_17 : f32 to vector<2x64xf32>
    %cst_18 = arith.constant 0.000000e+00 : f32
    %20 = vector.broadcast %cst_18 : f32 to vector<2x64xf32>
    %21 = arith.truncf %19 : vector<2x64xf32> to vector<2x64xbf16>
    %cst_19 = arith.constant dense<0.000000e+00> : vector<2x192xf32>
    %22 = tpu.matmul %21, %0, %cst_19 {dimension_numbers = #tpu.dot_dimension_numbers<[1], [0], [0], [1], [0, 0, 1, 1], [], []>} : vector<2x64xbf16>, vector<64x192xbf16>, vector<2x192xf32> -> vector<2x192xf32>
    %23 = arith.addf %22, %5 : vector<2x192xf32>
    %24 = vector.extract_strided_slice %18 {offsets = [0, 0], sizes = [2, 192], strides = [1, 1]} : vector<16x192xf32> to vector<2x192xf32>
    %25 = vector.extract_strided_slice %24 {offsets = [0, 0], sizes = [2, 64], strides = [1, 1]} : vector<2x192xf32> to vector<2x64xf32>
    %26 = vector.extract_strided_slice %23 {offsets = [0, 0], sizes = [2, 64], strides = [1, 1]} : vector<2x192xf32> to vector<2x64xf32>
    %27 = arith.addf %25, %26 : vector<2x64xf32>
    %28 = arith.negf %27 : vector<2x64xf32>
    %29 = math.exp %28 : vector<2x64xf32>
    %cst_20 = arith.constant 1.000000e+00 : f32
    %30 = vector.broadcast %cst_20 : f32 to vector<2x64xf32>
    %31 = arith.addf %30, %29 : vector<2x64xf32>
    %32 = arith.divf %30, %31 : vector<2x64xf32>
    %33 = vector.extract_strided_slice %24 {offsets = [0, 64], sizes = [2, 64], strides = [1, 1]} : vector<2x192xf32> to vector<2x64xf32>
    %34 = vector.extract_strided_slice %23 {offsets = [0, 64], sizes = [2, 64], strides = [1, 1]} : vector<2x192xf32> to vector<2x64xf32>
    %35 = arith.addf %33, %34 : vector<2x64xf32>
    %36 = arith.negf %35 : vector<2x64xf32>
    %37 = math.exp %36 : vector<2x64xf32>
    %cst_21 = arith.constant 1.000000e+00 : f32
    %38 = vector.broadcast %cst_21 : f32 to vector<2x64xf32>
    %39 = arith.addf %38, %37 : vector<2x64xf32>
    %40 = arith.divf %38, %39 : vector<2x64xf32>
    %41 = vector.extract_strided_slice %24 {offsets = [0, 128], sizes = [2, 64], strides = [1, 1]} : vector<2x192xf32> to vector<2x64xf32>
    %42 = vector.extract_strided_slice %23 {offsets = [0, 128], sizes = [2, 64], strides = [1, 1]} : vector<2x192xf32> to vector<2x64xf32>
    %43 = arith.mulf %32, %42 : vector<2x64xf32>
    %44 = arith.addf %41, %43 : vector<2x64xf32>
    %45 = math.tanh %44 : vector<2x64xf32>
    %cst_22 = arith.constant 1.000000e+00 : f32
    %46 = vector.broadcast %cst_22 : f32 to vector<2x64xf32>
    %47 = arith.subf %46, %40 : vector<2x64xf32>
    %48 = arith.mulf %47, %45 : vector<2x64xf32>
    %49 = arith.mulf %40, %19 : vector<2x64xf32>
    %50 = arith.addf %48, %49 : vector<2x64xf32>
    %51 = arith.truncf %50 : vector<2x64xf32> to vector<2x64xbf16>
    %cst_23 = arith.constant dense<0.000000e+00> : vector<2x192xf32>
    %52 = tpu.matmul %51, %1, %cst_23 {dimension_numbers = #tpu.dot_dimension_numbers<[1], [0], [0], [1], [0, 0, 1, 1], [], []>} : vector<2x64xbf16>, vector<64x192xbf16>, vector<2x192xf32> -> vector<2x192xf32>
    %53 = arith.addf %52, %8 : vector<2x192xf32>
    %54 = arith.truncf %20 : vector<2x64xf32> to vector<2x64xbf16>
    %cst_24 = arith.constant dense<0.000000e+00> : vector<2x192xf32>
    %55 = tpu.matmul %54, %2, %cst_24 {dimension_numbers = #tpu.dot_dimension_numbers<[1], [0], [0], [1], [0, 0, 1, 1], [], []>} : vector<2x64xbf16>, vector<64x192xbf16>, vector<2x192xf32> -> vector<2x192xf32>
    %56 = arith.addf %55, %11 : vector<2x192xf32>
    %57 = vector.extract_strided_slice %53 {offsets = [0, 0], sizes = [2, 64], strides = [1, 1]} : vector<2x192xf32> to vector<2x64xf32>
    %58 = vector.extract_strided_slice %56 {offsets = [0, 0], sizes = [2, 64], strides = [1, 1]} : vector<2x192xf32> to vector<2x64xf32>
    %59 = arith.addf %57, %58 : vector<2x64xf32>
    %60 = arith.negf %59 : vector<2x64xf32>
    %61 = math.exp %60 : vector<2x64xf32>
    %cst_25 = arith.constant 1.000000e+00 : f32
    %62 = vector.broadcast %cst_25 : f32 to vector<2x64xf32>
    %63 = arith.addf %62, %61 : vector<2x64xf32>
    %64 = arith.divf %62, %63 : vector<2x64xf32>
    %65 = vector.extract_strided_slice %53 {offsets = [0, 64], sizes = [2, 64], strides = [1, 1]} : vector<2x192xf32> to vector<2x64xf32>
    %66 = vector.extract_strided_slice %56 {offsets = [0, 64], sizes = [2, 64], strides = [1, 1]} : vector<2x192xf32> to vector<2x64xf32>
    %67 = arith.addf %65, %66 : vector<2x64xf32>
    %68 = arith.negf %67 : vector<2x64xf32>
    %69 = math.exp %68 : vector<2x64xf32>
    %cst_26 = arith.constant 1.000000e+00 : f32
    %70 = vector.broadcast %cst_26 : f32 to vector<2x64xf32>
    %71 = arith.addf %70, %69 : vector<2x64xf32>
    %72 = arith.divf %70, %71 : vector<2x64xf32>
    %73 = vector.extract_strided_slice %53 {offsets = [0, 128], sizes = [2, 64], strides = [1, 1]} : vector<2x192xf32> to vector<2x64xf32>
    %74 = vector.extract_strided_slice %56 {offsets = [0, 128], sizes = [2, 64], strides = [1, 1]} : vector<2x192xf32> to vector<2x64xf32>
    %75 = arith.mulf %64, %74 : vector<2x64xf32>
    %76 = arith.addf %73, %75 : vector<2x64xf32>
    %77 = math.tanh %76 : vector<2x64xf32>
    %cst_27 = arith.constant 1.000000e+00 : f32
    %78 = vector.broadcast %cst_27 : f32 to vector<2x64xf32>
    %79 = arith.subf %78, %72 : vector<2x64xf32>
    %80 = arith.mulf %79, %77 : vector<2x64xf32>
    %81 = arith.mulf %72, %20 : vector<2x64xf32>
    %82 = arith.addf %80, %81 : vector<2x64xf32>
    %c0_28 = arith.constant 0 : index
    %c0_29 = arith.constant 0 : index
    %83 = vector.load %arg9[%c0_28, %c0_29] : memref<8x64xf32, #tpu.memory_space<vmem>>, vector<1x64xf32>
    %84 = vector.broadcast %83 : vector<1x64xf32> to vector<2x64xf32>
    %85 = arith.addf %82, %84 : vector<2x64xf32>
    %c0_30 = arith.constant 0 : index
    %c0_31 = arith.constant 0 : index
    %86 = vector.load %arg25[%c0_30, %c0_31] : memref<16x64xf32, #tpu.memory_space<vmem>>, vector<2x64xf32>
    tpu.vector_store %arg25[%c0_30, %c0_31], %85 {strides = array<i32>} : memref<16x64xf32, #tpu.memory_space<vmem>>, vector<2x64xf32>,
    %87 = arith.truncf %50 : vector<2x64xf32> to vector<2x64xbf16>
    %cst_32 = arith.constant dense<0.000000e+00> : vector<2x192xf32>
    %88 = tpu.matmul %87, %0, %cst_32 {dimension_numbers = #tpu.dot_dimension_numbers<[1], [0], [0], [1], [0, 0, 1, 1], [], []>} : vector<2x64xbf16>, vector<64x192xbf16>, vector<2x192xf32> -> vector<2x192xf32>
    %89 = arith.addf %88, %5 : vector<2x192xf32>
    %90 = vector.extract_strided_slice %18 {offsets = [2, 0], sizes = [2, 192], strides = [1, 1]} : vector<16x192xf32> to vector<2x192xf32>
    %91 = vector.extract_strided_slice %90 {offsets = [0, 0], sizes = [2, 64], strides = [1, 1]} : vector<2x192xf32> to vector<2x64xf32>
    %92 = vector.extract_strided_slice %89 {offsets = [0, 0], sizes = [2, 64], strides = [1, 1]} : vector<2x192xf32> to vector<2x64xf32>
    %93 = arith.addf %91, %92 : vector<2x64xf32>
    %94 = arith.negf %93 : vector<2x64xf32>
    %95 = math.exp %94 : vector<2x64xf32>
    %cst_33 = arith.constant 1.000000e+00 : f32
    %96 = vector.broadcast %cst_33 : f32 to vector<2x64xf32>
    %97 = arith.addf %96, %95 : vector<2x64xf32>
    %98 = arith.divf %96, %97 : vector<2x64xf32>
    %99 = vector.extract_strided_slice %90 {offsets = [0, 64], sizes = [2, 64], strides = [1, 1]} : vector<2x192xf32> to vector<2x64xf32>
    %100 = vector.extract_strided_slice %89 {offsets = [0, 64], sizes = [2, 64], strides = [1, 1]} : vector<2x192xf32> to vector<2x64xf32>
    %101 = arith.addf %99, %100 : vector<2x64xf32>
    %102 = arith.negf %101 : vector<2x64xf32>
    %103 = math.exp %102 : vector<2x64xf32>
    %cst_34 = arith.constant 1.000000e+00 : f32
    %104 = vector.broadcast %cst_34 : f32 to vector<2x64xf32>
    %105 = arith.addf %104, %103 : vector<2x64xf32>
    %106 = arith.divf %104, %105 : vector<2x64xf32>
    %107 = vector.extract_strided_slice %90 {offsets = [0, 128], sizes = [2, 64], strides = [1, 1]} : vector<2x192xf32> to vector<2x64xf32>
    %108 = vector.extract_strided_slice %89 {offsets = [0, 128], sizes = [2, 64], strides = [1, 1]} : vector<2x192xf32> to vector<2x64xf32>
    %109 = arith.mulf %98, %108 : vector<2x64xf32>
    %110 = arith.addf %107, %109 : vector<2x64xf32>
    %111 = math.tanh %110 : vector<2x64xf32>
    %cst_35 = arith.constant 1.000000e+00 : f32
    %112 = vector.broadcast %cst_35 : f32 to vector<2x64xf32>
    %113 = arith.subf %112, %106 : vector<2x64xf32>
    %114 = arith.mulf %113, %111 : vector<2x64xf32>
    %115 = arith.mulf %106, %50 : vector<2x64xf32>
    %116 = arith.addf %114, %115 : vector<2x64xf32>
    %117 = arith.truncf %116 : vector<2x64xf32> to vector<2x64xbf16>
    %cst_36 = arith.constant dense<0.000000e+00> : vector<2x192xf32>
    %118 = tpu.matmul %117, %1, %cst_36 {dimension_numbers = #tpu.dot_dimension_numbers<[1], [0], [0], [1], [0, 0, 1, 1], [], []>} : vector<2x64xbf16>, vector<64x192xbf16>, vector<2x192xf32> -> vector<2x192xf32>
    %119 = arith.addf %118, %8 : vector<2x192xf32>
    %120 = arith.truncf %82 : vector<2x64xf32> to vector<2x64xbf16>
    %cst_37 = arith.constant dense<0.000000e+00> : vector<2x192xf32>
    %121 = tpu.matmul %120, %2, %cst_37 {dimension_numbers = #tpu.dot_dimension_numbers<[1], [0], [0], [1], [0, 0, 1, 1], [], []>} : vector<2x64xbf16>, vector<64x192xbf16>, vector<2x192xf32> -> vector<2x192xf32>
    %122 = arith.addf %121, %11 : vector<2x192xf32>
    %123 = vector.extract_strided_slice %119 {offsets = [0, 0], sizes = [2, 64], strides = [1, 1]} : vector<2x192xf32> to vector<2x64xf32>
    %124 = vector.extract_strided_slice %122 {offsets = [0, 0], sizes = [2, 64], strides = [1, 1]} : vector<2x192xf32> to vector<2x64xf32>
    %125 = arith.addf %123, %124 : vector<2x64xf32>
    %126 = arith.negf %125 : vector<2x64xf32>
    %127 = math.exp %126 : vector<2x64xf32>
    %cst_38 = arith.constant 1.000000e+00 : f32
    %128 = vector.broadcast %cst_38 : f32 to vector<2x64xf32>
    %129 = arith.addf %128, %127 : vector<2x64xf32>
    %130 = arith.divf %128, %129 : vector<2x64xf32>
    %131 = vector.extract_strided_slice %119 {offsets = [0, 64], sizes = [2, 64], strides = [1, 1]} : vector<2x192xf32> to vector<2x64xf32>
    %132 = vector.extract_strided_slice %122 {offsets = [0, 64], sizes = [2, 64], strides = [1, 1]} : vector<2x192xf32> to vector<2x64xf32>
    %133 = arith.addf %131, %132 : vector<2x64xf32>
    %134 = arith.negf %133 : vector<2x64xf32>
    %135 = math.exp %134 : vector<2x64xf32>
    %cst_39 = arith.constant 1.000000e+00 : f32
    %136 = vector.broadcast %cst_39 : f32 to vector<2x64xf32>
    %137 = arith.addf %136, %135 : vector<2x64xf32>
    %138 = arith.divf %136, %137 : vector<2x64xf32>
    %139 = vector.extract_strided_slice %119 {offsets = [0, 128], sizes = [2, 64], strides = [1, 1]} : vector<2x192xf32> to vector<2x64xf32>
    %140 = vector.extract_strided_slice %122 {offsets = [0, 128], sizes = [2, 64], strides = [1, 1]} : vector<2x192xf32> to vector<2x64xf32>
    %141 = arith.mulf %130, %140 : vector<2x64xf32>
    %142 = arith.addf %139, %141 : vector<2x64xf32>
    %143 = math.tanh %142 : vector<2x64xf32>
    %cst_40 = arith.constant 1.000000e+00 : f32
    %144 = vector.broadcast %cst_40 : f32 to vector<2x64xf32>
    %145 = arith.subf %144, %138 : vector<2x64xf32>
    %146 = arith.mulf %145, %143 : vector<2x64xf32>
    %147 = arith.mulf %138, %82 : vector<2x64xf32>
    %148 = arith.addf %146, %147 : vector<2x64xf32>
    %c1 = arith.constant 1 : index
    %c0_41 = arith.constant 0 : index
    %149 = vector.load %arg9[%c1, %c0_41] : memref<8x64xf32, #tpu.memory_space<vmem>>, vector<1x64xf32>
    %150 = vector.broadcast %149 : vector<1x64xf32> to vector<2x64xf32>
    %151 = arith.addf %148, %150 : vector<2x64xf32>
    %c2 = arith.constant 2 : index
    %c0_42 = arith.constant 0 : index
    %152 = vector.load %arg25[%c2, %c0_42] : memref<16x64xf32, #tpu.memory_space<vmem>>, vector<2x64xf32>
    tpu.vector_store %arg25[%c2, %c0_42], %151 {strides = array<i32>} : memref<16x64xf32, #tpu.memory_space<vmem>>, vector<2x64xf32>,
    %153 = arith.truncf %116 : vector<2x64xf32> to vector<2x64xbf16>
    %cst_43 = arith.constant dense<0.000000e+00> : vector<2x192xf32>
    %154 = tpu.matmul %153, %0, %cst_43 {dimension_numbers = #tpu.dot_dimension_numbers<[1], [0], [0], [1], [0, 0, 1, 1], [], []>} : vector<2x64xbf16>, vector<64x192xbf16>, vector<2x192xf32> -> vector<2x192xf32>
    %155 = arith.addf %154, %5 : vector<2x192xf32>
    %156 = vector.extract_strided_slice %18 {offsets = [4, 0], sizes = [2, 192], strides = [1, 1]} : vector<16x192xf32> to vector<2x192xf32>
    %157 = vector.extract_strided_slice %156 {offsets = [0, 0], sizes = [2, 64], strides = [1, 1]} : vector<2x192xf32> to vector<2x64xf32>
    %158 = vector.extract_strided_slice %155 {offsets = [0, 0], sizes = [2, 64], strides = [1, 1]} : vector<2x192xf32> to vector<2x64xf32>
    %159 = arith.addf %157, %158 : vector<2x64xf32>
    %160 = arith.negf %159 : vector<2x64xf32>
    %161 = math.exp %160 : vector<2x64xf32>
    %cst_44 = arith.constant 1.000000e+00 : f32
    %162 = vector.broadcast %cst_44 : f32 to vector<2x64xf32>
    %163 = arith.addf %162, %161 : vector<2x64xf32>
    %164 = arith.divf %162, %163 : vector<2x64xf32>
    %165 = vector.extract_strided_slice %156 {offsets = [0, 64], sizes = [2, 64], strides = [1, 1]} : vector<2x192xf32> to vector<2x64xf32>
    %166 = vector.extract_strided_slice %155 {offsets = [0, 64], sizes = [2, 64], strides = [1, 1]} : vector<2x192xf32> to vector<2x64xf32>
    %167 = arith.addf %165, %166 : vector<2x64xf32>
    %168 = arith.negf %167 : vector<2x64xf32>
    %169 = math.exp %168 : vector<2x64xf32>
    %cst_45 = arith.constant 1.000000e+00 : f32
    %170 = vector.broadcast %cst_45 : f32 to vector<2x64xf32>
    %171 = arith.addf %170, %169 : vector<2x64xf32>
    %172 = arith.divf %170, %171 : vector<2x64xf32>
    %173 = vector.extract_strided_slice %156 {offsets = [0, 128], sizes = [2, 64], strides = [1, 1]} : vector<2x192xf32> to vector<2x64xf32>
    %174 = vector.extract_strided_slice %155 {offsets = [0, 128], sizes = [2, 64], strides = [1, 1]} : vector<2x192xf32> to vector<2x64xf32>
    %175 = arith.mulf %164, %174 : vector<2x64xf32>
    %176 = arith.addf %173, %175 : vector<2x64xf32>
    %177 = math.tanh %176 : vector<2x64xf32>
    %cst_46 = arith.constant 1.000000e+00 : f32
    %178 = vector.broadcast %cst_46 : f32 to vector<2x64xf32>
    %179 = arith.subf %178, %172 : vector<2x64xf32>
    %180 = arith.mulf %179, %177 : vector<2x64xf32>
    %181 = arith.mulf %172, %116 : vector<2x64xf32>
    %182 = arith.addf %180, %181 : vector<2x64xf32>
    %183 = arith.truncf %182 : vector<2x64xf32> to vector<2x64xbf16>
    %cst_47 = arith.constant dense<0.000000e+00> : vector<2x192xf32>
    %184 = tpu.matmul %183, %1, %cst_47 {dimension_numbers = #tpu.dot_dimension_numbers<[1], [0], [0], [1], [0, 0, 1, 1], [], []>} : vector<2x64xbf16>, vector<64x192xbf16>, vector<2x192xf32> -> vector<2x192xf32>
    %185 = arith.addf %184, %8 : vector<2x192xf32>
    %186 = arith.truncf %148 : vector<2x64xf32> to vector<2x64xbf16>
    %cst_48 = arith.constant dense<0.000000e+00> : vector<2x192xf32>
    %187 = tpu.matmul %186, %2, %cst_48 {dimension_numbers = #tpu.dot_dimension_numbers<[1], [0], [0], [1], [0, 0, 1, 1], [], []>} : vector<2x64xbf16>, vector<64x192xbf16>, vector<2x192xf32> -> vector<2x192xf32>
    %188 = arith.addf %187, %11 : vector<2x192xf32>
    %189 = vector.extract_strided_slice %185 {offsets = [0, 0], sizes = [2, 64], strides = [1, 1]} : vector<2x192xf32> to vector<2x64xf32>
    %190 = vector.extract_strided_slice %188 {offsets = [0, 0], sizes = [2, 64], strides = [1, 1]} : vector<2x192xf32> to vector<2x64xf32>
    %191 = arith.addf %189, %190 : vector<2x64xf32>
    %192 = arith.negf %191 : vector<2x64xf32>
    %193 = math.exp %192 : vector<2x64xf32>
    %cst_49 = arith.constant 1.000000e+00 : f32
    %194 = vector.broadcast %cst_49 : f32 to vector<2x64xf32>
    %195 = arith.addf %194, %193 : vector<2x64xf32>
    %196 = arith.divf %194, %195 : vector<2x64xf32>
    %197 = vector.extract_strided_slice %185 {offsets = [0, 64], sizes = [2, 64], strides = [1, 1]} : vector<2x192xf32> to vector<2x64xf32>
    %198 = vector.extract_strided_slice %188 {offsets = [0, 64], sizes = [2, 64], strides = [1, 1]} : vector<2x192xf32> to vector<2x64xf32>
    %199 = arith.addf %197, %198 : vector<2x64xf32>
    %200 = arith.negf %199 : vector<2x64xf32>
    %201 = math.exp %200 : vector<2x64xf32>
    %cst_50 = arith.constant 1.000000e+00 : f32
    %202 = vector.broadcast %cst_50 : f32 to vector<2x64xf32>
    %203 = arith.addf %202, %201 : vector<2x64xf32>
    %204 = arith.divf %202, %203 : vector<2x64xf32>
    %205 = vector.extract_strided_slice %185 {offsets = [0, 128], sizes = [2, 64], strides = [1, 1]} : vector<2x192xf32> to vector<2x64xf32>
    %206 = vector.extract_strided_slice %188 {offsets = [0, 128], sizes = [2, 64], strides = [1, 1]} : vector<2x192xf32> to vector<2x64xf32>
    %207 = arith.mulf %196, %206 : vector<2x64xf32>
    %208 = arith.addf %205, %207 : vector<2x64xf32>
    %209 = math.tanh %208 : vector<2x64xf32>
    %cst_51 = arith.constant 1.000000e+00 : f32
    %210 = vector.broadcast %cst_51 : f32 to vector<2x64xf32>
    %211 = arith.subf %210, %204 : vector<2x64xf32>
    %212 = arith.mulf %211, %209 : vector<2x64xf32>
    %213 = arith.mulf %204, %148 : vector<2x64xf32>
    %214 = arith.addf %212, %213 : vector<2x64xf32>
    %c2_52 = arith.constant 2 : index
    %c0_53 = arith.constant 0 : index
    %215 = vector.load %arg9[%c2_52, %c0_53] : memref<8x64xf32, #tpu.memory_space<vmem>>, vector<1x64xf32>
    %216 = vector.broadcast %215 : vector<1x64xf32> to vector<2x64xf32>
    %217 = arith.addf %214, %216 : vector<2x64xf32>
    %c4 = arith.constant 4 : index
    %c0_54 = arith.constant 0 : index
    %218 = vector.load %arg25[%c4, %c0_54] : memref<16x64xf32, #tpu.memory_space<vmem>>, vector<2x64xf32>
    tpu.vector_store %arg25[%c4, %c0_54], %217 {strides = array<i32>} : memref<16x64xf32, #tpu.memory_space<vmem>>, vector<2x64xf32>,
    %219 = arith.truncf %182 : vector<2x64xf32> to vector<2x64xbf16>
    %cst_55 = arith.constant dense<0.000000e+00> : vector<2x192xf32>
    %220 = tpu.matmul %219, %0, %cst_55 {dimension_numbers = #tpu.dot_dimension_numbers<[1], [0], [0], [1], [0, 0, 1, 1], [], []>} : vector<2x64xbf16>, vector<64x192xbf16>, vector<2x192xf32> -> vector<2x192xf32>
    %221 = arith.addf %220, %5 : vector<2x192xf32>
    %222 = vector.extract_strided_slice %18 {offsets = [6, 0], sizes = [2, 192], strides = [1, 1]} : vector<16x192xf32> to vector<2x192xf32>
    %223 = vector.extract_strided_slice %222 {offsets = [0, 0], sizes = [2, 64], strides = [1, 1]} : vector<2x192xf32> to vector<2x64xf32>
    %224 = vector.extract_strided_slice %221 {offsets = [0, 0], sizes = [2, 64], strides = [1, 1]} : vector<2x192xf32> to vector<2x64xf32>
    %225 = arith.addf %223, %224 : vector<2x64xf32>
    %226 = arith.negf %225 : vector<2x64xf32>
    %227 = math.exp %226 : vector<2x64xf32>
    %cst_56 = arith.constant 1.000000e+00 : f32
    %228 = vector.broadcast %cst_56 : f32 to vector<2x64xf32>
    %229 = arith.addf %228, %227 : vector<2x64xf32>
    %230 = arith.divf %228, %229 : vector<2x64xf32>
    %231 = vector.extract_strided_slice %222 {offsets = [0, 64], sizes = [2, 64], strides = [1, 1]} : vector<2x192xf32> to vector<2x64xf32>
    %232 = vector.extract_strided_slice %221 {offsets = [0, 64], sizes = [2, 64], strides = [1, 1]} : vector<2x192xf32> to vector<2x64xf32>
    %233 = arith.addf %231, %232 : vector<2x64xf32>
    %234 = arith.negf %233 : vector<2x64xf32>
    %235 = math.exp %234 : vector<2x64xf32>
    %cst_57 = arith.constant 1.000000e+00 : f32
    %236 = vector.broadcast %cst_57 : f32 to vector<2x64xf32>
    %237 = arith.addf %236, %235 : vector<2x64xf32>
    %238 = arith.divf %236, %237 : vector<2x64xf32>
    %239 = vector.extract_strided_slice %222 {offsets = [0, 128], sizes = [2, 64], strides = [1, 1]} : vector<2x192xf32> to vector<2x64xf32>
    %240 = vector.extract_strided_slice %221 {offsets = [0, 128], sizes = [2, 64], strides = [1, 1]} : vector<2x192xf32> to vector<2x64xf32>
    %241 = arith.mulf %230, %240 : vector<2x64xf32>
    %242 = arith.addf %239, %241 : vector<2x64xf32>
    %243 = math.tanh %242 : vector<2x64xf32>
    %cst_58 = arith.constant 1.000000e+00 : f32
    %244 = vector.broadcast %cst_58 : f32 to vector<2x64xf32>
    %245 = arith.subf %244, %238 : vector<2x64xf32>
    %246 = arith.mulf %245, %243 : vector<2x64xf32>
    %247 = arith.mulf %238, %182 : vector<2x64xf32>
    %248 = arith.addf %246, %247 : vector<2x64xf32>
    %249 = arith.truncf %248 : vector<2x64xf32> to vector<2x64xbf16>
    %cst_59 = arith.constant dense<0.000000e+00> : vector<2x192xf32>
    %250 = tpu.matmul %249, %1, %cst_59 {dimension_numbers = #tpu.dot_dimension_numbers<[1], [0], [0], [1], [0, 0, 1, 1], [], []>} : vector<2x64xbf16>, vector<64x192xbf16>, vector<2x192xf32> -> vector<2x192xf32>
    %251 = arith.addf %250, %8 : vector<2x192xf32>
    %252 = arith.truncf %214 : vector<2x64xf32> to vector<2x64xbf16>
    %cst_60 = arith.constant dense<0.000000e+00> : vector<2x192xf32>
    %253 = tpu.matmul %252, %2, %cst_60 {dimension_numbers = #tpu.dot_dimension_numbers<[1], [0], [0], [1], [0, 0, 1, 1], [], []>} : vector<2x64xbf16>, vector<64x192xbf16>, vector<2x192xf32> -> vector<2x192xf32>
    %254 = arith.addf %253, %11 : vector<2x192xf32>
    %255 = vector.extract_strided_slice %251 {offsets = [0, 0], sizes = [2, 64], strides = [1, 1]} : vector<2x192xf32> to vector<2x64xf32>
    %256 = vector.extract_strided_slice %254 {offsets = [0, 0], sizes = [2, 64], strides = [1, 1]} : vector<2x192xf32> to vector<2x64xf32>
    %257 = arith.addf %255, %256 : vector<2x64xf32>
    %258 = arith.negf %257 : vector<2x64xf32>
    %259 = math.exp %258 : vector<2x64xf32>
    %cst_61 = arith.constant 1.000000e+00 : f32
    %260 = vector.broadcast %cst_61 : f32 to vector<2x64xf32>
    %261 = arith.addf %260, %259 : vector<2x64xf32>
    %262 = arith.divf %260, %261 : vector<2x64xf32>
    %263 = vector.extract_strided_slice %251 {offsets = [0, 64], sizes = [2, 64], strides = [1, 1]} : vector<2x192xf32> to vector<2x64xf32>
    %264 = vector.extract_strided_slice %254 {offsets = [0, 64], sizes = [2, 64], strides = [1, 1]} : vector<2x192xf32> to vector<2x64xf32>
    %265 = arith.addf %263, %264 : vector<2x64xf32>
    %266 = arith.negf %265 : vector<2x64xf32>
    %267 = math.exp %266 : vector<2x64xf32>
    %cst_62 = arith.constant 1.000000e+00 : f32
    %268 = vector.broadcast %cst_62 : f32 to vector<2x64xf32>
    %269 = arith.addf %268, %267 : vector<2x64xf32>
    %270 = arith.divf %268, %269 : vector<2x64xf32>
    %271 = vector.extract_strided_slice %251 {offsets = [0, 128], sizes = [2, 64], strides = [1, 1]} : vector<2x192xf32> to vector<2x64xf32>
    %272 = vector.extract_strided_slice %254 {offsets = [0, 128], sizes = [2, 64], strides = [1, 1]} : vector<2x192xf32> to vector<2x64xf32>
    %273 = arith.mulf %262, %272 : vector<2x64xf32>
    %274 = arith.addf %271, %273 : vector<2x64xf32>
    %275 = math.tanh %274 : vector<2x64xf32>
    %cst_63 = arith.constant 1.000000e+00 : f32
    %276 = vector.broadcast %cst_63 : f32 to vector<2x64xf32>
    %277 = arith.subf %276, %270 : vector<2x64xf32>
    %278 = arith.mulf %277, %275 : vector<2x64xf32>
    %279 = arith.mulf %270, %214 : vector<2x64xf32>
    %280 = arith.addf %278, %279 : vector<2x64xf32>
    %c3 = arith.constant 3 : index
    %c0_64 = arith.constant 0 : index
    %281 = vector.load %arg9[%c3, %c0_64] : memref<8x64xf32, #tpu.memory_space<vmem>>, vector<1x64xf32>
    %282 = vector.broadcast %281 : vector<1x64xf32> to vector<2x64xf32>
    %283 = arith.addf %280, %282 : vector<2x64xf32>
    %c6 = arith.constant 6 : index
    %c0_65 = arith.constant 0 : index
    %284 = vector.load %arg25[%c6, %c0_65] : memref<16x64xf32, #tpu.memory_space<vmem>>, vector<2x64xf32>
    tpu.vector_store %arg25[%c6, %c0_65], %283 {strides = array<i32>} : memref<16x64xf32, #tpu.memory_space<vmem>>, vector<2x64xf32>,
    %285 = arith.truncf %248 : vector<2x64xf32> to vector<2x64xbf16>
    %cst_66 = arith.constant dense<0.000000e+00> : vector<2x192xf32>
    %286 = tpu.matmul %285, %0, %cst_66 {dimension_numbers = #tpu.dot_dimension_numbers<[1], [0], [0], [1], [0, 0, 1, 1], [], []>} : vector<2x64xbf16>, vector<64x192xbf16>, vector<2x192xf32> -> vector<2x192xf32>
    %287 = arith.addf %286, %5 : vector<2x192xf32>
    %288 = vector.extract_strided_slice %18 {offsets = [8, 0], sizes = [2, 192], strides = [1, 1]} : vector<16x192xf32> to vector<2x192xf32>
    %289 = vector.extract_strided_slice %288 {offsets = [0, 0], sizes = [2, 64], strides = [1, 1]} : vector<2x192xf32> to vector<2x64xf32>
    %290 = vector.extract_strided_slice %287 {offsets = [0, 0], sizes = [2, 64], strides = [1, 1]} : vector<2x192xf32> to vector<2x64xf32>
    %291 = arith.addf %289, %290 : vector<2x64xf32>
    %292 = arith.negf %291 : vector<2x64xf32>
    %293 = math.exp %292 : vector<2x64xf32>
    %cst_67 = arith.constant 1.000000e+00 : f32
    %294 = vector.broadcast %cst_67 : f32 to vector<2x64xf32>
    %295 = arith.addf %294, %293 : vector<2x64xf32>
    %296 = arith.divf %294, %295 : vector<2x64xf32>
    %297 = vector.extract_strided_slice %288 {offsets = [0, 64], sizes = [2, 64], strides = [1, 1]} : vector<2x192xf32> to vector<2x64xf32>
    %298 = vector.extract_strided_slice %287 {offsets = [0, 64], sizes = [2, 64], strides = [1, 1]} : vector<2x192xf32> to vector<2x64xf32>
    %299 = arith.addf %297, %298 : vector<2x64xf32>
    %300 = arith.negf %299 : vector<2x64xf32>
    %301 = math.exp %300 : vector<2x64xf32>
    %cst_68 = arith.constant 1.000000e+00 : f32
    %302 = vector.broadcast %cst_68 : f32 to vector<2x64xf32>
    %303 = arith.addf %302, %301 : vector<2x64xf32>
    %304 = arith.divf %302, %303 : vector<2x64xf32>
    %305 = vector.extract_strided_slice %288 {offsets = [0, 128], sizes = [2, 64], strides = [1, 1]} : vector<2x192xf32> to vector<2x64xf32>
    %306 = vector.extract_strided_slice %287 {offsets = [0, 128], sizes = [2, 64], strides = [1, 1]} : vector<2x192xf32> to vector<2x64xf32>
    %307 = arith.mulf %296, %306 : vector<2x64xf32>
    %308 = arith.addf %305, %307 : vector<2x64xf32>
    %309 = math.tanh %308 : vector<2x64xf32>
    %cst_69 = arith.constant 1.000000e+00 : f32
    %310 = vector.broadcast %cst_69 : f32 to vector<2x64xf32>
    %311 = arith.subf %310, %304 : vector<2x64xf32>
    %312 = arith.mulf %311, %309 : vector<2x64xf32>
    %313 = arith.mulf %304, %248 : vector<2x64xf32>
    %314 = arith.addf %312, %313 : vector<2x64xf32>
    %315 = arith.truncf %314 : vector<2x64xf32> to vector<2x64xbf16>
    %cst_70 = arith.constant dense<0.000000e+00> : vector<2x192xf32>
    %316 = tpu.matmul %315, %1, %cst_70 {dimension_numbers = #tpu.dot_dimension_numbers<[1], [0], [0], [1], [0, 0, 1, 1], [], []>} : vector<2x64xbf16>, vector<64x192xbf16>, vector<2x192xf32> -> vector<2x192xf32>
    %317 = arith.addf %316, %8 : vector<2x192xf32>
    %318 = arith.truncf %280 : vector<2x64xf32> to vector<2x64xbf16>
    %cst_71 = arith.constant dense<0.000000e+00> : vector<2x192xf32>
    %319 = tpu.matmul %318, %2, %cst_71 {dimension_numbers = #tpu.dot_dimension_numbers<[1], [0], [0], [1], [0, 0, 1, 1], [], []>} : vector<2x64xbf16>, vector<64x192xbf16>, vector<2x192xf32> -> vector<2x192xf32>
    %320 = arith.addf %319, %11 : vector<2x192xf32>
    %321 = vector.extract_strided_slice %317 {offsets = [0, 0], sizes = [2, 64], strides = [1, 1]} : vector<2x192xf32> to vector<2x64xf32>
    %322 = vector.extract_strided_slice %320 {offsets = [0, 0], sizes = [2, 64], strides = [1, 1]} : vector<2x192xf32> to vector<2x64xf32>
    %323 = arith.addf %321, %322 : vector<2x64xf32>
    %324 = arith.negf %323 : vector<2x64xf32>
    %325 = math.exp %324 : vector<2x64xf32>
    %cst_72 = arith.constant 1.000000e+00 : f32
    %326 = vector.broadcast %cst_72 : f32 to vector<2x64xf32>
    %327 = arith.addf %326, %325 : vector<2x64xf32>
    %328 = arith.divf %326, %327 : vector<2x64xf32>
    %329 = vector.extract_strided_slice %317 {offsets = [0, 64], sizes = [2, 64], strides = [1, 1]} : vector<2x192xf32> to vector<2x64xf32>
    %330 = vector.extract_strided_slice %320 {offsets = [0, 64], sizes = [2, 64], strides = [1, 1]} : vector<2x192xf32> to vector<2x64xf32>
    %331 = arith.addf %329, %330 : vector<2x64xf32>
    %332 = arith.negf %331 : vector<2x64xf32>
    %333 = math.exp %332 : vector<2x64xf32>
    %cst_73 = arith.constant 1.000000e+00 : f32
    %334 = vector.broadcast %cst_73 : f32 to vector<2x64xf32>
    %335 = arith.addf %334, %333 : vector<2x64xf32>
    %336 = arith.divf %334, %335 : vector<2x64xf32>
    %337 = vector.extract_strided_slice %317 {offsets = [0, 128], sizes = [2, 64], strides = [1, 1]} : vector<2x192xf32> to vector<2x64xf32>
    %338 = vector.extract_strided_slice %320 {offsets = [0, 128], sizes = [2, 64], strides = [1, 1]} : vector<2x192xf32> to vector<2x64xf32>
    %339 = arith.mulf %328, %338 : vector<2x64xf32>
    %340 = arith.addf %337, %339 : vector<2x64xf32>
    %341 = math.tanh %340 : vector<2x64xf32>
    %cst_74 = arith.constant 1.000000e+00 : f32
    %342 = vector.broadcast %cst_74 : f32 to vector<2x64xf32>
    %343 = arith.subf %342, %336 : vector<2x64xf32>
    %344 = arith.mulf %343, %341 : vector<2x64xf32>
    %345 = arith.mulf %336, %280 : vector<2x64xf32>
    %346 = arith.addf %344, %345 : vector<2x64xf32>
    %c4_75 = arith.constant 4 : index
    %c0_76 = arith.constant 0 : index
    %347 = vector.load %arg9[%c4_75, %c0_76] : memref<8x64xf32, #tpu.memory_space<vmem>>, vector<1x64xf32>
    %348 = vector.broadcast %347 : vector<1x64xf32> to vector<2x64xf32>
    %349 = arith.addf %346, %348 : vector<2x64xf32>
    %c8 = arith.constant 8 : index
    %c0_77 = arith.constant 0 : index
    %350 = vector.load %arg25[%c8, %c0_77] : memref<16x64xf32, #tpu.memory_space<vmem>>, vector<2x64xf32>
    tpu.vector_store %arg25[%c8, %c0_77], %349 {strides = array<i32>} : memref<16x64xf32, #tpu.memory_space<vmem>>, vector<2x64xf32>,
    %351 = arith.truncf %314 : vector<2x64xf32> to vector<2x64xbf16>
    %cst_78 = arith.constant dense<0.000000e+00> : vector<2x192xf32>
    %352 = tpu.matmul %351, %0, %cst_78 {dimension_numbers = #tpu.dot_dimension_numbers<[1], [0], [0], [1], [0, 0, 1, 1], [], []>} : vector<2x64xbf16>, vector<64x192xbf16>, vector<2x192xf32> -> vector<2x192xf32>
    %353 = arith.addf %352, %5 : vector<2x192xf32>
    %354 = vector.extract_strided_slice %18 {offsets = [10, 0], sizes = [2, 192], strides = [1, 1]} : vector<16x192xf32> to vector<2x192xf32>
    %355 = vector.extract_strided_slice %354 {offsets = [0, 0], sizes = [2, 64], strides = [1, 1]} : vector<2x192xf32> to vector<2x64xf32>
    %356 = vector.extract_strided_slice %353 {offsets = [0, 0], sizes = [2, 64], strides = [1, 1]} : vector<2x192xf32> to vector<2x64xf32>
    %357 = arith.addf %355, %356 : vector<2x64xf32>
    %358 = arith.negf %357 : vector<2x64xf32>
    %359 = math.exp %358 : vector<2x64xf32>
    %cst_79 = arith.constant 1.000000e+00 : f32
    %360 = vector.broadcast %cst_79 : f32 to vector<2x64xf32>
    %361 = arith.addf %360, %359 : vector<2x64xf32>
    %362 = arith.divf %360, %361 : vector<2x64xf32>
    %363 = vector.extract_strided_slice %354 {offsets = [0, 64], sizes = [2, 64], strides = [1, 1]} : vector<2x192xf32> to vector<2x64xf32>
    %364 = vector.extract_strided_slice %353 {offsets = [0, 64], sizes = [2, 64], strides = [1, 1]} : vector<2x192xf32> to vector<2x64xf32>
    %365 = arith.addf %363, %364 : vector<2x64xf32>
    %366 = arith.negf %365 : vector<2x64xf32>
    %367 = math.exp %366 : vector<2x64xf32>
    %cst_80 = arith.constant 1.000000e+00 : f32
    %368 = vector.broadcast %cst_80 : f32 to vector<2x64xf32>
    %369 = arith.addf %368, %367 : vector<2x64xf32>
    %370 = arith.divf %368, %369 : vector<2x64xf32>
    %371 = vector.extract_strided_slice %354 {offsets = [0, 128], sizes = [2, 64], strides = [1, 1]} : vector<2x192xf32> to vector<2x64xf32>
    %372 = vector.extract_strided_slice %353 {offsets = [0, 128], sizes = [2, 64], strides = [1, 1]} : vector<2x192xf32> to vector<2x64xf32>
    %373 = arith.mulf %362, %372 : vector<2x64xf32>
    %374 = arith.addf %371, %373 : vector<2x64xf32>
    %375 = math.tanh %374 : vector<2x64xf32>
    %cst_81 = arith.constant 1.000000e+00 : f32
    %376 = vector.broadcast %cst_81 : f32 to vector<2x64xf32>
    %377 = arith.subf %376, %370 : vector<2x64xf32>
    %378 = arith.mulf %377, %375 : vector<2x64xf32>
    %379 = arith.mulf %370, %314 : vector<2x64xf32>
    %380 = arith.addf %378, %379 : vector<2x64xf32>
    %381 = arith.truncf %380 : vector<2x64xf32> to vector<2x64xbf16>
    %cst_82 = arith.constant dense<0.000000e+00> : vector<2x192xf32>
    %382 = tpu.matmul %381, %1, %cst_82 {dimension_numbers = #tpu.dot_dimension_numbers<[1], [0], [0], [1], [0, 0, 1, 1], [], []>} : vector<2x64xbf16>, vector<64x192xbf16>, vector<2x192xf32> -> vector<2x192xf32>
    %383 = arith.addf %382, %8 : vector<2x192xf32>
    %384 = arith.truncf %346 : vector<2x64xf32> to vector<2x64xbf16>
    %cst_83 = arith.constant dense<0.000000e+00> : vector<2x192xf32>
    %385 = tpu.matmul %384, %2, %cst_83 {dimension_numbers = #tpu.dot_dimension_numbers<[1], [0], [0], [1], [0, 0, 1, 1], [], []>} : vector<2x64xbf16>, vector<64x192xbf16>, vector<2x192xf32> -> vector<2x192xf32>
    %386 = arith.addf %385, %11 : vector<2x192xf32>
    %387 = vector.extract_strided_slice %383 {offsets = [0, 0], sizes = [2, 64], strides = [1, 1]} : vector<2x192xf32> to vector<2x64xf32>
    %388 = vector.extract_strided_slice %386 {offsets = [0, 0], sizes = [2, 64], strides = [1, 1]} : vector<2x192xf32> to vector<2x64xf32>
    %389 = arith.addf %387, %388 : vector<2x64xf32>
    %390 = arith.negf %389 : vector<2x64xf32>
    %391 = math.exp %390 : vector<2x64xf32>
    %cst_84 = arith.constant 1.000000e+00 : f32
    %392 = vector.broadcast %cst_84 : f32 to vector<2x64xf32>
    %393 = arith.addf %392, %391 : vector<2x64xf32>
    %394 = arith.divf %392, %393 : vector<2x64xf32>
    %395 = vector.extract_strided_slice %383 {offsets = [0, 64], sizes = [2, 64], strides = [1, 1]} : vector<2x192xf32> to vector<2x64xf32>
    %396 = vector.extract_strided_slice %386 {offsets = [0, 64], sizes = [2, 64], strides = [1, 1]} : vector<2x192xf32> to vector<2x64xf32>
    %397 = arith.addf %395, %396 : vector<2x64xf32>
    %398 = arith.negf %397 : vector<2x64xf32>
    %399 = math.exp %398 : vector<2x64xf32>
    %cst_85 = arith.constant 1.000000e+00 : f32
    %400 = vector.broadcast %cst_85 : f32 to vector<2x64xf32>
    %401 = arith.addf %400, %399 : vector<2x64xf32>
    %402 = arith.divf %400, %401 : vector<2x64xf32>
    %403 = vector.extract_strided_slice %383 {offsets = [0, 128], sizes = [2, 64], strides = [1, 1]} : vector<2x192xf32> to vector<2x64xf32>
    %404 = vector.extract_strided_slice %386 {offsets = [0, 128], sizes = [2, 64], strides = [1, 1]} : vector<2x192xf32> to vector<2x64xf32>
    %405 = arith.mulf %394, %404 : vector<2x64xf32>
    %406 = arith.addf %403, %405 : vector<2x64xf32>
    %407 = math.tanh %406 : vector<2x64xf32>
    %cst_86 = arith.constant 1.000000e+00 : f32
    %408 = vector.broadcast %cst_86 : f32 to vector<2x64xf32>
    %409 = arith.subf %408, %402 : vector<2x64xf32>
    %410 = arith.mulf %409, %407 : vector<2x64xf32>
    %411 = arith.mulf %402, %346 : vector<2x64xf32>
    %412 = arith.addf %410, %411 : vector<2x64xf32>
    %c5 = arith.constant 5 : index
    %c0_87 = arith.constant 0 : index
    %413 = vector.load %arg9[%c5, %c0_87] : memref<8x64xf32, #tpu.memory_space<vmem>>, vector<1x64xf32>
    %414 = vector.broadcast %413 : vector<1x64xf32> to vector<2x64xf32>
    %415 = arith.addf %412, %414 : vector<2x64xf32>
    %c10 = arith.constant 10 : index
    %c0_88 = arith.constant 0 : index
    %416 = vector.load %arg25[%c10, %c0_88] : memref<16x64xf32, #tpu.memory_space<vmem>>, vector<2x64xf32>
    tpu.vector_store %arg25[%c10, %c0_88], %415 {strides = array<i32>} : memref<16x64xf32, #tpu.memory_space<vmem>>, vector<2x64xf32>,
    %417 = arith.truncf %380 : vector<2x64xf32> to vector<2x64xbf16>
    %cst_89 = arith.constant dense<0.000000e+00> : vector<2x192xf32>
    %418 = tpu.matmul %417, %0, %cst_89 {dimension_numbers = #tpu.dot_dimension_numbers<[1], [0], [0], [1], [0, 0, 1, 1], [], []>} : vector<2x64xbf16>, vector<64x192xbf16>, vector<2x192xf32> -> vector<2x192xf32>
    %419 = arith.addf %418, %5 : vector<2x192xf32>
    %420 = vector.extract_strided_slice %18 {offsets = [12, 0], sizes = [2, 192], strides = [1, 1]} : vector<16x192xf32> to vector<2x192xf32>
    %421 = vector.extract_strided_slice %420 {offsets = [0, 0], sizes = [2, 64], strides = [1, 1]} : vector<2x192xf32> to vector<2x64xf32>
    %422 = vector.extract_strided_slice %419 {offsets = [0, 0], sizes = [2, 64], strides = [1, 1]} : vector<2x192xf32> to vector<2x64xf32>
    %423 = arith.addf %421, %422 : vector<2x64xf32>
    %424 = arith.negf %423 : vector<2x64xf32>
    %425 = math.exp %424 : vector<2x64xf32>
    %cst_90 = arith.constant 1.000000e+00 : f32
    %426 = vector.broadcast %cst_90 : f32 to vector<2x64xf32>
    %427 = arith.addf %426, %425 : vector<2x64xf32>
    %428 = arith.divf %426, %427 : vector<2x64xf32>
    %429 = vector.extract_strided_slice %420 {offsets = [0, 64], sizes = [2, 64], strides = [1, 1]} : vector<2x192xf32> to vector<2x64xf32>
    %430 = vector.extract_strided_slice %419 {offsets = [0, 64], sizes = [2, 64], strides = [1, 1]} : vector<2x192xf32> to vector<2x64xf32>
    %431 = arith.addf %429, %430 : vector<2x64xf32>
    %432 = arith.negf %431 : vector<2x64xf32>
    %433 = math.exp %432 : vector<2x64xf32>
    %cst_91 = arith.constant 1.000000e+00 : f32
    %434 = vector.broadcast %cst_91 : f32 to vector<2x64xf32>
    %435 = arith.addf %434, %433 : vector<2x64xf32>
    %436 = arith.divf %434, %435 : vector<2x64xf32>
    %437 = vector.extract_strided_slice %420 {offsets = [0, 128], sizes = [2, 64], strides = [1, 1]} : vector<2x192xf32> to vector<2x64xf32>
    %438 = vector.extract_strided_slice %419 {offsets = [0, 128], sizes = [2, 64], strides = [1, 1]} : vector<2x192xf32> to vector<2x64xf32>
    %439 = arith.mulf %428, %438 : vector<2x64xf32>
    %440 = arith.addf %437, %439 : vector<2x64xf32>
    %441 = math.tanh %440 : vector<2x64xf32>
    %cst_92 = arith.constant 1.000000e+00 : f32
    %442 = vector.broadcast %cst_92 : f32 to vector<2x64xf32>
    %443 = arith.subf %442, %436 : vector<2x64xf32>
    %444 = arith.mulf %443, %441 : vector<2x64xf32>
    %445 = arith.mulf %436, %380 : vector<2x64xf32>
    %446 = arith.addf %444, %445 : vector<2x64xf32>
    %447 = arith.truncf %446 : vector<2x64xf32> to vector<2x64xbf16>
    %cst_93 = arith.constant dense<0.000000e+00> : vector<2x192xf32>
    %448 = tpu.matmul %447, %1, %cst_93 {dimension_numbers = #tpu.dot_dimension_numbers<[1], [0], [0], [1], [0, 0, 1, 1], [], []>} : vector<2x64xbf16>, vector<64x192xbf16>, vector<2x192xf32> -> vector<2x192xf32>
    %449 = arith.addf %448, %8 : vector<2x192xf32>
    %450 = arith.truncf %412 : vector<2x64xf32> to vector<2x64xbf16>
    %cst_94 = arith.constant dense<0.000000e+00> : vector<2x192xf32>
    %451 = tpu.matmul %450, %2, %cst_94 {dimension_numbers = #tpu.dot_dimension_numbers<[1], [0], [0], [1], [0, 0, 1, 1], [], []>} : vector<2x64xbf16>, vector<64x192xbf16>, vector<2x192xf32> -> vector<2x192xf32>
    %452 = arith.addf %451, %11 : vector<2x192xf32>
    %453 = vector.extract_strided_slice %449 {offsets = [0, 0], sizes = [2, 64], strides = [1, 1]} : vector<2x192xf32> to vector<2x64xf32>
    %454 = vector.extract_strided_slice %452 {offsets = [0, 0], sizes = [2, 64], strides = [1, 1]} : vector<2x192xf32> to vector<2x64xf32>
    %455 = arith.addf %453, %454 : vector<2x64xf32>
    %456 = arith.negf %455 : vector<2x64xf32>
    %457 = math.exp %456 : vector<2x64xf32>
    %cst_95 = arith.constant 1.000000e+00 : f32
    %458 = vector.broadcast %cst_95 : f32 to vector<2x64xf32>
    %459 = arith.addf %458, %457 : vector<2x64xf32>
    %460 = arith.divf %458, %459 : vector<2x64xf32>
    %461 = vector.extract_strided_slice %449 {offsets = [0, 64], sizes = [2, 64], strides = [1, 1]} : vector<2x192xf32> to vector<2x64xf32>
    %462 = vector.extract_strided_slice %452 {offsets = [0, 64], sizes = [2, 64], strides = [1, 1]} : vector<2x192xf32> to vector<2x64xf32>
    %463 = arith.addf %461, %462 : vector<2x64xf32>
    %464 = arith.negf %463 : vector<2x64xf32>
    %465 = math.exp %464 : vector<2x64xf32>
    %cst_96 = arith.constant 1.000000e+00 : f32
    %466 = vector.broadcast %cst_96 : f32 to vector<2x64xf32>
    %467 = arith.addf %466, %465 : vector<2x64xf32>
    %468 = arith.divf %466, %467 : vector<2x64xf32>
    %469 = vector.extract_strided_slice %449 {offsets = [0, 128], sizes = [2, 64], strides = [1, 1]} : vector<2x192xf32> to vector<2x64xf32>
    %470 = vector.extract_strided_slice %452 {offsets = [0, 128], sizes = [2, 64], strides = [1, 1]} : vector<2x192xf32> to vector<2x64xf32>
    %471 = arith.mulf %460, %470 : vector<2x64xf32>
    %472 = arith.addf %469, %471 : vector<2x64xf32>
    %473 = math.tanh %472 : vector<2x64xf32>
    %cst_97 = arith.constant 1.000000e+00 : f32
    %474 = vector.broadcast %cst_97 : f32 to vector<2x64xf32>
    %475 = arith.subf %474, %468 : vector<2x64xf32>
    %476 = arith.mulf %475, %473 : vector<2x64xf32>
    %477 = arith.mulf %468, %412 : vector<2x64xf32>
    %478 = arith.addf %476, %477 : vector<2x64xf32>
    %c6_98 = arith.constant 6 : index
    %c0_99 = arith.constant 0 : index
    %479 = vector.load %arg9[%c6_98, %c0_99] : memref<8x64xf32, #tpu.memory_space<vmem>>, vector<1x64xf32>
    %480 = vector.broadcast %479 : vector<1x64xf32> to vector<2x64xf32>
    %481 = arith.addf %478, %480 : vector<2x64xf32>
    %c12 = arith.constant 12 : index
    %c0_100 = arith.constant 0 : index
    %482 = vector.load %arg25[%c12, %c0_100] : memref<16x64xf32, #tpu.memory_space<vmem>>, vector<2x64xf32>
    tpu.vector_store %arg25[%c12, %c0_100], %481 {strides = array<i32>} : memref<16x64xf32, #tpu.memory_space<vmem>>, vector<2x64xf32>,
    %483 = arith.truncf %446 : vector<2x64xf32> to vector<2x64xbf16>
    %cst_101 = arith.constant dense<0.000000e+00> : vector<2x192xf32>
    %484 = tpu.matmul %483, %0, %cst_101 {dimension_numbers = #tpu.dot_dimension_numbers<[1], [0], [0], [1], [0, 0, 1, 1], [], []>} : vector<2x64xbf16>, vector<64x192xbf16>, vector<2x192xf32> -> vector<2x192xf32>
    %485 = arith.addf %484, %5 : vector<2x192xf32>
    %486 = vector.extract_strided_slice %18 {offsets = [14, 0], sizes = [2, 192], strides = [1, 1]} : vector<16x192xf32> to vector<2x192xf32>
    %487 = vector.extract_strided_slice %486 {offsets = [0, 0], sizes = [2, 64], strides = [1, 1]} : vector<2x192xf32> to vector<2x64xf32>
    %488 = vector.extract_strided_slice %485 {offsets = [0, 0], sizes = [2, 64], strides = [1, 1]} : vector<2x192xf32> to vector<2x64xf32>
    %489 = arith.addf %487, %488 : vector<2x64xf32>
    %490 = arith.negf %489 : vector<2x64xf32>
    %491 = math.exp %490 : vector<2x64xf32>
    %cst_102 = arith.constant 1.000000e+00 : f32
    %492 = vector.broadcast %cst_102 : f32 to vector<2x64xf32>
    %493 = arith.addf %492, %491 : vector<2x64xf32>
    %494 = arith.divf %492, %493 : vector<2x64xf32>
    %495 = vector.extract_strided_slice %486 {offsets = [0, 64], sizes = [2, 64], strides = [1, 1]} : vector<2x192xf32> to vector<2x64xf32>
    %496 = vector.extract_strided_slice %485 {offsets = [0, 64], sizes = [2, 64], strides = [1, 1]} : vector<2x192xf32> to vector<2x64xf32>
    %497 = arith.addf %495, %496 : vector<2x64xf32>
    %498 = arith.negf %497 : vector<2x64xf32>
    %499 = math.exp %498 : vector<2x64xf32>
    %cst_103 = arith.constant 1.000000e+00 : f32
    %500 = vector.broadcast %cst_103 : f32 to vector<2x64xf32>
    %501 = arith.addf %500, %499 : vector<2x64xf32>
    %502 = arith.divf %500, %501 : vector<2x64xf32>
    %503 = vector.extract_strided_slice %486 {offsets = [0, 128], sizes = [2, 64], strides = [1, 1]} : vector<2x192xf32> to vector<2x64xf32>
    %504 = vector.extract_strided_slice %485 {offsets = [0, 128], sizes = [2, 64], strides = [1, 1]} : vector<2x192xf32> to vector<2x64xf32>
    %505 = arith.mulf %494, %504 : vector<2x64xf32>
    %506 = arith.addf %503, %505 : vector<2x64xf32>
    %507 = math.tanh %506 : vector<2x64xf32>
    %cst_104 = arith.constant 1.000000e+00 : f32
    %508 = vector.broadcast %cst_104 : f32 to vector<2x64xf32>
    %509 = arith.subf %508, %502 : vector<2x64xf32>
    %510 = arith.mulf %509, %507 : vector<2x64xf32>
    %511 = arith.mulf %502, %446 : vector<2x64xf32>
    %512 = arith.addf %510, %511 : vector<2x64xf32>
    %513 = arith.truncf %512 : vector<2x64xf32> to vector<2x64xbf16>
    %cst_105 = arith.constant dense<0.000000e+00> : vector<2x192xf32>
    %514 = tpu.matmul %513, %1, %cst_105 {dimension_numbers = #tpu.dot_dimension_numbers<[1], [0], [0], [1], [0, 0, 1, 1], [], []>} : vector<2x64xbf16>, vector<64x192xbf16>, vector<2x192xf32> -> vector<2x192xf32>
    %515 = arith.addf %514, %8 : vector<2x192xf32>
    %516 = arith.truncf %478 : vector<2x64xf32> to vector<2x64xbf16>
    %cst_106 = arith.constant dense<0.000000e+00> : vector<2x192xf32>
    %517 = tpu.matmul %516, %2, %cst_106 {dimension_numbers = #tpu.dot_dimension_numbers<[1], [0], [0], [1], [0, 0, 1, 1], [], []>} : vector<2x64xbf16>, vector<64x192xbf16>, vector<2x192xf32> -> vector<2x192xf32>
    %518 = arith.addf %517, %11 : vector<2x192xf32>
    %519 = vector.extract_strided_slice %515 {offsets = [0, 0], sizes = [2, 64], strides = [1, 1]} : vector<2x192xf32> to vector<2x64xf32>
    %520 = vector.extract_strided_slice %518 {offsets = [0, 0], sizes = [2, 64], strides = [1, 1]} : vector<2x192xf32> to vector<2x64xf32>
    %521 = arith.addf %519, %520 : vector<2x64xf32>
    %522 = arith.negf %521 : vector<2x64xf32>
    %523 = math.exp %522 : vector<2x64xf32>
    %cst_107 = arith.constant 1.000000e+00 : f32
    %524 = vector.broadcast %cst_107 : f32 to vector<2x64xf32>
    %525 = arith.addf %524, %523 : vector<2x64xf32>
    %526 = arith.divf %524, %525 : vector<2x64xf32>
    %527 = vector.extract_strided_slice %515 {offsets = [0, 64], sizes = [2, 64], strides = [1, 1]} : vector<2x192xf32> to vector<2x64xf32>
    %528 = vector.extract_strided_slice %518 {offsets = [0, 64], sizes = [2, 64], strides = [1, 1]} : vector<2x192xf32> to vector<2x64xf32>
    %529 = arith.addf %527, %528 : vector<2x64xf32>
    %530 = arith.negf %529 : vector<2x64xf32>
    %531 = math.exp %530 : vector<2x64xf32>
    %cst_108 = arith.constant 1.000000e+00 : f32
    %532 = vector.broadcast %cst_108 : f32 to vector<2x64xf32>
    %533 = arith.addf %532, %531 : vector<2x64xf32>
    %534 = arith.divf %532, %533 : vector<2x64xf32>
    %535 = vector.extract_strided_slice %515 {offsets = [0, 128], sizes = [2, 64], strides = [1, 1]} : vector<2x192xf32> to vector<2x64xf32>
    %536 = vector.extract_strided_slice %518 {offsets = [0, 128], sizes = [2, 64], strides = [1, 1]} : vector<2x192xf32> to vector<2x64xf32>
    %537 = arith.mulf %526, %536 : vector<2x64xf32>
    %538 = arith.addf %535, %537 : vector<2x64xf32>
    %539 = math.tanh %538 : vector<2x64xf32>
    %cst_109 = arith.constant 1.000000e+00 : f32
    %540 = vector.broadcast %cst_109 : f32 to vector<2x64xf32>
    %541 = arith.subf %540, %534 : vector<2x64xf32>
    %542 = arith.mulf %541, %539 : vector<2x64xf32>
    %543 = arith.mulf %534, %478 : vector<2x64xf32>
    %544 = arith.addf %542, %543 : vector<2x64xf32>
    %c7 = arith.constant 7 : index
    %c0_110 = arith.constant 0 : index
    %545 = vector.load %arg9[%c7, %c0_110] : memref<8x64xf32, #tpu.memory_space<vmem>>, vector<1x64xf32>
    %546 = vector.broadcast %545 : vector<1x64xf32> to vector<2x64xf32>
    %547 = arith.addf %544, %546 : vector<2x64xf32>
    %c14 = arith.constant 14 : index
    %c0_111 = arith.constant 0 : index
    %548 = vector.load %arg25[%c14, %c0_111] : memref<16x64xf32, #tpu.memory_space<vmem>>, vector<2x64xf32>
    tpu.vector_store %arg25[%c14, %c0_111], %547 {strides = array<i32>} : memref<16x64xf32, #tpu.memory_space<vmem>>, vector<2x64xf32>,
    %549 = tpu.iota {dimensions = array<i32: 0>} : vector<16x16xi32>
    %550 = tpu.iota {dimensions = array<i32: 1>} : vector<16x16xi32>
    %c2_i32 = arith.constant 2 : i32
    %c0_i32 = arith.constant 0 : i32
    %551 = arith.cmpi eq, %c2_i32, %c0_i32 : i32
    %c1_i32 = arith.constant 1 : i32
    %552 = arith.select %551, %c1_i32, %c2_i32 : i32
    %553 = vector.broadcast %552 : i32 to vector<16x16xi32>
    %554 = arith.remsi %549, %553 : vector<16x16xi32>
    %c0_i32_112 = arith.constant 0 : i32
    %555 = vector.broadcast %c0_i32_112 : i32 to vector<16x16xi32>
    %556 = arith.cmpi ne, %554, %555 : vector<16x16xi32>
    %c0_i32_113 = arith.constant 0 : i32
    %557 = vector.broadcast %c0_i32_113 : i32 to vector<16x16xi32>
    %558 = arith.cmpi slt, %554, %557 : vector<16x16xi32>
    %c0_i32_114 = arith.constant 0 : i32
    %559 = arith.cmpi slt, %552, %c0_i32_114 : i32
    %560 = vector.broadcast %559 : i1 to vector<16x16xi1>
    %561 = vector.broadcast %560 : vector<16x16xi1> to vector<16x16xi1>
    %562 = arith.xori %558, %561 : vector<16x16xi1>
    %563 = arith.andi %562, %556 : vector<16x16xi1>
    %564 = vector.broadcast %552 : i32 to vector<16x16xi32>
    %565 = arith.addi %554, %564 : vector<16x16xi32>
    %566 = arith.select %563, %565, %554 : vector<16x16xi1>, vector<16x16xi32>
    %c2_i32_115 = arith.constant 2 : i32
    %c0_i32_116 = arith.constant 0 : i32
    %567 = arith.cmpi eq, %c2_i32_115, %c0_i32_116 : i32
    %c1_i32_117 = arith.constant 1 : i32
    %568 = arith.select %567, %c1_i32_117, %c2_i32_115 : i32
    %569 = vector.broadcast %568 : i32 to vector<16x16xi32>
    %570 = arith.remsi %550, %569 : vector<16x16xi32>
    %c0_i32_118 = arith.constant 0 : i32
    %571 = vector.broadcast %c0_i32_118 : i32 to vector<16x16xi32>
    %572 = arith.cmpi ne, %570, %571 : vector<16x16xi32>
    %c0_i32_119 = arith.constant 0 : i32
    %573 = vector.broadcast %c0_i32_119 : i32 to vector<16x16xi32>
    %574 = arith.cmpi slt, %570, %573 : vector<16x16xi32>
    %c0_i32_120 = arith.constant 0 : i32
    %575 = arith.cmpi slt, %568, %c0_i32_120 : i32
    %576 = vector.broadcast %575 : i1 to vector<16x16xi1>
    %577 = vector.broadcast %576 : vector<16x16xi1> to vector<16x16xi1>
    %578 = arith.xori %574, %577 : vector<16x16xi1>
    %579 = arith.andi %578, %572 : vector<16x16xi1>
    %580 = vector.broadcast %568 : i32 to vector<16x16xi32>
    %581 = arith.addi %570, %580 : vector<16x16xi32>
    %582 = arith.select %579, %581, %570 : vector<16x16xi1>, vector<16x16xi32>
    %583 = arith.cmpi eq, %566, %582 : vector<16x16xi32>
    %cst_121 = arith.constant 0.000000e+00 : f32
    %cst_122 = arith.constant -1.000000e+30 : f32
    %584 = vector.broadcast %cst_121 : f32 to vector<16x16xf32>
    %585 = vector.broadcast %cst_122 : f32 to vector<16x16xf32>
    %586 = arith.select %583, %584, %585 : vector<16x16xi1>, vector<16x16xf32>
    %c0_123 = arith.constant 0 : index
    %c0_124 = arith.constant 0 : index
    %587 = vector.load %arg25[%c0_123, %c0_124] : memref<16x64xf32, #tpu.memory_space<vmem>>, vector<16x64xf32>
    %588 = arith.truncf %587 : vector<16x64xf32> to vector<16x64xbf16>
    %c0_125 = arith.constant 0 : index
    %c0_126 = arith.constant 0 : index
    %c0_127 = arith.constant 0 : index
    %589 = vector.load %arg10[%c0_125, %c0_126, %c0_127] : memref<2x64x192xbf16, #tpu.memory_space<vmem>>, vector<1x64x192xbf16>
    %590 = vector.shape_cast %589 : vector<1x64x192xbf16> to vector<64x192xbf16>
    %cst_128 = arith.constant dense<0.000000e+00> : vector<16x192xf32>
    %591 = tpu.matmul %588, %590, %cst_128 {dimension_numbers = #tpu.dot_dimension_numbers<[1], [0], [0], [1], [0, 0, 1, 1], [], []>} : vector<16x64xbf16>, vector<64x192xbf16>, vector<16x192xf32> -> vector<16x192xf32>
    %c0_129 = arith.constant 0 : index
    %c0_130 = arith.constant 0 : index
    %c0_131 = arith.constant 0 : index
    %592 = vector.load %arg11[%c0_129, %c0_130, %c0_131] : memref<2x1x192xf32, #tpu.memory_space<vmem>>, vector<1x1x192xf32>
    %593 = vector.shape_cast %592 : vector<1x1x192xf32> to vector<1x192xf32>
    %594 = vector.broadcast %593 : vector<1x192xf32> to vector<16x192xf32>
    %595 = arith.addf %591, %594 : vector<16x192xf32>
    %596 = arith.truncf %595 : vector<16x192xf32> to vector<16x192xbf16>
    %c0_132 = arith.constant 0 : index
    %c0_133 = arith.constant 0 : index
    %c0_134 = arith.constant 0 : index
    %597 = vector.load %arg12[%c0_132, %c0_133, %c0_134] : memref<2x64x64xbf16, #tpu.memory_space<vmem>>, vector<1x64x64xbf16>
    %598 = vector.shape_cast %597 : vector<1x64x64xbf16> to vector<64x64xbf16>
    %cst_135 = arith.constant 0.000000e+00 : f32
    %599 = vector.broadcast %cst_135 : f32 to vector<16x64xf32>
    %600 = vector.extract_strided_slice %596 {offsets = [0, 0], sizes = [16, 32], strides = [1, 1]} : vector<16x192xbf16> to vector<16x32xbf16>
    %601 = vector.extract_strided_slice %596 {offsets = [0, 64], sizes = [16, 32], strides = [1, 1]} : vector<16x192xbf16> to vector<16x32xbf16>
    %602 = vector.extract_strided_slice %596 {offsets = [0, 128], sizes = [16, 32], strides = [1, 1]} : vector<16x192xbf16> to vector<16x32xbf16>
    %cst_136 = arith.constant dense<0.000000e+00> : vector<16x16xf32>
    %603 = tpu.matmul %600, %601, %cst_136 {dimension_numbers = #tpu.dot_dimension_numbers<[1], [1], [0], [0], [0, 0, 1, 0], [], []>} : vector<16x32xbf16>, vector<16x32xbf16>, vector<16x16xf32> -> vector<16x16xf32>
    %cst_137 = arith.constant 0.176776692 : f32
    %604 = vector.broadcast %cst_137 : f32 to vector<16x16xf32>
    %605 = arith.mulf %603, %604 : vector<16x16xf32>
    %606 = arith.addf %605, %586 : vector<16x16xf32>
    %cst_138 = arith.constant dense<0xFF800000> : vector<16xf32>
    %607 = vector.multi_reduction <maximumf>, %606, %cst_138 [1] : vector<16x16xf32> to vector<16xf32>
    %608 = vector.shape_cast %607 : vector<16xf32> to vector<16x1xf32>
    %609 = vector.broadcast %608 : vector<16x1xf32> to vector<16x16xf32>
    %610 = arith.subf %606, %609 : vector<16x16xf32>
    %611 = math.exp %610 : vector<16x16xf32>
    %cst_139 = arith.constant dense<0.000000e+00> : vector<16xf32>
    %612 = vector.multi_reduction <add>, %611, %cst_139 [1] : vector<16x16xf32> to vector<16xf32>
    %613 = vector.shape_cast %612 : vector<16xf32> to vector<16x1xf32>
    %614 = tpu.reciprocal %613 : vector<16x1xf32> -> vector<16x1xf32>
    %615 = vector.broadcast %614 : vector<16x1xf32> to vector<16x16xf32>
    %616 = arith.mulf %611, %615 : vector<16x16xf32>
    %617 = arith.truncf %616 : vector<16x16xf32> to vector<16x16xbf16>
    %cst_140 = arith.constant dense<0.000000e+00> : vector<16x32xf32>
    %618 = tpu.matmul %617, %602, %cst_140 {dimension_numbers = #tpu.dot_dimension_numbers<[1], [0], [0], [1], [0, 0, 1, 1], [], []>} : vector<16x16xbf16>, vector<16x32xbf16>, vector<16x32xf32> -> vector<16x32xf32>
    %619 = arith.truncf %618 : vector<16x32xf32> to vector<16x32xbf16>
    %620 = vector.extract_strided_slice %598 {offsets = [0, 0], sizes = [32, 64], strides = [1, 1]} : vector<64x64xbf16> to vector<32x64xbf16>
    %cst_141 = arith.constant dense<0.000000e+00> : vector<16x64xf32>
    %621 = tpu.matmul %619, %620, %cst_141 {dimension_numbers = #tpu.dot_dimension_numbers<[1], [0], [0], [1], [0, 0, 1, 1], [], []>} : vector<16x32xbf16>, vector<32x64xbf16>, vector<16x64xf32> -> vector<16x64xf32>
    %622 = arith.addf %599, %621 : vector<16x64xf32>
    %623 = vector.extract_strided_slice %596 {offsets = [0, 32], sizes = [16, 32], strides = [1, 1]} : vector<16x192xbf16> to vector<16x32xbf16>
    %624 = vector.extract_strided_slice %596 {offsets = [0, 96], sizes = [16, 32], strides = [1, 1]} : vector<16x192xbf16> to vector<16x32xbf16>
    %625 = vector.extract_strided_slice %596 {offsets = [0, 160], sizes = [16, 32], strides = [1, 1]} : vector<16x192xbf16> to vector<16x32xbf16>
    %cst_142 = arith.constant dense<0.000000e+00> : vector<16x16xf32>
    %626 = tpu.matmul %623, %624, %cst_142 {dimension_numbers = #tpu.dot_dimension_numbers<[1], [1], [0], [0], [0, 0, 1, 0], [], []>} : vector<16x32xbf16>, vector<16x32xbf16>, vector<16x16xf32> -> vector<16x16xf32>
    %cst_143 = arith.constant 0.176776692 : f32
    %627 = vector.broadcast %cst_143 : f32 to vector<16x16xf32>
    %628 = arith.mulf %626, %627 : vector<16x16xf32>
    %629 = arith.addf %628, %586 : vector<16x16xf32>
    %cst_144 = arith.constant dense<0xFF800000> : vector<16xf32>
    %630 = vector.multi_reduction <maximumf>, %629, %cst_144 [1] : vector<16x16xf32> to vector<16xf32>
    %631 = vector.shape_cast %630 : vector<16xf32> to vector<16x1xf32>
    %632 = vector.broadcast %631 : vector<16x1xf32> to vector<16x16xf32>
    %633 = arith.subf %629, %632 : vector<16x16xf32>
    %634 = math.exp %633 : vector<16x16xf32>
    %cst_145 = arith.constant dense<0.000000e+00> : vector<16xf32>
    %635 = vector.multi_reduction <add>, %634, %cst_145 [1] : vector<16x16xf32> to vector<16xf32>
    %636 = vector.shape_cast %635 : vector<16xf32> to vector<16x1xf32>
    %637 = tpu.reciprocal %636 : vector<16x1xf32> -> vector<16x1xf32>
    %638 = vector.broadcast %637 : vector<16x1xf32> to vector<16x16xf32>
    %639 = arith.mulf %634, %638 : vector<16x16xf32>
    %640 = arith.truncf %639 : vector<16x16xf32> to vector<16x16xbf16>
    %cst_146 = arith.constant dense<0.000000e+00> : vector<16x32xf32>
    %641 = tpu.matmul %640, %625, %cst_146 {dimension_numbers = #tpu.dot_dimension_numbers<[1], [0], [0], [1], [0, 0, 1, 1], [], []>} : vector<16x16xbf16>, vector<16x32xbf16>, vector<16x32xf32> -> vector<16x32xf32>
    %642 = arith.truncf %641 : vector<16x32xf32> to vector<16x32xbf16>
    %643 = vector.extract_strided_slice %598 {offsets = [32, 0], sizes = [32, 64], strides = [1, 1]} : vector<64x64xbf16> to vector<32x64xbf16>
    %cst_147 = arith.constant dense<0.000000e+00> : vector<16x64xf32>
    %644 = tpu.matmul %642, %643, %cst_147 {dimension_numbers = #tpu.dot_dimension_numbers<[1], [0], [0], [1], [0, 0, 1, 1], [], []>} : vector<16x32xbf16>, vector<32x64xbf16>, vector<16x64xf32> -> vector<16x64xf32>
    %645 = arith.addf %622, %644 : vector<16x64xf32>
    %c0_148 = arith.constant 0 : index
    %c0_149 = arith.constant 0 : index
    %c0_150 = arith.constant 0 : index
    %646 = vector.load %arg13[%c0_148, %c0_149, %c0_150] : memref<2x1x64xf32, #tpu.memory_space<vmem>>, vector<1x1x64xf32>
    %647 = vector.shape_cast %646 : vector<1x1x64xf32> to vector<1x64xf32>
    %648 = vector.broadcast %647 : vector<1x64xf32> to vector<16x64xf32>
    %649 = arith.addf %645, %648 : vector<16x64xf32>
    %c0_151 = arith.constant 0 : index
    %c0_152 = arith.constant 0 : index
    %c0_153 = arith.constant 0 : index
    %650 = vector.load %arg14[%c0_151, %c0_152, %c0_153] : memref<2x1x64xf32, #tpu.memory_space<vmem>>, vector<1x1x64xf32>
    %651 = vector.shape_cast %650 : vector<1x1x64xf32> to vector<1x64xf32>
    %c0_154 = arith.constant 0 : index
    %c0_155 = arith.constant 0 : index
    %c0_156 = arith.constant 0 : index
    %652 = vector.load %arg15[%c0_154, %c0_155, %c0_156] : memref<2x1x64xf32, #tpu.memory_space<vmem>>, vector<1x1x64xf32>
    %653 = vector.shape_cast %652 : vector<1x1x64xf32> to vector<1x64xf32>
    %654 = arith.addf %587, %649 : vector<16x64xf32>
    %cst_157 = arith.constant dense<0.000000e+00> : vector<16xf32>
    %655 = vector.multi_reduction <add>, %654, %cst_157 [1] : vector<16x64xf32> to vector<16xf32>
    %656 = vector.shape_cast %655 : vector<16xf32> to vector<16x1xf32>
    %cst_158 = arith.constant 6.400000e+01 : f32
    %657 = vector.broadcast %cst_158 : f32 to vector<16x1xf32>
    %658 = arith.divf %656, %657 : vector<16x1xf32>
    %659 = vector.broadcast %658 : vector<16x1xf32> to vector<16x64xf32>
    %660 = arith.subf %654, %659 : vector<16x64xf32>
    %661 = arith.mulf %660, %660 : vector<16x64xf32>
    %cst_159 = arith.constant dense<0.000000e+00> : vector<16xf32>
    %662 = vector.multi_reduction <add>, %661, %cst_159 [1] : vector<16x64xf32> to vector<16xf32>
    %663 = vector.shape_cast %662 : vector<16xf32> to vector<16x1xf32>
    %cst_160 = arith.constant 6.400000e+01 : f32
    %664 = vector.broadcast %cst_160 : f32 to vector<16x1xf32>
    %665 = arith.divf %663, %664 : vector<16x1xf32>
    %cst_161 = arith.constant 9.99999974E-6 : f32
    %666 = vector.broadcast %cst_161 : f32 to vector<16x1xf32>
    %667 = arith.addf %665, %666 : vector<16x1xf32>
    %668 = math.rsqrt %667 : vector<16x1xf32>
    %669 = vector.broadcast %668 : vector<16x1xf32> to vector<16x64xf32>
    %670 = arith.mulf %660, %669 : vector<16x64xf32>
    %671 = vector.broadcast %651 : vector<1x64xf32> to vector<16x64xf32>
    %672 = arith.mulf %670, %671 : vector<16x64xf32>
    %673 = vector.broadcast %653 : vector<1x64xf32> to vector<16x64xf32>
    %674 = arith.addf %672, %673 : vector<16x64xf32>
    %675 = arith.truncf %674 : vector<16x64xf32> to vector<16x64xbf16>
    %c0_162 = arith.constant 0 : index
    %c0_163 = arith.constant 0 : index
    %c0_164 = arith.constant 0 : index
    %676 = vector.load %arg16[%c0_162, %c0_163, %c0_164] : memref<2x64x2048xbf16, #tpu.memory_space<vmem>>, vector<1x64x2048xbf16>
    %677 = vector.shape_cast %676 : vector<1x64x2048xbf16> to vector<64x2048xbf16>
    %cst_165 = arith.constant dense<0.000000e+00> : vector<16x2048xf32>
    %678 = tpu.matmul %675, %677, %cst_165 {dimension_numbers = #tpu.dot_dimension_numbers<[1], [0], [0], [1], [0, 0, 1, 1], [], []>} : vector<16x64xbf16>, vector<64x2048xbf16>, vector<16x2048xf32> -> vector<16x2048xf32>
    %c0_166 = arith.constant 0 : index
    %c0_167 = arith.constant 0 : index
    %c0_168 = arith.constant 0 : index
    %679 = vector.load %arg17[%c0_166, %c0_167, %c0_168] : memref<2x1x2048xf32, #tpu.memory_space<vmem>>, vector<1x1x2048xf32>
    %680 = vector.shape_cast %679 : vector<1x1x2048xf32> to vector<1x2048xf32>
    %681 = vector.broadcast %680 : vector<1x2048xf32> to vector<16x2048xf32>
    %682 = arith.addf %678, %681 : vector<16x2048xf32>
    %cst_169 = arith.constant 0.000000e+00 : f32
    %683 = vector.broadcast %cst_169 : f32 to vector<16x2048xf32>
    %684 = arith.maximumf %682, %683 : vector<16x2048xf32>
    %685 = arith.truncf %684 : vector<16x2048xf32> to vector<16x2048xbf16>
    %c0_170 = arith.constant 0 : index
    %c0_171 = arith.constant 0 : index
    %c0_172 = arith.constant 0 : index
    %686 = vector.load %arg18[%c0_170, %c0_171, %c0_172] : memref<2x2048x64xbf16, #tpu.memory_space<vmem>>, vector<1x2048x64xbf16>
    %687 = vector.shape_cast %686 : vector<1x2048x64xbf16> to vector<2048x64xbf16>
    %cst_173 = arith.constant dense<0.000000e+00> : vector<16x64xf32>
    %688 = tpu.matmul %685, %687, %cst_173 {dimension_numbers = #tpu.dot_dimension_numbers<[1], [0], [0], [1], [0, 0, 1, 1], [], []>} : vector<16x2048xbf16>, vector<2048x64xbf16>, vector<16x64xf32> -> vector<16x64xf32>
    %c0_174 = arith.constant 0 : index
    %c0_175 = arith.constant 0 : index
    %c0_176 = arith.constant 0 : index
    %689 = vector.load %arg19[%c0_174, %c0_175, %c0_176] : memref<2x1x64xf32, #tpu.memory_space<vmem>>, vector<1x1x64xf32>
    %690 = vector.shape_cast %689 : vector<1x1x64xf32> to vector<1x64xf32>
    %691 = vector.broadcast %690 : vector<1x64xf32> to vector<16x64xf32>
    %692 = arith.addf %688, %691 : vector<16x64xf32>
    %c0_177 = arith.constant 0 : index
    %c0_178 = arith.constant 0 : index
    %c0_179 = arith.constant 0 : index
    %693 = vector.load %arg20[%c0_177, %c0_178, %c0_179] : memref<2x1x64xf32, #tpu.memory_space<vmem>>, vector<1x1x64xf32>
    %694 = vector.shape_cast %693 : vector<1x1x64xf32> to vector<1x64xf32>
    %c0_180 = arith.constant 0 : index
    %c0_181 = arith.constant 0 : index
    %c0_182 = arith.constant 0 : index
    %695 = vector.load %arg21[%c0_180, %c0_181, %c0_182] : memref<2x1x64xf32, #tpu.memory_space<vmem>>, vector<1x1x64xf32>
    %696 = vector.shape_cast %695 : vector<1x1x64xf32> to vector<1x64xf32>
    %697 = arith.addf %674, %692 : vector<16x64xf32>
    %cst_183 = arith.constant dense<0.000000e+00> : vector<16xf32>
    %698 = vector.multi_reduction <add>, %697, %cst_183 [1] : vector<16x64xf32> to vector<16xf32>
    %699 = vector.shape_cast %698 : vector<16xf32> to vector<16x1xf32>
    %cst_184 = arith.constant 6.400000e+01 : f32
    %700 = vector.broadcast %cst_184 : f32 to vector<16x1xf32>
    %701 = arith.divf %699, %700 : vector<16x1xf32>
    %702 = vector.broadcast %701 : vector<16x1xf32> to vector<16x64xf32>
    %703 = arith.subf %697, %702 : vector<16x64xf32>
    %704 = arith.mulf %703, %703 : vector<16x64xf32>
    %cst_185 = arith.constant dense<0.000000e+00> : vector<16xf32>
    %705 = vector.multi_reduction <add>, %704, %cst_185 [1] : vector<16x64xf32> to vector<16xf32>
    %706 = vector.shape_cast %705 : vector<16xf32> to vector<16x1xf32>
    %cst_186 = arith.constant 6.400000e+01 : f32
    %707 = vector.broadcast %cst_186 : f32 to vector<16x1xf32>
    %708 = arith.divf %706, %707 : vector<16x1xf32>
    %cst_187 = arith.constant 9.99999974E-6 : f32
    %709 = vector.broadcast %cst_187 : f32 to vector<16x1xf32>
    %710 = arith.addf %708, %709 : vector<16x1xf32>
    %711 = math.rsqrt %710 : vector<16x1xf32>
    %712 = vector.broadcast %711 : vector<16x1xf32> to vector<16x64xf32>
    %713 = arith.mulf %703, %712 : vector<16x64xf32>
    %714 = vector.broadcast %694 : vector<1x64xf32> to vector<16x64xf32>
    %715 = arith.mulf %713, %714 : vector<16x64xf32>
    %716 = vector.broadcast %696 : vector<1x64xf32> to vector<16x64xf32>
    %717 = arith.addf %715, %716 : vector<16x64xf32>
    %718 = arith.truncf %717 : vector<16x64xf32> to vector<16x64xbf16>
    %c1_188 = arith.constant 1 : index
    %c0_189 = arith.constant 0 : index
    %c0_190 = arith.constant 0 : index
    %719 = vector.load %arg10[%c1_188, %c0_189, %c0_190] : memref<2x64x192xbf16, #tpu.memory_space<vmem>>, vector<1x64x192xbf16>
    %720 = vector.shape_cast %719 : vector<1x64x192xbf16> to vector<64x192xbf16>
    %cst_191 = arith.constant dense<0.000000e+00> : vector<16x192xf32>
    %721 = tpu.matmul %718, %720, %cst_191 {dimension_numbers = #tpu.dot_dimension_numbers<[1], [0], [0], [1], [0, 0, 1, 1], [], []>} : vector<16x64xbf16>, vector<64x192xbf16>, vector<16x192xf32> -> vector<16x192xf32>
    %c1_192 = arith.constant 1 : index
    %c0_193 = arith.constant 0 : index
    %c0_194 = arith.constant 0 : index
    %722 = vector.load %arg11[%c1_192, %c0_193, %c0_194] : memref<2x1x192xf32, #tpu.memory_space<vmem>>, vector<1x1x192xf32>
    %723 = vector.shape_cast %722 : vector<1x1x192xf32> to vector<1x192xf32>
    %724 = vector.broadcast %723 : vector<1x192xf32> to vector<16x192xf32>
    %725 = arith.addf %721, %724 : vector<16x192xf32>
    %726 = arith.truncf %725 : vector<16x192xf32> to vector<16x192xbf16>
    %c1_195 = arith.constant 1 : index
    %c0_196 = arith.constant 0 : index
    %c0_197 = arith.constant 0 : index
    %727 = vector.load %arg12[%c1_195, %c0_196, %c0_197] : memref<2x64x64xbf16, #tpu.memory_space<vmem>>, vector<1x64x64xbf16>
    %728 = vector.shape_cast %727 : vector<1x64x64xbf16> to vector<64x64xbf16>
    %cst_198 = arith.constant 0.000000e+00 : f32
    %729 = vector.broadcast %cst_198 : f32 to vector<16x64xf32>
    %730 = vector.extract_strided_slice %726 {offsets = [0, 0], sizes = [16, 32], strides = [1, 1]} : vector<16x192xbf16> to vector<16x32xbf16>
    %731 = vector.extract_strided_slice %726 {offsets = [0, 64], sizes = [16, 32], strides = [1, 1]} : vector<16x192xbf16> to vector<16x32xbf16>
    %732 = vector.extract_strided_slice %726 {offsets = [0, 128], sizes = [16, 32], strides = [1, 1]} : vector<16x192xbf16> to vector<16x32xbf16>
    %cst_199 = arith.constant dense<0.000000e+00> : vector<16x16xf32>
    %733 = tpu.matmul %730, %731, %cst_199 {dimension_numbers = #tpu.dot_dimension_numbers<[1], [1], [0], [0], [0, 0, 1, 0], [], []>} : vector<16x32xbf16>, vector<16x32xbf16>, vector<16x16xf32> -> vector<16x16xf32>
    %cst_200 = arith.constant 0.176776692 : f32
    %734 = vector.broadcast %cst_200 : f32 to vector<16x16xf32>
    %735 = arith.mulf %733, %734 : vector<16x16xf32>
    %736 = arith.addf %735, %586 : vector<16x16xf32>
    %cst_201 = arith.constant dense<0xFF800000> : vector<16xf32>
    %737 = vector.multi_reduction <maximumf>, %736, %cst_201 [1] : vector<16x16xf32> to vector<16xf32>
    %738 = vector.shape_cast %737 : vector<16xf32> to vector<16x1xf32>
    %739 = vector.broadcast %738 : vector<16x1xf32> to vector<16x16xf32>
    %740 = arith.subf %736, %739 : vector<16x16xf32>
    %741 = math.exp %740 : vector<16x16xf32>
    %cst_202 = arith.constant dense<0.000000e+00> : vector<16xf32>
    %742 = vector.multi_reduction <add>, %741, %cst_202 [1] : vector<16x16xf32> to vector<16xf32>
    %743 = vector.shape_cast %742 : vector<16xf32> to vector<16x1xf32>
    %744 = tpu.reciprocal %743 : vector<16x1xf32> -> vector<16x1xf32>
    %745 = vector.broadcast %744 : vector<16x1xf32> to vector<16x16xf32>
    %746 = arith.mulf %741, %745 : vector<16x16xf32>
    %747 = arith.truncf %746 : vector<16x16xf32> to vector<16x16xbf16>
    %cst_203 = arith.constant dense<0.000000e+00> : vector<16x32xf32>
    %748 = tpu.matmul %747, %732, %cst_203 {dimension_numbers = #tpu.dot_dimension_numbers<[1], [0], [0], [1], [0, 0, 1, 1], [], []>} : vector<16x16xbf16>, vector<16x32xbf16>, vector<16x32xf32> -> vector<16x32xf32>
    %749 = arith.truncf %748 : vector<16x32xf32> to vector<16x32xbf16>
    %750 = vector.extract_strided_slice %728 {offsets = [0, 0], sizes = [32, 64], strides = [1, 1]} : vector<64x64xbf16> to vector<32x64xbf16>
    %cst_204 = arith.constant dense<0.000000e+00> : vector<16x64xf32>
    %751 = tpu.matmul %749, %750, %cst_204 {dimension_numbers = #tpu.dot_dimension_numbers<[1], [0], [0], [1], [0, 0, 1, 1], [], []>} : vector<16x32xbf16>, vector<32x64xbf16>, vector<16x64xf32> -> vector<16x64xf32>
    %752 = arith.addf %729, %751 : vector<16x64xf32>
    %753 = vector.extract_strided_slice %726 {offsets = [0, 32], sizes = [16, 32], strides = [1, 1]} : vector<16x192xbf16> to vector<16x32xbf16>
    %754 = vector.extract_strided_slice %726 {offsets = [0, 96], sizes = [16, 32], strides = [1, 1]} : vector<16x192xbf16> to vector<16x32xbf16>
    %755 = vector.extract_strided_slice %726 {offsets = [0, 160], sizes = [16, 32], strides = [1, 1]} : vector<16x192xbf16> to vector<16x32xbf16>
    %cst_205 = arith.constant dense<0.000000e+00> : vector<16x16xf32>
    %756 = tpu.matmul %753, %754, %cst_205 {dimension_numbers = #tpu.dot_dimension_numbers<[1], [1], [0], [0], [0, 0, 1, 0], [], []>} : vector<16x32xbf16>, vector<16x32xbf16>, vector<16x16xf32> -> vector<16x16xf32>
    %cst_206 = arith.constant 0.176776692 : f32
    %757 = vector.broadcast %cst_206 : f32 to vector<16x16xf32>
    %758 = arith.mulf %756, %757 : vector<16x16xf32>
    %759 = arith.addf %758, %586 : vector<16x16xf32>
    %cst_207 = arith.constant dense<0xFF800000> : vector<16xf32>
    %760 = vector.multi_reduction <maximumf>, %759, %cst_207 [1] : vector<16x16xf32> to vector<16xf32>
    %761 = vector.shape_cast %760 : vector<16xf32> to vector<16x1xf32>
    %762 = vector.broadcast %761 : vector<16x1xf32> to vector<16x16xf32>
    %763 = arith.subf %759, %762 : vector<16x16xf32>
    %764 = math.exp %763 : vector<16x16xf32>
    %cst_208 = arith.constant dense<0.000000e+00> : vector<16xf32>
    %765 = vector.multi_reduction <add>, %764, %cst_208 [1] : vector<16x16xf32> to vector<16xf32>
    %766 = vector.shape_cast %765 : vector<16xf32> to vector<16x1xf32>
    %767 = tpu.reciprocal %766 : vector<16x1xf32> -> vector<16x1xf32>
    %768 = vector.broadcast %767 : vector<16x1xf32> to vector<16x16xf32>
    %769 = arith.mulf %764, %768 : vector<16x16xf32>
    %770 = arith.truncf %769 : vector<16x16xf32> to vector<16x16xbf16>
    %cst_209 = arith.constant dense<0.000000e+00> : vector<16x32xf32>
    %771 = tpu.matmul %770, %755, %cst_209 {dimension_numbers = #tpu.dot_dimension_numbers<[1], [0], [0], [1], [0, 0, 1, 1], [], []>} : vector<16x16xbf16>, vector<16x32xbf16>, vector<16x32xf32> -> vector<16x32xf32>
    %772 = arith.truncf %771 : vector<16x32xf32> to vector<16x32xbf16>
    %773 = vector.extract_strided_slice %728 {offsets = [32, 0], sizes = [32, 64], strides = [1, 1]} : vector<64x64xbf16> to vector<32x64xbf16>
    %cst_210 = arith.constant dense<0.000000e+00> : vector<16x64xf32>
    %774 = tpu.matmul %772, %773, %cst_210 {dimension_numbers = #tpu.dot_dimension_numbers<[1], [0], [0], [1], [0, 0, 1, 1], [], []>} : vector<16x32xbf16>, vector<32x64xbf16>, vector<16x64xf32> -> vector<16x64xf32>
    %775 = arith.addf %752, %774 : vector<16x64xf32>
    %c1_211 = arith.constant 1 : index
    %c0_212 = arith.constant 0 : index
    %c0_213 = arith.constant 0 : index
    %776 = vector.load %arg13[%c1_211, %c0_212, %c0_213] : memref<2x1x64xf32, #tpu.memory_space<vmem>>, vector<1x1x64xf32>
    %777 = vector.shape_cast %776 : vector<1x1x64xf32> to vector<1x64xf32>
    %778 = vector.broadcast %777 : vector<1x64xf32> to vector<16x64xf32>
    %779 = arith.addf %775, %778 : vector<16x64xf32>
    %c1_214 = arith.constant 1 : index
    %c0_215 = arith.constant 0 : index
    %c0_216 = arith.constant 0 : index
    %780 = vector.load %arg14[%c1_214, %c0_215, %c0_216] : memref<2x1x64xf32, #tpu.memory_space<vmem>>, vector<1x1x64xf32>
    %781 = vector.shape_cast %780 : vector<1x1x64xf32> to vector<1x64xf32>
    %c1_217 = arith.constant 1 : index
    %c0_218 = arith.constant 0 : index
    %c0_219 = arith.constant 0 : index
    %782 = vector.load %arg15[%c1_217, %c0_218, %c0_219] : memref<2x1x64xf32, #tpu.memory_space<vmem>>, vector<1x1x64xf32>
    %783 = vector.shape_cast %782 : vector<1x1x64xf32> to vector<1x64xf32>
    %784 = arith.addf %717, %779 : vector<16x64xf32>
    %cst_220 = arith.constant dense<0.000000e+00> : vector<16xf32>
    %785 = vector.multi_reduction <add>, %784, %cst_220 [1] : vector<16x64xf32> to vector<16xf32>
    %786 = vector.shape_cast %785 : vector<16xf32> to vector<16x1xf32>
    %cst_221 = arith.constant 6.400000e+01 : f32
    %787 = vector.broadcast %cst_221 : f32 to vector<16x1xf32>
    %788 = arith.divf %786, %787 : vector<16x1xf32>
    %789 = vector.broadcast %788 : vector<16x1xf32> to vector<16x64xf32>
    %790 = arith.subf %784, %789 : vector<16x64xf32>
    %791 = arith.mulf %790, %790 : vector<16x64xf32>
    %cst_222 = arith.constant dense<0.000000e+00> : vector<16xf32>
    %792 = vector.multi_reduction <add>, %791, %cst_222 [1] : vector<16x64xf32> to vector<16xf32>
    %793 = vector.shape_cast %792 : vector<16xf32> to vector<16x1xf32>
    %cst_223 = arith.constant 6.400000e+01 : f32
    %794 = vector.broadcast %cst_223 : f32 to vector<16x1xf32>
    %795 = arith.divf %793, %794 : vector<16x1xf32>
    %cst_224 = arith.constant 9.99999974E-6 : f32
    %796 = vector.broadcast %cst_224 : f32 to vector<16x1xf32>
    %797 = arith.addf %795, %796 : vector<16x1xf32>
    %798 = math.rsqrt %797 : vector<16x1xf32>
    %799 = vector.broadcast %798 : vector<16x1xf32> to vector<16x64xf32>
    %800 = arith.mulf %790, %799 : vector<16x64xf32>
    %801 = vector.broadcast %781 : vector<1x64xf32> to vector<16x64xf32>
    %802 = arith.mulf %800, %801 : vector<16x64xf32>
    %803 = vector.broadcast %783 : vector<1x64xf32> to vector<16x64xf32>
    %804 = arith.addf %802, %803 : vector<16x64xf32>
    %805 = arith.truncf %804 : vector<16x64xf32> to vector<16x64xbf16>
    %c1_225 = arith.constant 1 : index
    %c0_226 = arith.constant 0 : index
    %c0_227 = arith.constant 0 : index
    %806 = vector.load %arg16[%c1_225, %c0_226, %c0_227] : memref<2x64x2048xbf16, #tpu.memory_space<vmem>>, vector<1x64x2048xbf16>
    %807 = vector.shape_cast %806 : vector<1x64x2048xbf16> to vector<64x2048xbf16>
    %cst_228 = arith.constant dense<0.000000e+00> : vector<16x2048xf32>
    %808 = tpu.matmul %805, %807, %cst_228 {dimension_numbers = #tpu.dot_dimension_numbers<[1], [0], [0], [1], [0, 0, 1, 1], [], []>} : vector<16x64xbf16>, vector<64x2048xbf16>, vector<16x2048xf32> -> vector<16x2048xf32>
    %c1_229 = arith.constant 1 : index
    %c0_230 = arith.constant 0 : index
    %c0_231 = arith.constant 0 : index
    %809 = vector.load %arg17[%c1_229, %c0_230, %c0_231] : memref<2x1x2048xf32, #tpu.memory_space<vmem>>, vector<1x1x2048xf32>
    %810 = vector.shape_cast %809 : vector<1x1x2048xf32> to vector<1x2048xf32>
    %811 = vector.broadcast %810 : vector<1x2048xf32> to vector<16x2048xf32>
    %812 = arith.addf %808, %811 : vector<16x2048xf32>
    %cst_232 = arith.constant 0.000000e+00 : f32
    %813 = vector.broadcast %cst_232 : f32 to vector<16x2048xf32>
    %814 = arith.maximumf %812, %813 : vector<16x2048xf32>
    %815 = arith.truncf %814 : vector<16x2048xf32> to vector<16x2048xbf16>
    %c1_233 = arith.constant 1 : index
    %c0_234 = arith.constant 0 : index
    %c0_235 = arith.constant 0 : index
    %816 = vector.load %arg18[%c1_233, %c0_234, %c0_235] : memref<2x2048x64xbf16, #tpu.memory_space<vmem>>, vector<1x2048x64xbf16>
    %817 = vector.shape_cast %816 : vector<1x2048x64xbf16> to vector<2048x64xbf16>
    %cst_236 = arith.constant dense<0.000000e+00> : vector<16x64xf32>
    %818 = tpu.matmul %815, %817, %cst_236 {dimension_numbers = #tpu.dot_dimension_numbers<[1], [0], [0], [1], [0, 0, 1, 1], [], []>} : vector<16x2048xbf16>, vector<2048x64xbf16>, vector<16x64xf32> -> vector<16x64xf32>
    %c1_237 = arith.constant 1 : index
    %c0_238 = arith.constant 0 : index
    %c0_239 = arith.constant 0 : index
    %819 = vector.load %arg19[%c1_237, %c0_238, %c0_239] : memref<2x1x64xf32, #tpu.memory_space<vmem>>, vector<1x1x64xf32>
    %820 = vector.shape_cast %819 : vector<1x1x64xf32> to vector<1x64xf32>
    %821 = vector.broadcast %820 : vector<1x64xf32> to vector<16x64xf32>
    %822 = arith.addf %818, %821 : vector<16x64xf32>
    %c1_240 = arith.constant 1 : index
    %c0_241 = arith.constant 0 : index
    %c0_242 = arith.constant 0 : index
    %823 = vector.load %arg20[%c1_240, %c0_241, %c0_242] : memref<2x1x64xf32, #tpu.memory_space<vmem>>, vector<1x1x64xf32>
    %824 = vector.shape_cast %823 : vector<1x1x64xf32> to vector<1x64xf32>
    %c1_243 = arith.constant 1 : index
    %c0_244 = arith.constant 0 : index
    %c0_245 = arith.constant 0 : index
    %825 = vector.load %arg21[%c1_243, %c0_244, %c0_245] : memref<2x1x64xf32, #tpu.memory_space<vmem>>, vector<1x1x64xf32>
    %826 = vector.shape_cast %825 : vector<1x1x64xf32> to vector<1x64xf32>
    %827 = arith.addf %804, %822 : vector<16x64xf32>
    %cst_246 = arith.constant dense<0.000000e+00> : vector<16xf32>
    %828 = vector.multi_reduction <add>, %827, %cst_246 [1] : vector<16x64xf32> to vector<16xf32>
    %829 = vector.shape_cast %828 : vector<16xf32> to vector<16x1xf32>
    %cst_247 = arith.constant 6.400000e+01 : f32
    %830 = vector.broadcast %cst_247 : f32 to vector<16x1xf32>
    %831 = arith.divf %829, %830 : vector<16x1xf32>
    %832 = vector.broadcast %831 : vector<16x1xf32> to vector<16x64xf32>
    %833 = arith.subf %827, %832 : vector<16x64xf32>
    %834 = arith.mulf %833, %833 : vector<16x64xf32>
    %cst_248 = arith.constant dense<0.000000e+00> : vector<16xf32>
    %835 = vector.multi_reduction <add>, %834, %cst_248 [1] : vector<16x64xf32> to vector<16xf32>
    %836 = vector.shape_cast %835 : vector<16xf32> to vector<16x1xf32>
    %cst_249 = arith.constant 6.400000e+01 : f32
    %837 = vector.broadcast %cst_249 : f32 to vector<16x1xf32>
    %838 = arith.divf %836, %837 : vector<16x1xf32>
    %cst_250 = arith.constant 9.99999974E-6 : f32
    %839 = vector.broadcast %cst_250 : f32 to vector<16x1xf32>
    %840 = arith.addf %838, %839 : vector<16x1xf32>
    %841 = math.rsqrt %840 : vector<16x1xf32>
    %842 = vector.broadcast %841 : vector<16x1xf32> to vector<16x64xf32>
    %843 = arith.mulf %833, %842 : vector<16x64xf32>
    %844 = vector.broadcast %824 : vector<1x64xf32> to vector<16x64xf32>
    %845 = arith.mulf %843, %844 : vector<16x64xf32>
    %846 = vector.broadcast %826 : vector<1x64xf32> to vector<16x64xf32>
    %847 = arith.addf %845, %846 : vector<16x64xf32>
    %848 = vector.extract_strided_slice %847 {offsets = [14, 0], sizes = [2, 64], strides = [1, 1]} : vector<16x64xf32> to vector<2x64xf32>
    %849 = arith.truncf %848 : vector<2x64xf32> to vector<2x64xbf16>
    %c0_251 = arith.constant 0 : index
    %c0_252 = arith.constant 0 : index
    %850 = vector.load %arg22[%c0_251, %c0_252] : memref<64x1xbf16, #tpu.memory_space<vmem>>, vector<64x1xbf16>
    %cst_253 = arith.constant dense<0.000000e+00> : vector<2x1xf32>
    %851 = tpu.matmul %849, %850, %cst_253 {dimension_numbers = #tpu.dot_dimension_numbers<[1], [0], [0], [1], [0, 0, 1, 1], [], []>} : vector<2x64xbf16>, vector<64x1xbf16>, vector<2x1xf32> -> vector<2x1xf32>
    %c0_254 = arith.constant 0 : index
    %c0_255 = arith.constant 0 : index
    %852 = vector.load %arg23[%c0_254, %c0_255] : memref<1x1xf32, #tpu.memory_space<vmem>>, vector<1x1xf32>
    %853 = vector.broadcast %852 : vector<1x1xf32> to vector<2x1xf32>
    %854 = arith.addf %851, %853 : vector<2x1xf32>
    %c0_256 = arith.constant 0 : index
    %c0_257 = arith.constant 0 : index
    %855 = vector.load %arg24[%c0_256, %c0_257] : memref<2x1xf32, #tpu.memory_space<vmem>>, vector<2x1xf32>
    tpu.vector_store %arg24[%c0_256, %c0_257], %854 {strides = array<i32>} : memref<2x1xf32, #tpu.memory_space<vmem>>, vector<2x1xf32>,
    return
  }
}

</mosaic_0001>

<bundles_post_ra>
// kernel: transformer_rnn_forward.1
= control target key start
LH: loop header
LB: loop body
LE: loop exit
PB: predicated region body
PF: predicated region fallthrough
CT: control target
= control target key end

     0   :  { %v9488_v1 = vmov 0   ;;  %vm165_vm0 = vcmask 1042432   ;;  %vm161_vm1 = vcmask 48128   ;;  %v106_v16 = vlaneseq  ;;  %s11995_s2 = inlined_call_operand.vmem [shape: bf16[64,192], index: 2, kind: input, shape index: {}]   ;;  %s11996_s1 = inlined_call_operand.vmem [shape: bf16[6,192], index: 1, kind: input, shape index: {}]   ;;  %s11997_s0 = inlined_call_operand.vmem [shape: f32[16,6], index: 0, kind: input, shape index: {}]   ;;  %s11998_s3 = inlined_call_operand.vmem [shape: f32[1,192], index: 3, kind: input, shape index: {}]   ;;  %s11999_s4 = inlined_call_operand.vmem [shape: f32[1,192], index: 4, kind: input, shape index: {}]   ;;  %s12000_s5 = inlined_call_operand.vmem [shape: bf16[64,192], index: 5, kind: input, shape index: {}]   ;;  %s12001_s6 = inlined_call_operand.vmem [shape: bf16[64,192], index: 6, kind: input, shape index: {}]   ;;  %s12002_s8 = inlined_call_operand.vmem [shape: f32[1,192], index: 8, kind: input, shape index: {}]   ;;  %s12003_s7 = inlined_call_operand.vmem [shape: f32[1,192], index: 7, kind: input, shape index: {}]   ;;  %s12004_s9 = inlined_call_operand.vmem [shape: f32[8,64], index: 9, kind: input, shape index: {}]   ;;  %s12005_s10 = inlined_call_operand.vmem [shape: bf16[2,64,192], index: 10, kind: input, shape index: {}]   ;;  %s12006_s11 = inlined_call_operand.vmem [shape: f32[2,1,192], index: 11, kind: input, shape index: {}]   ;;  %s12007_s12 = inlined_call_operand.vmem [shape: bf16[2,64,64], index: 12, kind: input, shape index: {}]   ;;  %s12008_s13 = inlined_call_operand.vmem [shape: f32[2,1,64], index: 13, kind: input, shape index: {}]   ;;  %s12009_s16 = inlined_call_operand.vmem [shape: bf16[2,64,2048], index: 16, kind: input, shape index: {}]   ;;  %s12010_s18 = inlined_call_operand.vmem [shape: bf16[2,2048,64], index: 18, kind: input, shape index: {}]   ;;  %s12011_s14 = inlined_call_operand.vmem [shape: f32[2,1,64], index: 14, kind: input, shape index: {}]   ;;  %s12012_s15 = inlined_call_operand.vmem [shape: f32[2,1,64], index: 15, kind: input, shape index: {}]   ;;  %s12013_s17 = inlined_call_operand.vmem [shape: f32[2,1,2048], index: 17, kind: input, shape index: {}]   ;;  %s12014_s19 = inlined_call_operand.vmem [shape: f32[2,1,64], index: 19, kind: input, shape index: {}]   ;;  %s12015_s20 = inlined_call_operand.vmem [shape: f32[2,1,64], index: 20, kind: input, shape index: {}]   ;;  %s12016_s21 = inlined_call_operand.vmem [shape: f32[2,1,64], index: 21, kind: input, shape index: {}]   ;;  %s12017_s22 = inlined_call_operand.vmem [shape: bf16[64,1], index: 22, kind: input, shape index: {}]   ;;  %s12018_s23 = inlined_call_operand.<no memory space> [shape: f32[1,1], index: 23, kind: input, shape index: {}]   ;;  %s12019_s24 = inlined_call_operand.vmem [shape: f32[2,1], index: 24, kind: output, shape index: {}]  }
   0x1   :  { %12024 = sst [smem:[#allocation4_spill]] %s11995_s2  ;;  %204 = vmatprep.mubr.bf16.mxu0 %v9488_v1  ;;  %291 = vmatprep.mubr.bf16.mxu1 %v9488_v1  ;;  %vm255_vm2 = vcmask 523264   ;;  %vm519_vm3 = vcmask 517120   ;;  %vm9491_vm4 = vmmov 0   ;;  %vm2067_vm5 = vcmask 261120  }
   0x2   :  { %12025 = sst [smem:[#allocation5_spill]] %s11996_s1  ;;  %s12033_s27 = sld [smem:[#allocation4_spill]]  ;;  %v9683_v17 = vshrl.u32 %v106_v16, 7  ;;  %vm2119_vm8 = vcmask 130048   ;;  %vm7627_vm9 = vcmask 1024  }
   0x3   :  { %12026 = sst [smem:[#allocation6_spill]] %s11997_s0  ;;  %s12034_s25 = sld [smem:[#allocation5_spill]] }
   0x4   :  { %12027 = sst [smem:[#allocation7_spill]] %s11998_s3  ;;  %s12035_s26 = sld [smem:[#allocation6_spill]]  ;;  %v9686_v18 = vsub.s32 0, %v9683_v17  ;;  %v9692_v20 = vsub.s32 1, %v9683_v17 }
   0x5   :  { %12028 = sst [smem:[#allocation8_spill]] %s11999_s4  ;;  %s12036_s4 = sld [smem:[#allocation7_spill]] }
   0x6   :  { %12029 = sst [smem:[#allocation9_spill]] %s12000_s5  ;;  %s9493_s1 = smov 32  }
   0x7   :  { %12030 = sst [smem:[#allocation10_spill]] %s12001_s6  ;;  %s12038_s0 = sld [smem:[#allocation9_spill]] }
   0x8   :  { %12031 = sst [smem:[#allocation11_spill]] %s12002_s8  ;;  %v9623_v0 = vld [vmem:[%s12033_s27 + $0x4] ss:$8 sps:$4 sm:$0xff]   ;;  %v9630_v2 = vld [vmem:[%s12033_s27] ss:$8 sps:$4 sm:$0xff]   ;;  %s12039_s3 = sld [smem:[#allocation10_spill]] }
   0x9   :  { %12032 = sst [smem:[#allocation12_spill]] %s12003_s7  ;;  %259 = vmatprep.subr.bf16.mxu1 %v9623_v0  ;;  %v9636_v3 = vld [vmem:[%s12033_s27 + $0x14] ss:$8 sps:$4 sm:$0xff]   ;;  %v9642_v4 = vld [vmem:[%s12033_s27 + $0x10] ss:$8 sps:$4 sm:$0xff]   ;;  %s9489_s8 = smov 64  }
   0xa   :  { %260 = vmatpush1.bf16.msra.mxu1 %v9630_v2  ;;  %v143_v5 = vld [vmem:[%s12034_s25] sm:$0x77]  ;;  %v141_v10 = vld [vmem:[%s12035_s26 + $0x8] sm:$0xff]  ;;  %v9669_v14 = vld [vmem:[%s12033_s27 + $0x34] ss:$8 sps:$4 sm:$0xff]   ;;  %s12040_s28 = sld [smem:[#allocation11_spill]] }
   0xb   :  { %261 = vmatprep.subr.bf16.mxu1 %v9636_v3  ;;  %v9651_v6 = vld [vmem:[%s12033_s27 + $0x24] ss:$8 sps:$4 sm:$0xff]   ;;  %v7634_v7 = vcombine.high %v143_v5, %v143_v5  ;;  %v7633_v8 = vcombine.low %v143_v5, %v143_v5  ;;  %v9663_v13 = vld [vmem:[%s12033_s27 + $0x20] ss:$8 sps:$4 sm:$0xff]   ;;  %v9675_v15 = vld [vmem:[%s12033_s27 + $0x30] ss:$8 sps:$4 sm:$0xff]  }
   0xc   :  { %v140_v9 = vld [vmem:[%s12035_s26] sm:$0xff]  ;;  %s12037_s26 = sld [smem:[#allocation8_spill]]  ;;  %s12041_s2 = sld [smem:[#allocation12_spill]] }
   0xd   :  { %7635 = vmatprep.subr.msk.bf16.mxu0 %vm165_vm0, %v7634_v7  ;;  %v167_v11 = vsel %vm165_vm0, %v7633_v8, 0  ;;  %v142_v12 = vpack.c.bf16 %v141_v10, %v140_v9  ;;  %v144_v19 = vld [vmem:[%s12036_s4] sm:$0x3]  ;;  %v9720_v47 = vld [vmem:[%s12038_s0 + $0x4] ss:$8 sps:$4 sm:$0xff]   ;;  %s9494_s5 = smov 96  }
   0xe   :  { %262 = vmatpush1.bf16.msra.mxu1 %v9642_v4  ;;  %173 = vmatpush1.bf16.msra.mxu0 %v167_v11  ;;  %v149_v21 = vrot.slane %v144_v19, %v9686_v18  ;;  %v153_v23 = vrot.slane %v144_v19, %v9692_v20  ;;  %v9725_v48 = vld [vmem:[%s12038_s0] ss:$8 sps:$4 sm:$0xff]   ;;  %v9731_v49 = vld [vmem:[%s12039_s3 + $0x4] ss:$8 sps:$4 sm:$0xff]   ;;  %v9742_v51 = vld [vmem:[%s12038_s0 + $0x14] ss:$8 sps:$4 sm:$0xff]  }
   0xf   :  { %263 = vmatprep.subr.bf16.mxu1 %v9651_v6  ;;  %365 = vmatprep.subr.bf16.mxu0 %v9720_v47  ;;  %v9736_v50 = vld [vmem:[%s12039_s3] ss:$8 sps:$4 sm:$0xff]   ;;  %v9747_v52 = vld [vmem:[%s12038_s0 + $0x10] ss:$8 sps:$4 sm:$0xff]   ;;  %v9753_v53 = vld [vmem:[%s12039_s3 + $0x14] ss:$8 sps:$4 sm:$0xff]  }
  0x10   :  { %v9760_v55 = vld [vmem:[%s12039_s3 + $0x10] ss:$8 sps:$4 sm:$0xff]   ;;  %v9767_v56 = vld [vmem:[%s12038_s0 + $0x24] ss:$8 sps:$4 sm:$0xff]   ;;  %v9773_v57 = vld [vmem:[%s12038_s0 + $0x20] ss:$8 sps:$4 sm:$0xff]  }
  0x11   :  { %7636 = vmatmul.mubr.msk.bf16.vlgmr.msra.gmra.mrb[0].mxu0 %vm161_vm1, %v142_v12  ;;  %v9778_v58 = vld [vmem:[%s12039_s3 + $0x24] ss:$8 sps:$4 sm:$0xff]   ;;  %v9784_v59 = vld [vmem:[%s12038_s0 + $0x34] ss:$8 sps:$4 sm:$0xff]   ;;  %v9790_v60 = vld [vmem:[%s12039_s3 + $0x20] ss:$8 sps:$4 sm:$0xff]  }
  0x12   :  { %264 = vmatpush1.bf16.msra.mxu1 %v9663_v13  ;;  %397 = vmatprep.mubr.bf16.mxu0 %v9488_v1  ;;  %v104_v26 = vld [vmem:[%s12037_s26] sm:$0x3]  ;;  %v9796_v61 = vld [vmem:[%s12039_s3 + $0x34] ss:$8 sps:$4 sm:$0xff]   ;;  %v9802_v62 = vld [vmem:[%s12038_s0 + $0x30] ss:$8 sps:$4 sm:$0xff]  }
  0x13   :  { %265 = vmatprep.subr.bf16.mxu1 %v9669_v14  ;;  %v9704_v30 = vrot.slane %v104_v26, %v9686_v18  ;;  %v9711_v41 = vrot.slane %v104_v26, %v9692_v20  ;;  %366 = vmatpush1.bf16.msra.mxu0 %v9725_v48  ;;  %v9809_v63 = vld [vmem:[%s12039_s3 + $0x30] ss:$8 sps:$4 sm:$0xff]  }
  0x14   :  { %367 = vmatprep.subr.bf16.mxu0 %v9742_v51 }
  0x16   :  { %266 = vmatpush1.bf16.msra.mxu1 %v9675_v15 }
  0x17   :  { %446 = vmatprep.subr.bf16.mxu1 %v9731_v49  ;;  %368 = vmatpush1.bf16.msra.mxu0 %v9747_v52 }
  0x18   :  { %369 = vmatprep.subr.bf16.mxu0 %v9767_v56 }
  0x19   :  { %292 = vmatmul.mubr.bf16.vlgmr.msra.gmra.mrb[0].mxu1 %v9488_v1 }
  0x1a   :  { %478 = vmatprep.mubr.bf16.mxu1 %v9488_v1  ;;  %447 = vmatpush1.bf16.msra.mxu1 %v9736_v50 }
  0x1b   :  { %448 = vmatprep.subr.bf16.mxu1 %v9753_v53  ;;  %370 = vmatpush1.bf16.msra.mxu0 %v9773_v57 }
  0x1c   :  { %371 = vmatprep.subr.bf16.mxu0 %v9784_v59 }
  0x1e   :  { %449 = vmatpush1.bf16.msra.mxu1 %v9760_v55 }
  0x1f   :  { %450 = vmatprep.subr.bf16.mxu1 %v9778_v58  ;;  %372 = vmatpush1.bf16.msra.mxu0 %v9802_v62 }
  0x20   :  { %521 = vmatprep.subr.bf16.mxu0 %v9623_v0 }
  0x22   :  { %451 = vmatpush1.bf16.msra.mxu1 %v9790_v60 }
  0x23   :  { %452 = vmatprep.subr.bf16.mxu1 %v9796_v61 }
  0x26   :  { %453 = vmatpush1.bf16.msra.mxu1 %v9809_v63 }
  0x27   :  { %597 = vmatprep.subr.bf16.mxu1 %v9720_v47 }
  0x29   :  { %479 = vmatmul.mubr.bf16.vlgmr.msra.gmra.mrb[4].mxu1 %v9488_v1 }
  0x2a   :  { %598 = vmatpush1.bf16.msra.mxu1 %v9725_v48  ;;  %629 = vmatprep.mubr.bf16.mxu1 %v9488_v1 }
  0x2b   :  { %599 = vmatprep.subr.bf16.mxu1 %v9742_v51 }
  0x2e   :  { %600 = vmatpush1.bf16.msra.mxu1 %v9747_v52 }
  0x2f   :  { %601 = vmatprep.subr.bf16.mxu1 %v9767_v56 }
  0x32   :  { %602 = vmatpush1.bf16.msra.mxu1 %v9773_v57 }
  0x33   :  { %603 = vmatprep.subr.bf16.mxu1 %v9784_v59 }
  0x36   :  { %604 = vmatpush1.bf16.msra.mxu1 %v9802_v62 }
  0x37   :  { %719 = vmatprep.subr.bf16.mxu1 %v9623_v0 }
  0xe4   :  { %v206_v22 = vpop.f32.mrb[0].mxu0 }
  0xe5   :  { %v208_v24 = vpop.f32.mrb[1].mxu0  ;;  %v9706_v31 = vadd.f32 %v206_v22, %v149_v21 }
  0xe6   :  { %v210_v25 = vpop.f32.mrb[2].mxu0  ;;  %v9714_v44 = vadd.f32 %v208_v24, %v153_v23  ;;  %v128_v24 = vld [vmem:[%s12040_s28] sm:$0x3] }
  0xe7   :  { %v9699_v27 = vadd.f32 %v210_v25, %v149_v21  ;;  %v212_v28 = vpop.f32.mrb[3].mxu0  ;;  %v116_v25 = vld [vmem:[%s12041_s2] sm:$0x3]  ;;  %v9858_v26 = vrot.slane %v128_v24, %v9686_v18 }
  0xe8   :  { %v9701_v29 = vadd.f32 %v212_v28, %v153_v23  ;;  %v9861_v28 = vrot.slane %v116_v25, %v9686_v18 }
  0xec   :  { %v293_v32 = vpop.f32.mrb[0].mxu1 }
  0xed   :  { %v294_v33 = vadd.f32 %v293_v32, %v9704_v30  ;;  %v295_v34 = vpop.f32.mrb[1].mxu1 }
  0xee   :  { %v297_v35 = vpop.f32.mrb[2].mxu1  ;;  %v296_v42 = vadd.f32 %v295_v34, %v9711_v41 }
  0xef   :  { %v300_v36 = vadd.f32 %v294_v33, %v9706_v31  ;;  %v298_v37 = vpop.f32.mrb[3].mxu1 }
  0xf1   :  { %v7645_v38 = vmul.f32 -1.442695, %v300_v36 }
  0xf3   :  { %9322 = vpow2.f32 %v7645_v38 }
  0xfc   :  { %v480_v19 = vpop.f32.mrb[4].mxu1 }
  0xfd   :  { %v9323_v39 = vpop.eup %9322  ;;  %v482_v21 = vpop.f32.mrb[5].mxu1  ;;  %v481_v32 = vadd.f32 %v480_v19, %v9858_v26 }
  0xfe   :  { %v304_v40 = vadd.f32 1.0, %v9323_v39  ;;  %v484_v22 = vpop.f32.mrb[6].mxu1 }
  0xff   :  { %v485_v23 = vpop.f32.mrb[7].mxu1 }
 0x100   :  { %9324 = vrcp.f32 %v304_v40 }
 0x10a   :  { %v9325_v43 = vpop.eup %9324 }
 0x10b   :  { %v307_v45 = vmul.f32 %v9325_v43, %v296_v42  ;;  %v310_v5 = vsub.f32 1.0, %v9325_v43  ;;  %v316_v8 = vmul.f32 0.0, %v9325_v43 }
 0x10d   :  { %v308_v46 = vadd.f32 %v307_v45, %v9714_v44 }
 0x10f   :  { %9326 = vtanh.f32 %v308_v46 }
 0x119   :  { %v9327_v54 = vpop.eup %9326 }
 0x11a   :  { %312 = vrot.lane.b32.xlu0 %v9327_v54, %s9489_s8 }
 0x18c   :  { %v313_v7 = vpop.permute.xlu0 %312 }
 0x18d   :  { %v315_v9 = vmul.f32 %v313_v7, %v310_v5 }
 0x18f   :  { %v9826_v10 = vadd.f32 %v316_v8, %v315_v9 }
 0x191   :  { %v318_v11 = vpack.c.bf16 %v9826_v10, %v9826_v10 }
 0x193   :  { %320 = vrot.lane.b32.xlu0 %v318_v11, %s9489_s8  ;;  %v9868_v11 = vrot.slane %v128_v24, %v9692_v20  ;;  %v585_v24 = vrot.slane %v9826_v10, 6 }
 0x195   :  { %v483_v19 = vadd.f32 %v482_v21, %v9868_v11 }
 0x205   :  { %v321_v12 = vpop.permute.xlu0 %320 }
 0x206   :  { %7654 = vmatmul.mubr.msk.bf16.vlgmr.msra.gmra.mrb[4].mxu0 %vm255_vm2, %v321_v12 }
 0x207   :  { %522 = vmatpush1.bf16.msra.mxu0 %v9630_v2  ;;  %553 = vmatprep.mubr.bf16.mxu0 %v9488_v1 }
 0x208   :  { %523 = vmatprep.subr.bf16.mxu0 %v9636_v3 }
 0x20b   :  { %524 = vmatpush1.bf16.msra.mxu0 %v9642_v4 }
 0x20c   :  { %525 = vmatprep.subr.bf16.mxu0 %v9651_v6 }
 0x20f   :  { %526 = vmatpush1.bf16.msra.mxu0 %v9663_v13 }
 0x210   :  { %527 = vmatprep.subr.bf16.mxu0 %v9669_v14 }
 0x213   :  { %528 = vmatpush1.bf16.msra.mxu0 %v9675_v15 }
 0x214   :  { %645 = vmatprep.subr.bf16.mxu0 %v9731_v49 }
 0x216   :  { %7665 = vmatmul.mubr.msk.bf16.vlgmr.msra.gmra.mrb[8].mxu0 %vm255_vm2, %v321_v12  ;;  %v9871_v12 = vrot.slane %v116_v25, %v9692_v20 }
 0x217   :  { %646 = vmatpush1.bf16.msra.mxu0 %v9736_v50  ;;  %677 = vmatprep.mubr.bf16.mxu0 %v9488_v1 }
 0x218   :  { %647 = vmatprep.subr.bf16.mxu0 %v9753_v53 }
 0x21b   :  { %648 = vmatpush1.bf16.msra.mxu0 %v9760_v55 }
 0x21c   :  { %649 = vmatprep.subr.bf16.mxu0 %v9778_v58 }
 0x21f   :  { %650 = vmatpush1.bf16.msra.mxu0 %v9790_v60 }
 0x220   :  { %651 = vmatprep.subr.bf16.mxu0 %v9796_v61 }
 0x223   :  { %652 = vmatpush1.bf16.msra.mxu0 %v9809_v63 }
 0x224   :  { %795 = vmatprep.subr.bf16.mxu0 %v9720_v47 }
 0x2d9   :  { %v399_v33 = vpop.f32.mrb[4].mxu0 }
 0x2da   :  { %v400_v34 = vadd.f32 %v399_v33, %v9861_v28  ;;  %v401_v35 = vpop.f32.mrb[5].mxu0 }
 0x2db   :  { %v403_v36 = vpop.f32.mrb[6].mxu0  ;;  %v402_v23 = vadd.f32 %v401_v35, %v9871_v12 }
 0x2dc   :  { %v487_v37 = vadd.f32 %v481_v32, %v400_v34  ;;  %v404_v38 = vpop.f32.mrb[7].mxu0 }
 0x2de   :  { %v7663_v39 = vmul.f32 -1.442695, %v487_v37 }
 0x2e0   :  { %9328 = vpow2.f32 %v7663_v39 }
 0x2e9   :  { %v555_v40 = vpop.f32.mrb[8].mxu0 }
 0x2ea   :  { %v9329_v42 = vpop.eup %9328  ;;  %v556_v43 = vadd.f32 %v555_v40, %v9704_v30  ;;  %v557_v45 = vpop.f32.mrb[9].mxu0 }
 0x2eb   :  { %v491_v46 = vadd.f32 1.0, %v9329_v42  ;;  %v559_v54 = vpop.f32.mrb[10].mxu0  ;;  %v558_v37 = vadd.f32 %v557_v45, %v9711_v41 }
 0x2ec   :  { %v563_v5 = vrot.slane %v556_v43, 6  ;;  %v560_v7 = vpop.f32.mrb[11].mxu0 }
 0x2ed   :  { %9330 = vrcp.f32 %v491_v46  ;;  %v573_v25 = vrot.slane %v558_v37, 6 }
 0x2ee   :  { %v565_v8 = vadd.f32 %v563_v5, %v9706_v31 }
 0x2f0   :  { %v7666_v9 = vmul.f32 -1.442695, %v565_v8 }
 0x2f2   :  { %9332 = vpow2.f32 %v7666_v9 }
 0x2f7   :  { %v9331_v22 = vpop.eup %9330 }
 0x2f8   :  { %v494_v32 = vmul.f32 %v9331_v22, %v483_v19  ;;  %v497_v5 = vsub.f32 1.0, %v9331_v22  ;;  %v503_v9 = vmul.f32 0.0, %v9331_v22 }
 0x2fa   :  { %v495_v33 = vadd.f32 %v494_v32, %v402_v23 }
 0x2fc   :  { %v9333_v34 = vpop.eup %9332  ;;  %9334 = vtanh.f32 %v495_v33 }
 0x2fd   :  { %v569_v36 = vadd.f32 1.0, %v9333_v34 }
 0x2ff   :  { %9336 = vrcp.f32 %v569_v36 }
 0x306   :  { %v9335_v38 = vpop.eup %9334 }
 0x307   :  { %499 = vrot.lane.b32.xlu0 %v9335_v38, %s9489_s8 }
 0x309   :  { %v9337_v39 = vpop.eup %9336 }
 0x30a   :  { %v575_v40 = vmul.f32 %v9337_v39, %v573_v25  ;;  %v587_v21 = vmul.f32 %v9337_v39, %v585_v24  ;;  %v578_v43 = vsub.f32 1.0, %v9337_v39 }
 0x30c   :  { %v576_v42 = vadd.f32 %v575_v40, %v9714_v44 }
 0x30e   :  { %9338 = vtanh.f32 %v576_v42 }
 0x318   :  { %v9339_v35 = vpop.eup %9338 }
 0x319   :  { %580 = vrot.lane.b32.xlu1 %v9339_v35, %s9489_s8 }
 0x379   :  { %v500_v46 = vpop.permute.xlu0 %499 }
 0x37a   :  { %v502_v7 = vmul.f32 %v500_v46, %v497_v5 }
 0x37c   :  { %v9884_v19 = vadd.f32 %v503_v9, %v502_v7 }
 0x37e   :  { %v638_v32 = vpack.c.bf16 %v9884_v19, %v9884_v19 }
 0x38b   :  { %v581_v54 = vpop.permute.xlu1 %580 }
 0x38c   :  { %v583_v45 = vmul.f32 %v581_v54, %v578_v43 }
 0x38e   :  { %v9880_v8 = vadd.f32 %v587_v21, %v583_v45 }
 0x390   :  { %v589_v10 = vpack.c.bf16 %v9880_v8, %v9880_v8 }
 0x392   :  { %v591_v23 = vrot.slane %v589_v10, 1 }
 0x394   :  { %592 = vrot.lane.b32.xlu1 %v591_v23, %s9489_s8 }
 0x398   :  { %640 = vrot.lane.b32.xlu1 %v638_v32, %s9489_s8 }
 0x406   :  { %v593_v33 = vpop.permute.xlu1 %592 }
 0x407   :  { %7667 = vmatmul.mubr.msk.bf16.vlgmr.msra.gmra.mrb[8].mxu1 %vm255_vm2, %v593_v33 }
 0x408   :  { %720 = vmatpush1.bf16.msra.mxu1 %v9630_v2  ;;  %751 = vmatprep.mubr.bf16.mxu1 %v9488_v1 }
 0x409   :  { %721 = vmatprep.subr.bf16.mxu1 %v9636_v3 }
 0x40a   :  { %v641_v22 = vpop.permute.xlu1 %640 }
 0x40b   :  { %7668 = vmatmul.mubr.msk.bf16.vlgmr.msra.gmra.mrb[12].mxu0 %vm255_vm2, %v641_v22 }
 0x40c   :  { %722 = vmatpush1.bf16.msra.mxu1 %v9642_v4  ;;  %796 = vmatpush1.bf16.msra.mxu0 %v9725_v48 }
 0x40d   :  { %723 = vmatprep.subr.bf16.mxu1 %v9651_v6  ;;  %797 = vmatprep.subr.bf16.mxu0 %v9742_v51 }
 0x40e   :  { %827 = vmatprep.mubr.bf16.mxu0 %v9488_v1 }
 0x410   :  { %724 = vmatpush1.bf16.msra.mxu1 %v9663_v13  ;;  %798 = vmatpush1.bf16.msra.mxu0 %v9747_v52 }
 0x411   :  { %725 = vmatprep.subr.bf16.mxu1 %v9669_v14  ;;  %799 = vmatprep.subr.bf16.mxu0 %v9767_v56 }
 0x414   :  { %726 = vmatpush1.bf16.msra.mxu1 %v9675_v15  ;;  %800 = vmatpush1.bf16.msra.mxu0 %v9773_v57 }
 0x415   :  { %843 = vmatprep.subr.bf16.mxu1 %v9731_v49  ;;  %801 = vmatprep.subr.bf16.mxu0 %v9784_v59 }
 0x417   :  { %7671 = vmatmul.mubr.msk.bf16.vlgmr.msra.gmra.mrb[12].mxu1 %vm255_vm2, %v593_v33 }
 0x418   :  { %844 = vmatpush1.bf16.msra.mxu1 %v9736_v50  ;;  %802 = vmatpush1.bf16.msra.mxu0 %v9802_v62 }
 0x419   :  { %845 = vmatprep.subr.bf16.mxu1 %v9753_v53  ;;  %917 = vmatprep.subr.bf16.mxu0 %v9623_v0 }
 0x41a   :  { %875 = vmatprep.mubr.bf16.mxu1 %v9488_v1 }
 0x41c   :  { %846 = vmatpush1.bf16.msra.mxu1 %v9760_v55 }
 0x41d   :  { %847 = vmatprep.subr.bf16.mxu1 %v9778_v58 }
 0x420   :  { %848 = vmatpush1.bf16.msra.mxu1 %v9790_v60 }
 0x421   :  { %849 = vmatprep.subr.bf16.mxu1 %v9796_v61 }
 0x424   :  { %850 = vmatpush1.bf16.msra.mxu1 %v9809_v63 }
 0x425   :  { %993 = vmatprep.subr.bf16.mxu1 %v9720_v47 }
 0x4da   :  { %v631_v34 = vpop.f32.mrb[8].mxu1 }
 0x4db   :  { %v633_v36 = vpop.f32.mrb[9].mxu1  ;;  %v632_v25 = vadd.f32 %v631_v34, %v9861_v28 }
 0x4dc   :  { %v635_v37 = vpop.f32.mrb[10].mxu1 }
 0x4dd   :  { %v636_v38 = vpop.f32.mrb[11].mxu1 }
 0x4de   :  { %v679_v24 = vpop.f32.mrb[12].mxu0  ;;  %v634_v38 = vadd.f32 %v633_v36, %v9871_v12 }
 0x4df   :  { %v680_v39 = vadd.f32 %v679_v24, %v9858_v26  ;;  %v681_v40 = vpop.f32.mrb[13].mxu0 }
 0x4e0   :  { %v683_v21 = vpop.f32.mrb[14].mxu0  ;;  %v682_v22 = vadd.f32 %v681_v40, %v9868_v11 }
 0x4e1   :  { %v686_v42 = vadd.f32 %v680_v39, %v632_v25  ;;  %v684_v35 = vpop.f32.mrb[15].mxu0 }
 0x4e3   :  { %v7669_v43 = vmul.f32 -1.442695, %v686_v42  ;;  %v783_v42 = vrot.slane %v9880_v8, 6 }
 0x4e5   :  { %9340 = vpow2.f32 %v7669_v43 }
 0x4ea   :  { %v753_v46 = vpop.f32.mrb[12].mxu1 }
 0x4eb   :  { %v754_v54 = vadd.f32 %v753_v46, %v9704_v30  ;;  %v755_v5 = vpop.f32.mrb[13].mxu1 }
 0x4ec   :  { %v757_v45 = vpop.f32.mrb[14].mxu1  ;;  %v756_v21 = vadd.f32 %v755_v5, %v9711_v41 }
 0x4ed   :  { %v761_v7 = vrot.slane %v754_v54, 4  ;;  %v758_v9 = vpop.f32.mrb[15].mxu1 }
 0x4ee   :  { %v771_v35 = vrot.slane %v756_v21, 4 }
 0x4ef   :  { %v9341_v10 = vpop.eup %9340  ;;  %v763_v23 = vadd.f32 %v761_v7, %v9706_v31 }
 0x4f0   :  { %v690_v32 = vadd.f32 1.0, %v9341_v10 }
 0x4f1   :  { %v7672_v33 = vmul.f32 -1.442695, %v763_v23 }
 0x4f2   :  { %9342 = vrcp.f32 %v690_v32 }
 0x4f3   :  { %9344 = vpow2.f32 %v7672_v33 }
 0x4fc   :  { %v9343_v34 = vpop.eup %9342 }
 0x4fd   :  { %v9345_v37 = vpop.eup %9344  ;;  %v693_v24 = vmul.f32 %v9343_v34, %v682_v22  ;;  %v696_v8 = vsub.f32 1.0, %v9343_v34  ;;  %v702_v32 = vmul.f32 %v9343_v34, %v9884_v19 }
 0x4fe   :  { %v767_v25 = vadd.f32 1.0, %v9345_v37 }
 0x4ff   :  { %v694_v39 = vadd.f32 %v693_v24, %v634_v38 }
 0x500   :  { %9346 = vrcp.f32 %v767_v25 }
 0x50a   :  { %v9347_v43 = vpop.eup %9346 }
 0x50b   :  { %v773_v46 = vmul.f32 %v9347_v43, %v771_v35  ;;  %v785_v54 = vmul.f32 %v9347_v43, %v783_v42  ;;  %v776_v7 = vsub.f32 1.0, %v9347_v43 }
 0x50d   :  { %v774_v45 = vadd.f32 %v773_v46, %v9714_v44 }
 0x50f   :  { %9348 = vtanh.f32 %v774_v45 }
 0x510   :  { %9350 = vtanh.f32 %v694_v39 }
 0x519   :  { %v9349_v40 = vpop.eup %9348 }
 0x51a   :  { %778 = vrot.lane.b32.xlu0 %v9349_v40, %s9489_s8  ;;  %v9351_v36 = vpop.eup %9350 }
 0x51e   :  { %698 = vrot.lane.b32.xlu0 %v9351_v36, %s9489_s8 }
 0x58c   :  { %v779_v9 = vpop.permute.xlu0 %778 }
 0x58d   :  { %v781_v10 = vmul.f32 %v779_v9, %v776_v7 }
 0x58f   :  { %v9931_v5 = vadd.f32 %v785_v54, %v781_v10 }
 0x590   :  { %v699_v23 = vpop.permute.xlu0 %698 }
 0x591   :  { %v701_v33 = vmul.f32 %v699_v23, %v696_v8  ;;  %v787_v22 = vpack.c.bf16 %v9931_v5, %v9931_v5 }
 0x593   :  { %v9936_v37 = vadd.f32 %v702_v32, %v701_v33  ;;  %v789_v38 = vrot.slane %v787_v22, 2 }
 0x595   :  { %790 = vrot.lane.b32.xlu1 %v789_v38, %s9489_s8  ;;  %v836_v24 = vpack.c.bf16 %v9936_v37, %v9936_v37 }
 0x599   :  { %838 = vrot.lane.b32.xlu1 %v836_v24, %s9489_s8 }
 0x607   :  { %v791_v25 = vpop.permute.xlu1 %790 }
 0x608   :  { %7673 = vmatmul.mubr.msk.bf16.vlgmr.msra.gmra.mrb[16].mxu0 %vm255_vm2, %v791_v25 }
 0x609   :  { %918 = vmatpush1.bf16.msra.mxu0 %v9630_v2  ;;  %949 = vmatprep.mubr.bf16.mxu0 %v9488_v1 }
 0x60a   :  { %919 = vmatprep.subr.bf16.mxu0 %v9636_v3 }
 0x60b   :  { %v839_v34 = vpop.permute.xlu1 %838 }
 0x60c   :  { %7674 = vmatmul.mubr.msk.bf16.vlgmr.msra.gmra.mrb[16].mxu1 %vm255_vm2, %v839_v34 }
 0x60d   :  { %920 = vmatpush1.bf16.msra.mxu0 %v9642_v4  ;;  %994 = vmatpush1.bf16.msra.mxu1 %v9725_v48 }
 0x60e   :  { %921 = vmatprep.subr.bf16.mxu0 %v9651_v6  ;;  %995 = vmatprep.subr.bf16.mxu1 %v9742_v51 }
 0x60f   :  { %1025 = vmatprep.mubr.bf16.mxu1 %v9488_v1 }
 0x611   :  { %922 = vmatpush1.bf16.msra.mxu0 %v9663_v13  ;;  %996 = vmatpush1.bf16.msra.mxu1 %v9747_v52 }
 0x612   :  { %923 = vmatprep.subr.bf16.mxu0 %v9669_v14  ;;  %997 = vmatprep.subr.bf16.mxu1 %v9767_v56 }
 0x615   :  { %924 = vmatpush1.bf16.msra.mxu0 %v9675_v15  ;;  %998 = vmatpush1.bf16.msra.mxu1 %v9773_v57 }
 0x616   :  { %1041 = vmatprep.subr.bf16.mxu0 %v9731_v49  ;;  %999 = vmatprep.subr.bf16.mxu1 %v9784_v59 }
 0x618   :  { %7677 = vmatmul.mubr.msk.bf16.vlgmr.msra.gmra.mrb[20].mxu0 %vm255_vm2, %v791_v25 }
 0x619   :  { %1042 = vmatpush1.bf16.msra.mxu0 %v9736_v50  ;;  %1000 = vmatpush1.bf16.msra.mxu1 %v9802_v62 }
 0x61a   :  { %1043 = vmatprep.subr.bf16.mxu0 %v9753_v53  ;;  %1115 = vmatprep.subr.bf16.mxu1 %v9623_v0 }
 0x61b   :  { %1073 = vmatprep.mubr.bf16.mxu0 %v9488_v1 }
 0x61d   :  { %1044 = vmatpush1.bf16.msra.mxu0 %v9760_v55 }
 0x61e   :  { %1045 = vmatprep.subr.bf16.mxu0 %v9778_v58 }
 0x621   :  { %1046 = vmatpush1.bf16.msra.mxu0 %v9790_v60 }
 0x622   :  { %1047 = vmatprep.subr.bf16.mxu0 %v9796_v61 }
 0x625   :  { %1048 = vmatpush1.bf16.msra.mxu0 %v9809_v63 }
 0x626   :  { %1184 = vmatprep.subr.bf16.mxu0 %v9720_v47 }
 0x6db   :  { %v829_v39 = vpop.f32.mrb[16].mxu0 }
 0x6dc   :  { %v831_v21 = vpop.f32.mrb[17].mxu0  ;;  %v830_v46 = vadd.f32 %v829_v39, %v9861_v28 }
 0x6dd   :  { %v833_v42 = vpop.f32.mrb[18].mxu0 }
 0x6de   :  { %v834_v35 = vpop.f32.mrb[19].mxu0 }
 0x6df   :  { %v877_v43 = vpop.f32.mrb[16].mxu1 }
 0x6e0   :  { %v878_v54 = vadd.f32 %v877_v43, %v9858_v26  ;;  %v879_v45 = vpop.f32.mrb[17].mxu1  ;;  %v832_v43 = vadd.f32 %v831_v21, %v9871_v12 }
 0x6e1   :  { %v881_v40 = vpop.f32.mrb[18].mxu1  ;;  %v880_v39 = vadd.f32 %v879_v45, %v9868_v11 }
 0x6e2   :  { %v884_v36 = vadd.f32 %v878_v54, %v830_v46  ;;  %v882_v7 = vpop.f32.mrb[19].mxu1 }
 0x6e3   :  { %v981_v7 = vrot.slane %v9931_v5, 6 }
 0x6e4   :  { %v7675_v9 = vmul.f32 -1.442695, %v884_v36 }
 0x6e6   :  { %9352 = vpow2.f32 %v7675_v9 }
 0x6eb   :  { %v951_v10 = vpop.f32.mrb[20].mxu0 }
 0x6ec   :  { %v952_v8 = vadd.f32 %v951_v10, %v9704_v30  ;;  %v953_v23 = vpop.f32.mrb[21].mxu0 }
 0x6ed   :  { %v955_v32 = vpop.f32.mrb[22].mxu0  ;;  %v954_v36 = vadd.f32 %v953_v23, %v9711_v41 }
 0x6ee   :  { %v959_v33 = vrot.slane %v952_v8, 2  ;;  %v956_v22 = vpop.f32.mrb[23].mxu0 }
 0x6ef   :  { %v969_v9 = vrot.slane %v954_v36, 2 }
 0x6f0   :  { %v9353_v38 = vpop.eup %9352  ;;  %v961_v24 = vadd.f32 %v959_v33, %v9706_v31 }
 0x6f1   :  { %v888_v25 = vadd.f32 1.0, %v9353_v38 }
 0x6f2   :  { %v7678_v34 = vmul.f32 -1.442695, %v961_v24 }
 0x6f3   :  { %9354 = vrcp.f32 %v888_v25 }
 0x6f4   :  { %9356 = vpow2.f32 %v7678_v34 }
 0x6fd   :  { %v9355_v42 = vpop.eup %9354 }
 0x6fe   :  { %v9357_v35 = vpop.eup %9356  ;;  %v891_v46 = vmul.f32 %v9355_v42, %v880_v39  ;;  %v894_v5 = vsub.f32 1.0, %v9355_v42  ;;  %v900_v25 = vmul.f32 %v9355_v42, %v9936_v37 }
 0x6ff   :  { %v965_v54 = vadd.f32 1.0, %v9357_v35 }
 0x700   :  { %v892_v40 = vadd.f32 %v891_v46, %v832_v43 }
 0x701   :  { %9358 = vrcp.f32 %v965_v54 }
 0x70b   :  { %v9359_v31 = vpop.eup %9358 }
 0x70c   :  { %v971_v10 = vmul.f32 %v9359_v31, %v969_v9  ;;  %v983_v8 = vmul.f32 %v9359_v31, %v981_v7  ;;  %v974_v33 = vsub.f32 1.0, %v9359_v31 }
 0x70e   :  { %v972_v32 = vadd.f32 %v971_v10, %v9714_v44 }
 0x710   :  { %9360 = vtanh.f32 %v972_v32 }
 0x711   :  { %9362 = vtanh.f32 %v892_v40 }
 0x71a   :  { %v9361_v45 = vpop.eup %9360 }
 0x71b   :  { %976 = vrot.lane.b32.xlu0 %v9361_v45, %s9489_s8  ;;  %v9363_v21 = vpop.eup %9362 }
 0x71f   :  { %896 = vrot.lane.b32.xlu0 %v9363_v21, %s9489_s8 }
 0x78d   :  { %v977_v22 = vpop.permute.xlu0 %976 }
 0x78e   :  { %v979_v38 = vmul.f32 %v977_v22, %v974_v33 }
 0x790   :  { %v9983_v23 = vadd.f32 %v983_v8, %v979_v38 }
 0x791   :  { %v897_v24 = vpop.permute.xlu0 %896 }
 0x792   :  { %v899_v34 = vmul.f32 %v897_v24, %v894_v5  ;;  %v985_v44 = vpack.c.bf16 %v9983_v23, %v9983_v23 }
 0x794   :  { %v9988_v39 = vadd.f32 %v900_v25, %v899_v34  ;;  %v987_v35 = vrot.slane %v985_v44, 3 }
 0x796   :  { %988 = vrot.lane.b32.xlu1 %v987_v35, %s9489_s8  ;;  %v1034_v43 = vpack.c.bf16 %v9988_v39, %v9988_v39 }
 0x79a   :  { %1036 = vrot.lane.b32.xlu1 %v1034_v43, %s9489_s8 }
 0x808   :  { %v989_v46 = vpop.permute.xlu1 %988 }
 0x809   :  { %7679 = vmatmul.mubr.msk.bf16.vlgmr.msra.gmra.mrb[20].mxu1 %vm255_vm2, %v989_v46 }
 0x80a   :  { %1116 = vmatpush1.bf16.msra.mxu1 %v9630_v2  ;;  %1147 = vmatprep.mubr.bf16.mxu1 %v9488_v1 }
 0x80b   :  { %1117 = vmatprep.subr.bf16.mxu1 %v9636_v3 }
 0x80c   :  { %v1037_v42 = vpop.permute.xlu1 %1036 }
 0x80d   :  { %7680 = vmatmul.mubr.msk.bf16.vlgmr.msra.gmra.mrb[24].mxu0 %vm255_vm2, %v1037_v42 }
 0x80e   :  { %1118 = vmatpush1.bf16.msra.mxu1 %v9642_v4  ;;  %1185 = vmatpush1.bf16.msra.mxu0 %v9725_v48 }
 0x80f   :  { %1119 = vmatprep.subr.bf16.mxu1 %v9651_v6  ;;  %1186 = vmatprep.subr.bf16.mxu0 %v9742_v51 }
 0x810   :  { %1216 = vmatprep.mubr.bf16.mxu0 %v9488_v1 }
 0x812   :  { %1120 = vmatpush1.bf16.msra.mxu1 %v9663_v13  ;;  %1187 = vmatpush1.bf16.msra.mxu0 %v9747_v52 }
 0x813   :  { %1121 = vmatprep.subr.bf16.mxu1 %v9669_v14  ;;  %1188 = vmatprep.subr.bf16.mxu0 %v9767_v56 }
 0x816   :  { %1122 = vmatpush1.bf16.msra.mxu1 %v9675_v15  ;;  %1189 = vmatpush1.bf16.msra.mxu0 %v9773_v57 }
 0x817   :  { %1232 = vmatprep.subr.bf16.mxu1 %v9731_v49  ;;  %1190 = vmatprep.subr.bf16.mxu0 %v9784_v59 }
 0x819   :  { %7683 = vmatmul.mubr.msk.bf16.vlgmr.msra.gmra.mrb[24].mxu1 %vm255_vm2, %v989_v46 }
 0x81a   :  { %1233 = vmatpush1.bf16.msra.mxu1 %v9736_v50  ;;  %1264 = vmatprep.mubr.bf16.mxu1 %v9488_v1 }
 0x81b   :  { %1234 = vmatprep.subr.bf16.mxu1 %v9753_v53  ;;  %1191 = vmatpush1.bf16.msra.mxu0 %v9802_v62 }
 0x81c   :  { %1306 = vmatprep.subr.bf16.mxu0 %v9623_v0 }
 0x81e   :  { %1235 = vmatpush1.bf16.msra.mxu1 %v9760_v55 }
 0x81f   :  { %1236 = vmatprep.subr.bf16.mxu1 %v9778_v58 }
 0x822   :  { %1237 = vmatpush1.bf16.msra.mxu1 %v9790_v60 }
 0x823   :  { %1238 = vmatprep.subr.bf16.mxu1 %v9796_v61 }
 0x826   :  { %1239 = vmatpush1.bf16.msra.mxu1 %v9809_v63 }
 0x827   :  { %1382 = vmatprep.subr.bf16.mxu1 %v9720_v47 }
 0x8dc   :  { %v1027_v2 = vpop.f32.mrb[20].mxu1 }
 0x8dd   :  { %v1029_v3 = vpop.f32.mrb[21].mxu1  ;;  %v1028_v40 = vadd.f32 %v1027_v2, %v9861_v28  ;;  %v1173_v2 = vrot.slane %v9983_v23, 6 }
 0x8de   :  { %v1031_v4 = vpop.f32.mrb[22].mxu1  ;;  %v1030_v43 = vadd.f32 %v1029_v3, %v9871_v12 }
 0x8df   :  { %v1032_v6 = vpop.f32.mrb[23].mxu1 }
 0x8e0   :  { %v1075_v54 = vpop.f32.mrb[24].mxu0 }
 0x8e1   :  { %v1076_v0 = vadd.f32 %v1075_v54, %v9858_v26  ;;  %v1077_v36 = vpop.f32.mrb[25].mxu0 }
 0x8e2   :  { %v1079_v7 = vpop.f32.mrb[26].mxu0  ;;  %v1078_v34 = vadd.f32 %v1077_v36, %v9868_v11 }
 0x8e3   :  { %v1082_v9 = vadd.f32 %v1076_v0, %v1028_v40  ;;  %v1080_v31 = vpop.f32.mrb[27].mxu0 }
 0x8e5   :  { %v7681_v10 = vmul.f32 -1.442695, %v1082_v9 }
 0x8e7   :  { %9364 = vpow2.f32 %v7681_v10 }
 0x8ec   :  { %v1149_v8 = vpop.f32.mrb[24].mxu1 }
 0x8ed   :  { %v1150_v32 = vadd.f32 %v1149_v8, %v9704_v30  ;;  %v1151_v45 = vpop.f32.mrb[25].mxu1 }
 0x8ee   :  { %v1153_v21 = vpop.f32.mrb[26].mxu1  ;;  %v1152_v4 = vadd.f32 %v1151_v45, %v9711_v41 }
 0x8ef   :  { %v1156_v33 = vadd.f32 %v1150_v32, %v9699_v27  ;;  %v1154_v22 = vpop.f32.mrb[27].mxu1 }
 0x8f1   :  { %v9365_v38 = vpop.eup %9364  ;;  %v7684_v5 = vmul.f32 -1.442695, %v1156_v33 }
 0x8f2   :  { %v1086_v24 = vadd.f32 1.0, %v9365_v38 }
 0x8f3   :  { %9366 = vpow2.f32 %v7684_v5 }
 0x8f4   :  { %9368 = vrcp.f32 %v1086_v24  ;;  %v10058_v24 = vld [vmem:[%s12033_s27] ss:$8 sps:$4 sm:$0xff]  }
 0x8fd   :  { %v9367_v25 = vpop.eup %9366 }
 0x8fe   :  { %v9369_v44 = vpop.eup %9368  ;;  %v1160_v35 = vadd.f32 1.0, %v9367_v25  ;;  %v10084_v25 = vld [vmem:[%s12033_s27 + $0x24] ss:$8 sps:$4 sm:$0xff]  }
 0x8ff   :  { %v1089_v46 = vmul.f32 %v9369_v44, %v1078_v34  ;;  %v1092_v3 = vsub.f32 1.0, %v9369_v44  ;;  %v1098_v31 = vmul.f32 %v9369_v44, %v9988_v39 }
 0x900   :  { %9370 = vrcp.f32 %v1160_v35 }
 0x901   :  { %v1090_v42 = vadd.f32 %v1089_v46, %v1030_v43 }
 0x903   :  { %9372 = vtanh.f32 %v1090_v42 }
 0x90a   :  { %v9371_v6 = vpop.eup %9370 }
 0x90b   :  { %v1163_v54 = vmul.f32 %v9371_v6, %v1152_v4  ;;  %v1175_v40 = vmul.f32 %v9371_v6, %v1173_v2  ;;  %v1166_v32 = vsub.f32 1.0, %v9371_v6 }
 0x90d   :  { %v9373_v0 = vpop.eup %9372  ;;  %v1164_v7 = vadd.f32 %v1163_v54, %v9701_v29 }
 0x90e   :  { %1094 = vrot.lane.b32.xlu1 %v9373_v0, %s9489_s8 }
 0x90f   :  { %9374 = vtanh.f32 %v1164_v7 }
 0x919   :  { %v9375_v36 = vpop.eup %9374 }
 0x91a   :  { %1168 = vrot.lane.b32.xlu0 %v9375_v36, %s9489_s8 }
 0x980   :  { %v1095_v9 = vpop.permute.xlu1 %1094 }
 0x981   :  { %v1097_v10 = vmul.f32 %v1095_v9, %v1092_v3 }
 0x983   :  { %v10036_v23 = vadd.f32 %v1098_v31, %v1097_v10 }
 0x985   :  { %v1225_v8 = vpack.c.bf16 %v10036_v23, %v10036_v23 }
 0x987   :  { %1227 = vrot.lane.b32.xlu1 %v1225_v8, %s9489_s8 }
 0x98c   :  { %v1169_v45 = vpop.permute.xlu0 %1168 }
 0x98d   :  { %v1171_v21 = vmul.f32 %v1169_v45, %v1166_v32 }
 0x98f   :  { %v10041_v33 = vadd.f32 %v1175_v40, %v1171_v21 }
 0x991   :  { %v1177_v22 = vpack.c.bf16 %v10041_v33, %v10041_v33  ;;  %v1370_v45 = vrot.slane %v10041_v33, 6 }
 0x993   :  { %1179 = vrot.lane.b32.xlu0 %v1177_v22, %s9489_s8 }
 0x9f9   :  { %v1228_v38 = vpop.permute.xlu1 %1227 }
 0x9fa   :  { %7686 = vmatmul.mubr.msk.bf16.vlgmr.msra.gmra.mrb[28].mxu1 %vm255_vm2, %v1228_v38 }
 0x9fb   :  { %1383 = vmatpush1.bf16.msra.mxu1 %v9725_v48  ;;  %1414 = vmatprep.mubr.bf16.mxu1 %v9488_v1  ;;  %v10065_v48 = vld [vmem:[%s12033_s27 + $0x14] ss:$8 sps:$4 sm:$0xff]  }
 0x9fc   :  { %1384 = vmatprep.subr.bf16.mxu1 %v9742_v51  ;;  %v10072_v51 = vld [vmem:[%s12033_s27 + $0x4] ss:$8 sps:$4 sm:$0xff]  }
 0x9ff   :  { %1385 = vmatpush1.bf16.msra.mxu1 %v9747_v52  ;;  %v10078_v52 = vld [vmem:[%s12033_s27 + $0x10] ss:$8 sps:$4 sm:$0xff]  }
 0xa00   :  { %1386 = vmatprep.subr.bf16.mxu1 %v9767_v56 }
 0xa03   :  { %1387 = vmatpush1.bf16.msra.mxu1 %v9773_v57 }
 0xa04   :  { %1388 = vmatprep.subr.bf16.mxu1 %v9784_v59 }
 0xa05   :  { %v1180_v5 = vpop.permute.xlu0 %1179 }
 0xa06   :  { %7685 = vmatmul.mubr.msk.bf16.vlgmr.msra.gmra.mrb[28].mxu0 %vm255_vm2, %v1180_v5 }
 0xa07   :  { %1307 = vmatpush1.bf16.msra.mxu0 %v10058_v24  ;;  %1338 = vmatprep.mubr.bf16.mxu0 %v9488_v1 }
 0xa08   :  { %1308 = vmatprep.subr.bf16.mxu0 %v10065_v48  ;;  %1389 = vmatpush1.bf16.msra.mxu1 %v9802_v62 }
 0xa09   :  { %1504 = vmatprep.subr.bf16.mxu1 %v10072_v51 }
 0xa0b   :  { %1309 = vmatpush1.bf16.msra.mxu0 %v10078_v52 }
 0xa0c   :  { %1310 = vmatprep.subr.bf16.mxu0 %v10084_v25 }
 0xa0f   :  { %1311 = vmatpush1.bf16.msra.mxu0 %v9663_v13 }
 0xa10   :  { %1312 = vmatprep.subr.bf16.mxu0 %v9669_v14 }
 0xa13   :  { %1313 = vmatpush1.bf16.msra.mxu0 %v9675_v15 }
 0xa14   :  { %1430 = vmatprep.subr.bf16.mxu0 %v9731_v49 }
 0xa16   :  { %7689 = vmatmul.mubr.msk.bf16.vlgmr.msra.gmra.mrb[32].mxu0 %vm255_vm2, %v1180_v5 }
 0xa17   :  { %1431 = vmatpush1.bf16.msra.mxu0 %v9736_v50  ;;  %1462 = vmatprep.mubr.bf16.mxu0 %v9488_v1 }
 0xa18   :  { %1432 = vmatprep.subr.bf16.mxu0 %v9753_v53 }
 0xa1b   :  { %1433 = vmatpush1.bf16.msra.mxu0 %v9760_v55 }
 0xa1c   :  { %1434 = vmatprep.subr.bf16.mxu0 %v9778_v58 }
 0xa1f   :  { %1435 = vmatpush1.bf16.msra.mxu0 %v9790_v60 }
 0xa20   :  { %1436 = vmatprep.subr.bf16.mxu0 %v9796_v61 }
 0xa23   :  { %1437 = vmatpush1.bf16.msra.mxu0 %v9809_v63 }
 0xa24   :  { %1580 = vmatprep.subr.bf16.mxu0 %v9720_v47 }
 0xacd   :  { %v1266_v13 = vpop.f32.mrb[28].mxu1 }
 0xace   :  { %v1268_v14 = vpop.f32.mrb[29].mxu1  ;;  %v1267_v34 = vadd.f32 %v1266_v13, %v9858_v26 }
 0xacf   :  { %v1270_v15 = vpop.f32.mrb[30].mxu1  ;;  %v1269_v0 = vadd.f32 %v1268_v14, %v9868_v11 }
 0xad0   :  { %v1271_v49 = vpop.f32.mrb[31].mxu1 }
 0xad9   :  { %v1218_v50 = vpop.f32.mrb[28].mxu0 }
 0xada   :  { %v1219_v53 = vadd.f32 %v1218_v50, %v9861_v28  ;;  %v1220_v55 = vpop.f32.mrb[29].mxu0 }
 0xadb   :  { %v1222_v44 = vpop.f32.mrb[30].mxu0  ;;  %v1221_v36 = vadd.f32 %v1220_v55, %v9871_v12 }
 0xadc   :  { %v1273_v58 = vadd.f32 %v1267_v34, %v1219_v53  ;;  %v1223_v35 = vpop.f32.mrb[31].mxu0 }
 0xade   :  { %v7687_v60 = vmul.f32 -1.442695, %v1273_v58 }
 0xae0   :  { %9376 = vpow2.f32 %v7687_v60 }
 0xae9   :  { %v1340_v61 = vpop.f32.mrb[32].mxu0 }
 0xaea   :  { %v9377_v43 = vpop.eup %9376  ;;  %v1341_v46 = vadd.f32 %v1340_v61, %v9704_v30  ;;  %v1342_v47 = vpop.f32.mrb[33].mxu0 }
 0xaeb   :  { %v1277_v42 = vadd.f32 1.0, %v9377_v43  ;;  %v1344_v2 = vpop.f32.mrb[34].mxu0  ;;  %v1343_v8 = vadd.f32 %v1342_v47, %v9711_v41  ;;  %v10134_v47 = vld [vmem:[%s12038_s0 + $0x14] ss:$8 sps:$4 sm:$0xff]  }
 0xaec   :  { %v1348_v4 = vrot.slane %v1341_v46, 6  ;;  %v1345_v6 = vpop.f32.mrb[35].mxu0  ;;  %v10127_v46 = vld [vmem:[%s12038_s0] ss:$8 sps:$4 sm:$0xff]  }
 0xaed   :  { %9378 = vrcp.f32 %v1277_v42  ;;  %v1358_v21 = vrot.slane %v1343_v8, 6  ;;  %v10140_v42 = vld [vmem:[%s12038_s0 + $0x10] ss:$8 sps:$4 sm:$0xff]  }
 0xaee   :  { %v1350_v54 = vadd.f32 %v1348_v4, %v9699_v27  ;;  %v10189_v4 = vld [vmem:[%s12039_s3 + $0x14] ss:$8 sps:$4 sm:$0xff]   ;;  %v10195_v6 = vld [vmem:[%s12039_s3 + $0x10] ss:$8 sps:$4 sm:$0xff]  }
 0xaf0   :  { %v7690_v40 = vmul.f32 -1.442695, %v1350_v54  ;;  %v10201_v54 = vld [vmem:[%s12039_s3 + $0x24] ss:$8 sps:$4 sm:$0xff]  }
 0xaf2   :  { %9380 = vpow2.f32 %v7690_v40  ;;  %v10207_v40 = vld [vmem:[%s12039_s3 + $0x20] ss:$8 sps:$4 sm:$0xff]  }
 0xaf7   :  { %v9379_v7 = vpop.eup %9378 }
 0xaf8   :  { %v1280_v3 = vmul.f32 %v9379_v7, %v1269_v0  ;;  %v1283_v15 = vsub.f32 1.0, %v9379_v7  ;;  %v1289_v50 = vmul.f32 %v9379_v7, %v10036_v23  ;;  %v10213_v0 = vld [vmem:[%s12039_s3 + $0x34] ss:$8 sps:$4 sm:$0xff]   ;;  %v9482_v7 = vld [vmem:[%s12038_s0 + $0x4] ss:$8 sps:$4 sm:$0xff]  }
 0xafa   :  { %v1281_v9 = vadd.f32 %v1280_v3, %v1221_v36 }
 0xafc   :  { %v9381_v31 = vpop.eup %9380  ;;  %9382 = vtanh.f32 %v1281_v9 }
 0xafd   :  { %v1354_v10 = vadd.f32 1.0, %v9381_v31 }
 0xaff   :  { %9384 = vrcp.f32 %v1354_v10 }
 0xb06   :  { %v9383_v32 = vpop.eup %9382 }
 0xb07   :  { %1285 = vrot.lane.b32.xlu1 %v9383_v32, %s9489_s8 }
 0xb09   :  { %v9385_v22 = vpop.eup %9384 }
 0xb0a   :  { %v1360_v38 = vmul.f32 %v9385_v22, %v1358_v21  ;;  %v1372_v5 = vmul.f32 %v9385_v22, %v1370_v45  ;;  %v1363_v55 = vsub.f32 1.0, %v9385_v22 }
 0xb0c   :  { %v1361_v13 = vadd.f32 %v1360_v38, %v9701_v29 }
 0xb0e   :  { %9386 = vtanh.f32 %v1361_v13 }
 0xb18   :  { %v9387_v14 = vpop.eup %9386 }
 0xb19   :  { %1365 = vrot.lane.b32.xlu0 %v9387_v14, %s9489_s8 }
 0xb79   :  { %v1286_v49 = vpop.permute.xlu1 %1285 }
 0xb7a   :  { %v1288_v34 = vmul.f32 %v1286_v49, %v1283_v15 }
 0xb7c   :  { %v10113_v53 = vadd.f32 %v1289_v50, %v1288_v34 }
 0xb7e   :  { %v1423_v33 = vpack.c.bf16 %v10113_v53, %v10113_v53 }
 0xb80   :  { %1425 = vrot.lane.b32.xlu1 %v1423_v33, %s9489_s8 }
 0xb8b   :  { %v1366_v44 = vpop.permute.xlu0 %1365 }
 0xb8c   :  { %v1368_v58 = vmul.f32 %v1366_v44, %v1363_v55 }
 0xb8e   :  { %v10118_v35 = vadd.f32 %v1372_v5, %v1368_v58 }
 0xb90   :  { %v1374_v60 = vpack.c.bf16 %v10118_v35, %v10118_v35 }
 0xb92   :  { %v1376_v61 = vrot.slane %v1374_v60, 1 }
 0xb94   :  { %1377 = vrot.lane.b32.xlu0 %v1376_v61, %s9489_s8 }
 0xbf2   :  { %v1426_v43 = vpop.permute.xlu1 %1425 }
 0xbf3   :  { %7692 = vmatmul.mubr.msk.bf16.vlgmr.msra.gmra.mrb[36].mxu0 %vm255_vm2, %v1426_v43 }
 0xbf4   :  { %1581 = vmatpush1.bf16.msra.mxu0 %v10127_v46  ;;  %1612 = vmatprep.mubr.bf16.mxu0 %v9488_v1 }
 0xbf5   :  { %1582 = vmatprep.subr.bf16.mxu0 %v10134_v47 }
 0xbf8   :  { %1583 = vmatpush1.bf16.msra.mxu0 %v10140_v42 }
 0xbf9   :  { %1584 = vmatprep.subr.bf16.mxu0 %v9767_v56  ;;  %v10157_v56 = vld [vmem:[%s12033_s27 + $0x20] ss:$8 sps:$4 sm:$0xff]  }
 0xbfc   :  { %1585 = vmatpush1.bf16.msra.mxu0 %v9773_v57  ;;  %v10163_v57 = vld [vmem:[%s12033_s27 + $0x34] ss:$8 sps:$4 sm:$0xff]  }
 0xbfd   :  { %1586 = vmatprep.subr.bf16.mxu0 %v9784_v59  ;;  %v10169_v59 = vld [vmem:[%s12033_s27 + $0x30] ss:$8 sps:$4 sm:$0xff]  }
 0xc00   :  { %1587 = vmatpush1.bf16.msra.mxu0 %v9802_v62  ;;  %v10175_v62 = vld [vmem:[%s12039_s3 + $0x4] ss:$8 sps:$4 sm:$0xff]  }
 0xc01   :  { %1702 = vmatprep.subr.bf16.mxu0 %v10072_v51  ;;  %v10182_v51 = vld [vmem:[%s12039_s3] ss:$8 sps:$4 sm:$0xff]  }
 0xc06   :  { %v1378_v2 = vpop.permute.xlu0 %1377 }
 0xc07   :  { %7691 = vmatmul.mubr.msk.bf16.vlgmr.msra.gmra.mrb[32].mxu1 %vm255_vm2, %v1378_v2 }
 0xc08   :  { %1505 = vmatpush1.bf16.msra.mxu1 %v10058_v24  ;;  %1536 = vmatprep.mubr.bf16.mxu1 %v9488_v1 }
 0xc09   :  { %1506 = vmatprep.subr.bf16.mxu1 %v10065_v48 }
 0xc0c   :  { %1507 = vmatpush1.bf16.msra.mxu1 %v10078_v52 }
 0xc0d   :  { %1508 = vmatprep.subr.bf16.mxu1 %v10084_v25 }
 0xc10   :  { %1509 = vmatpush1.bf16.msra.mxu1 %v10157_v56 }
 0xc11   :  { %1510 = vmatprep.subr.bf16.mxu1 %v10163_v57 }
 0xc14   :  { %1511 = vmatpush1.bf16.msra.mxu1 %v10169_v59 }
 0xc15   :  { %1628 = vmatprep.subr.bf16.mxu1 %v10175_v62 }
 0xc17   :  { %7695 = vmatmul.mubr.msk.bf16.vlgmr.msra.gmra.mrb[36].mxu1 %vm255_vm2, %v1378_v2 }
 0xc18   :  { %1629 = vmatpush1.bf16.msra.mxu1 %v10182_v51  ;;  %1660 = vmatprep.mubr.bf16.mxu1 %v9488_v1 }
 0xc19   :  { %1630 = vmatprep.subr.bf16.mxu1 %v10189_v4 }
 0xc1c   :  { %1631 = vmatpush1.bf16.msra.mxu1 %v10195_v6 }
 0xc1d   :  { %1632 = vmatprep.subr.bf16.mxu1 %v10201_v54 }
 0xc20   :  { %1633 = vmatpush1.bf16.msra.mxu1 %v10207_v40 }
 0xc21   :  { %1634 = vmatprep.subr.bf16.mxu1 %v10213_v0 }
 0xc24   :  { %1635 = vmatpush1.bf16.msra.mxu1 %v9809_v63 }
 0xc25   :  { %1778 = vmatprep.subr.bf16.mxu1 %v9482_v7 }
 0xcc6   :  { %v1464_v36 = vpop.f32.mrb[36].mxu0 }
 0xcc7   :  { %v1466_v3 = vpop.f32.mrb[37].mxu0  ;;  %v1465_v8 = vadd.f32 %v1464_v36, %v9858_v26 }
 0xcc8   :  { %v1468_v9 = vpop.f32.mrb[38].mxu0  ;;  %v1467_v58 = vadd.f32 %v1466_v3, %v9868_v11 }
 0xcc9   :  { %v1469_v31 = vpop.f32.mrb[39].mxu0 }
 0xcda   :  { %v1416_v10 = vpop.f32.mrb[32].mxu1 }
 0xcdb   :  { %v1417_v32 = vadd.f32 %v1416_v10, %v9861_v28  ;;  %v1418_v45 = vpop.f32.mrb[33].mxu1  ;;  %v1568_v10 = vrot.slane %v10118_v35, 6 }
 0xcdc   :  { %v1420_v21 = vpop.f32.mrb[34].mxu1  ;;  %v1419_v61 = vadd.f32 %v1418_v45, %v9871_v12 }
 0xcdd   :  { %v1471_v22 = vadd.f32 %v1465_v8, %v1417_v32  ;;  %v1421_v38 = vpop.f32.mrb[35].mxu1 }
 0xcdf   :  { %v7693_v5 = vmul.f32 -1.442695, %v1471_v22 }
 0xce1   :  { %9388 = vpow2.f32 %v7693_v5 }
 0xcea   :  { %v1538_v63 = vpop.f32.mrb[36].mxu1 }
 0xceb   :  { %v9389_v13 = vpop.eup %9388  ;;  %v1539_v14 = vadd.f32 %v1538_v63, %v9704_v30  ;;  %v1540_v15 = vpop.f32.mrb[37].mxu1 }
 0xcec   :  { %v1475_v49 = vadd.f32 1.0, %v9389_v13  ;;  %v1542_v50 = vpop.f32.mrb[38].mxu1  ;;  %v1541_v9 = vadd.f32 %v1540_v15, %v9711_v41 }
 0xced   :  { %v1546_v34 = vrot.slane %v1539_v14, 4  ;;  %v1543_v33 = vpop.f32.mrb[39].mxu1 }
 0xcee   :  { %9390 = vrcp.f32 %v1475_v49  ;;  %v1556_v8 = vrot.slane %v1541_v9, 4 }
 0xcef   :  { %v1548_v55 = vadd.f32 %v1546_v34, %v9699_v27 }
 0xcf1   :  { %v7696_v44 = vmul.f32 -1.442695, %v1548_v55 }
 0xcf3   :  { %9392 = vpow2.f32 %v7696_v44 }
 0xcf8   :  { %v9391_v60 = vpop.eup %9390 }
 0xcf9   :  { %v1478_v43 = vmul.f32 %v9391_v60, %v1467_v58  ;;  %v1481_v38 = vsub.f32 1.0, %v9391_v60  ;;  %v1487_v63 = vmul.f32 %v9391_v60, %v10113_v53  ;;  %v9483_v58 = vld [vmem:[%s12038_s0 + $0x24] ss:$8 sps:$4 sm:$0xff]   ;;  %v9484_v60 = vld [vmem:[%s12038_s0 + $0x20] ss:$8 sps:$4 sm:$0xff]  }
 0xcfb   :  { %v1479_v2 = vadd.f32 %v1478_v43, %v1419_v61 }
 0xcfd   :  { %v9393_v7 = vpop.eup %9392  ;;  %9394 = vtanh.f32 %v1479_v2 }
 0xcfe   :  { %v1552_v36 = vadd.f32 1.0, %v9393_v7 }
 0xd00   :  { %9396 = vrcp.f32 %v1552_v36 }
 0xd07   :  { %v9395_v31 = vpop.eup %9394 }
 0xd08   :  { %1483 = vrot.lane.b32.xlu1 %v9395_v31, %s9489_s8 }
 0xd0a   :  { %v9397_v32 = vpop.eup %9396 }
 0xd0b   :  { %v1558_v21 = vmul.f32 %v9397_v32, %v1556_v8  ;;  %v1570_v3 = vmul.f32 %v9397_v32, %v1568_v10  ;;  %v1561_v15 = vsub.f32 1.0, %v9397_v32 }
 0xd0d   :  { %v1559_v22 = vadd.f32 %v1558_v21, %v9701_v29 }
 0xd0f   :  { %9398 = vtanh.f32 %v1559_v22 }
 0xd19   :  { %v9399_v45 = vpop.eup %9398 }
 0xd1a   :  { %1563 = vrot.lane.b32.xlu0 %v9399_v45, %s9489_s8 }
 0xd7a   :  { %v1484_v5 = vpop.permute.xlu1 %1483 }
 0xd7b   :  { %v1486_v13 = vmul.f32 %v1484_v5, %v1481_v38 }
 0xd7d   :  { %v10232_v14 = vadd.f32 %v1487_v63, %v1486_v13 }
 0xd7f   :  { %v1621_v35 = vpack.c.bf16 %v10232_v14, %v10232_v14 }
 0xd81   :  { %1623 = vrot.lane.b32.xlu1 %v1621_v35, %s9489_s8 }
 0xd8c   :  { %v1564_v49 = vpop.permute.xlu0 %1563 }
 0xd8d   :  { %v1566_v50 = vmul.f32 %v1564_v49, %v1561_v15 }
 0xd8f   :  { %v10237_v34 = vadd.f32 %v1570_v3, %v1566_v50 }
 0xd91   :  { %v1572_v33 = vpack.c.bf16 %v10237_v34, %v10237_v34 }
 0xd93   :  { %v1574_v55 = vrot.slane %v1572_v33, 2 }
 0xd95   :  { %1575 = vrot.lane.b32.xlu0 %v1574_v55, %s9489_s8 }
 0xdf3   :  { %v1624_v44 = vpop.permute.xlu1 %1623 }
 0xdf4   :  { %7698 = vmatmul.mubr.msk.bf16.vlgmr.msra.gmra.mrb[40].mxu1 %vm255_vm2, %v1624_v44 }
 0xdf5   :  { %1779 = vmatpush1.bf16.msra.mxu1 %v10127_v46  ;;  %1810 = vmatprep.mubr.bf16.mxu1 %v9488_v1  ;;  %v9485_v46 = vld [vmem:[%s12038_s0 + $0x34] ss:$8 sps:$4 sm:$0xff]  }
 0xdf6   :  { %1780 = vmatprep.subr.bf16.mxu1 %v10134_v47  ;;  %v9486_v47 = vld [vmem:[%s12038_s0 + $0x30] ss:$8 sps:$4 sm:$0xff]  }
 0xdf9   :  { %1781 = vmatpush1.bf16.msra.mxu1 %v10140_v42 }
 0xdfa   :  { %1782 = vmatprep.subr.bf16.mxu1 %v9483_v58 }
 0xdfd   :  { %1783 = vmatpush1.bf16.msra.mxu1 %v9484_v60 }
 0xdfe   :  { %1784 = vmatprep.subr.bf16.mxu1 %v9485_v46  ;;  %v7676_v46 = vld [vmem:[%s12004_s9 + $0x2] ss:$0 sm:$0xff] }
 0xe01   :  { %1785 = vmatpush1.bf16.msra.mxu1 %v9486_v47  ;;  %v7688_v47 = vld [vmem:[%s12004_s9 + $0x4] ss:$0 sm:$0xff] }
 0xe07   :  { %v1576_v42 = vpop.permute.xlu0 %1575 }
 0xe08   :  { %7697 = vmatmul.mubr.msk.bf16.vlgmr.msra.gmra.mrb[40].mxu0 %vm255_vm2, %v1576_v42 }
 0xe09   :  { %1703 = vmatpush1.bf16.msra.mxu0 %v10058_v24  ;;  %1734 = vmatprep.mubr.bf16.mxu0 %v9488_v1  ;;  %v9487_v24 = vld [vmem:[%s12039_s3 + $0x30] ss:$8 sps:$4 sm:$0xff]  }
 0xe0a   :  { %1704 = vmatprep.subr.bf16.mxu0 %v10065_v48 }
 0xe0d   :  { %1705 = vmatpush1.bf16.msra.mxu0 %v10078_v52 }
 0xe0e   :  { %1706 = vmatprep.subr.bf16.mxu0 %v10084_v25 }
 0xe11   :  { %1707 = vmatpush1.bf16.msra.mxu0 %v10157_v56 }
 0xe12   :  { %1708 = vmatprep.subr.bf16.mxu0 %v10163_v57 }
 0xe15   :  { %1709 = vmatpush1.bf16.msra.mxu0 %v10169_v59 }
 0xe16   :  { %1826 = vmatprep.subr.bf16.mxu0 %v10175_v62 }
 0xe18   :  { %7701 = vmatmul.mubr.msk.bf16.vlgmr.msra.gmra.mrb[44].mxu0 %vm255_vm2, %v1576_v42 }
 0xe19   :  { %1827 = vmatpush1.bf16.msra.mxu0 %v10182_v51  ;;  %1858 = vmatprep.mubr.bf16.mxu0 %v9488_v1 }
 0xe1a   :  { %1828 = vmatprep.subr.bf16.mxu0 %v10189_v4 }
 0xe1d   :  { %1829 = vmatpush1.bf16.msra.mxu0 %v10195_v6 }
 0xe1e   :  { %1830 = vmatprep.subr.bf16.mxu0 %v10201_v54 }
 0xe21   :  { %1831 = vmatpush1.bf16.msra.mxu0 %v10207_v40 }
 0xe22   :  { %1832 = vmatprep.subr.bf16.mxu0 %v10213_v0 }
 0xe25   :  { %1833 = vmatpush1.bf16.msra.mxu0 %v9487_v24 }
 0xec7   :  { %v1662_v48 = vpop.f32.mrb[40].mxu1 }
 0xec8   :  { %v1664_v52 = vpop.f32.mrb[41].mxu1  ;;  %v1663_v59 = vadd.f32 %v1662_v48, %v9858_v26 }
 0xec9   :  { %v1666_v25 = vpop.f32.mrb[42].mxu1  ;;  %v1665_v32 = vadd.f32 %v1664_v52, %v9868_v11  ;;  %v7700_v52 = vld [vmem:[%s12004_s9 + $0x6] ss:$0 sm:$0xff] }
 0xeca   :  { %v1667_v56 = vpop.f32.mrb[43].mxu1 }
 0xedb   :  { %v1614_v57 = vpop.f32.mrb[40].mxu0 }
 0xedc   :  { %v1615_v62 = vadd.f32 %v1614_v57, %v9861_v28  ;;  %v1616_v51 = vpop.f32.mrb[41].mxu0 }
 0xedd   :  { %v1618_v4 = vpop.f32.mrb[42].mxu0  ;;  %v1617_v3 = vadd.f32 %v1616_v51, %v9871_v12  ;;  %v7694_v51 = vld [vmem:[%s12004_s9 + $0x5] ss:$0 sm:$0xff] }
 0xede   :  { %v1669_v6 = vadd.f32 %v1663_v59, %v1615_v62  ;;  %v1619_v54 = vpop.f32.mrb[43].mxu0  ;;  %v7670_v59 = vld [vmem:[%s12004_s9 + $0x1] ss:$0 sm:$0xff]  ;;  %v7682_v62 = vld [vmem:[%s12004_s9 + $0x3] ss:$0 sm:$0xff] }
 0xee0   :  { %v7699_v40 = vmul.f32 -1.442695, %v1669_v6 }
 0xee2   :  { %9400 = vpow2.f32 %v7699_v40 }
 0xeeb   :  { %v1736_v0 = vpop.f32.mrb[44].mxu0 }
 0xeec   :  { %v9401_v61 = vpop.eup %9400  ;;  %v1737_v43 = vadd.f32 %v1736_v0, %v9704_v30  ;;  %v1738_v2 = vpop.f32.mrb[45].mxu0 }
 0xeed   :  { %v1673_v7 = vadd.f32 1.0, %v9401_v61  ;;  %v1740_v36 = vpop.f32.mrb[46].mxu0  ;;  %v1739_v5 = vadd.f32 %v1738_v2, %v9711_v41 }
 0xeee   :  { %v1744_v9 = vrot.slane %v1737_v43, 2  ;;  %v1741_v31 = vpop.f32.mrb[47].mxu0 }
 0xeef   :  { %9402 = vrcp.f32 %v1673_v7  ;;  %v1754_v13 = vrot.slane %v1739_v5, 2 }
 0xef0   :  { %v1746_v10 = vadd.f32 %v1744_v9, %v9699_v27  ;;  %v1766_v27 = vrot.slane %v10237_v34, 6 }
 0xef2   :  { %v7702_v8 = vmul.f32 -1.442695, %v1746_v10 }
 0xef4   :  { %9404 = vpow2.f32 %v7702_v8 }
 0xef9   :  { %v9403_v21 = vpop.eup %9402 }
 0xefa   :  { %v1676_v22 = vmul.f32 %v9403_v21, %v1665_v32  ;;  %v1679_v55 = vsub.f32 1.0, %v9403_v21  ;;  %v1685_v58 = vmul.f32 %v9403_v21, %v10232_v14 }
 0xefc   :  { %v1677_v45 = vadd.f32 %v1676_v22, %v1617_v3 }
 0xefe   :  { %v9405_v38 = vpop.eup %9404  ;;  %9406 = vtanh.f32 %v1677_v45 }
 0xeff   :  { %v1750_v30 = vadd.f32 1.0, %v9405_v38 }
 0xf01   :  { %9408 = vrcp.f32 %v1750_v30 }
 0xf08   :  { %v9407_v63 = vpop.eup %9406 }
 0xf09   :  { %1681 = vrot.lane.b32.xlu1 %v9407_v63, %s9489_s8 }
 0xf0b   :  { %v9409_v35 = vpop.eup %9408 }
 0xf0c   :  { %v1756_v15 = vmul.f32 %v9409_v35, %v1754_v13  ;;  %v1768_v49 = vmul.f32 %v9409_v35, %v1766_v27  ;;  %v1759_v42 = vsub.f32 1.0, %v9409_v35 }
 0xf0e   :  { %v1757_v50 = vadd.f32 %v1756_v15, %v9701_v29  ;;  %v7664_v29 = vld [vmem:[%s12004_s9] ss:$0 sm:$0xff] }
 0xf10   :  { %9410 = vtanh.f32 %v1757_v50 }
 0xf1a   :  { %v9411_v33 = vpop.eup %9410 }
 0xf1b   :  { %1761 = vrot.lane.b32.xlu0 %v9411_v33, %s9489_s8 }
 0xf7b   :  { %v1682_v44 = vpop.permute.xlu1 %1681 }
 0xf7c   :  { %v1684_v41 = vmul.f32 %v1682_v44, %v1679_v55 }
 0xf7e   :  { %v10292_v60 = vadd.f32 %v1685_v58, %v1684_v41  ;;  %v9033_v41 = vld [vmem:[%s12005_s10 + $0x10] ss:$8 sps:$4 sm:$0xff]  }
 0xf80   :  { %v1819_v34 = vpack.c.bf16 %v10292_v60, %v10292_v60 }
 0xf82   :  { %1821 = vrot.lane.b32.xlu1 %v1819_v34, %s9489_s8  ;;  %v9035_v34 = vld [vmem:[%s12005_s10 + $0x14] ss:$8 sps:$4 sm:$0xff]  }
 0xf86   :  { %511 = vrot.lane.b32.xlu1 %v7664_v29, %s9489_s8 }
 0xf8a   :  { %908 = vrot.lane.b32.xlu1 %v7676_v46, %s9489_s8 }
 0xf8d   :  { %v1762_v24 = vpop.permute.xlu0 %1761 }
 0xf8e   :  { %v1764_v48 = vmul.f32 %v1762_v24, %v1759_v42  ;;  %1297 = vrot.lane.b32.xlu1 %v7688_v47, %s9489_s8  ;;  %v9036_v47 = vld [vmem:[%s12005_s10 + $0x20] ss:$8 sps:$4 sm:$0xff]   ;;  %v9038_v42 = vld [vmem:[%s12005_s10 + $0x24] ss:$8 sps:$4 sm:$0xff]  }
 0xf90   :  { %v1769_v25 = vadd.f32 %v1768_v49, %v1764_v48 }
 0xf92   :  { %v1770_v56 = vpack.c.bf16 %v1769_v25, %v1769_v25  ;;  %1693 = vrot.lane.b32.xlu1 %v7700_v52, %s9489_s8 }
 0xf94   :  { %v1772_v57 = vrot.slane %v1770_v56, 3 }
 0xf96   :  { %1773 = vrot.lane.b32.xlu0 %v1772_v57, %s9489_s8 }
 0xf9a   :  { %710 = vrot.lane.b32.xlu0 %v7670_v59, %s9489_s8 }
 0xf9e   :  { %1106 = vrot.lane.b32.xlu0 %v7682_v62, %s9489_s8 }
 0xfa2   :  { %1495 = vrot.lane.b32.xlu0 %v7694_v51, %s9489_s8 }
 0xff4   :  { %v1822_v4 = vpop.permute.xlu1 %1821 }
 0xff5   :  { %7704 = vmatmul.mubr.msk.bf16.vlgmr.msra.gmra.mrb[48].mxu0 %vm255_vm2, %v1822_v4 }
 0xff8   :  { %v512_v6 = vpop.permute.xlu1 %511 }
 0xff9   :  { %v514_v54 = vadd.f32 %v512_v6, %v9884_v19 }
 0xffb   :  { %516 = vrot.lane.b32.xlu1 %v514_v54, %s9489_s8 }
 0xffc   :  { %v909_v40 = vpop.permute.xlu1 %908 }
 0xffd   :  { %v911_v0 = vadd.f32 %v909_v40, %v9988_v39 }
 0xfff   :  { %913 = vrot.lane.b32.xlu1 %v911_v0, %s9489_s8  ;;  %v9490_v0 = vmov 0.0  }
0x1000   :  { %v1298_v61 = vpop.permute.xlu1 %1297  ;;  %8893 = vmatprep.subr.bf16.mxu0 %v9490_v0  ;;  %8895 = vmatprep.mubr.msk.bf16.mxu0 %vm9491_vm4, %v9490_v0 }
0x1001   :  { %v1300_v43 = vadd.f32 %v1298_v61, %v10113_v53  ;;  %v1956_v61 = vld [vmem:[%s12006_s11] sm:$0x3] }
0x1003   :  { %1302 = vrot.lane.b32.xlu1 %v1300_v43, %s9489_s8  ;;  %v1961_v43 = vrot.slane %v1956_v61, %v9686_v18 }
0x1004   :  { %v1694_v2 = vpop.permute.xlu1 %1693 }
0x1005   :  { %v1696_v7 = vadd.f32 %v1694_v2, %v10292_v60 }
0x1007   :  { %1698 = vrot.lane.b32.xlu1 %v1696_v7, %s9489_s8  ;;  %v1965_v7 = vrot.slane %v1956_v61, %v9692_v20 }
0x1008   :  { %v1774_v36 = vpop.permute.xlu0 %1773 }
0x1009   :  { %7703 = vmatmul.mubr.msk.bf16.vlgmr.msra.gmra.mrb[44].mxu1 %vm255_vm2, %v1774_v36 }
0x100a   :  { %2043 = vmatprep.mubr.bf16.mxu1 %v9488_v1 }
0x100c   :  { %v711_v55 = vpop.permute.xlu0 %710 }
0x100d   :  { %v713_v58 = vadd.f32 %v711_v55, %v9936_v37 }
0x1010   :  { %v1107_v44 = vpop.permute.xlu0 %1106 }
0x1011   :  { %v1109_v29 = vadd.f32 %v1107_v44, %v10036_v23  ;;  %v9041_v23 = vld [vmem:[%s12005_s10 + $0x34] ss:$8 sps:$4 sm:$0xff]  }
0x1014   :  { %v1496_v46 = vpop.permute.xlu0 %1495 }
0x1015   :  { %v1498_v37 = vadd.f32 %v1496_v46, %v10232_v14  ;;  %v9039_v14 = vld [vmem:[%s12005_s10 + $0x30] ss:$8 sps:$4 sm:$0xff]  }
0x106d   :  { %v517_v19 = vpop.permute.xlu1 %516 }
0x106e   :  { %520 = vst.msk [vmem:[#allocation2] sm:$0x3] %vm519_vm3, %v517_v19 }
0x1071   :  { %v914_v39 = vpop.permute.xlu1 %913 }
0x1072   :  { %916 = vst.msk [vmem:[#allocation2 + $0x4] sm:$0x3] %vm519_vm3, %v914_v39 }
0x1075   :  { %v1303_v53 = vpop.permute.xlu1 %1302 }
0x1076   :  { %1305 = vst.msk [vmem:[#allocation2 + $0x8] sm:$0x3] %vm519_vm3, %v1303_v53 }
0x1079   :  { %v1699_v9 = vpop.permute.xlu1 %1698 }
0x107a   :  { %1701 = vst.msk [vmem:[#allocation2 + $0xc] sm:$0x3] %vm519_vm3, %v1699_v9 }
0x10c8   :  { %v1860_v31 = vpop.f32.mrb[48].mxu0 }
0x10c9   :  { %v1862_v10 = vpop.f32.mrb[49].mxu0  ;;  %v1861_v3 = vadd.f32 %v1860_v31, %v9858_v26 }
0x10ca   :  { %v1864_v8 = vpop.f32.mrb[50].mxu0  ;;  %v1863_v35 = vadd.f32 %v1862_v10, %v9868_v11  ;;  %v9030_v11 = vld [vmem:[%s12005_s10] ss:$8 sps:$4 sm:$0xff]  }
0x10cb   :  { %v1865_v32 = vpop.f32.mrb[51].mxu0 }
0x10dc   :  { %v1812_v21 = vpop.f32.mrb[44].mxu1 }
0x10dd   :  { %v1813_v22 = vadd.f32 %v1812_v21, %v9861_v28  ;;  %v1814_v45 = vpop.f32.mrb[45].mxu1  ;;  %v7706_v28 = vld [vmem:[%s12004_s9 + $0x7] ss:$0 sm:$0xff] }
0x10de   :  { %v1816_v38 = vpop.f32.mrb[46].mxu1  ;;  %v1815_v49 = vadd.f32 %v1814_v45, %v9871_v12  ;;  %v9032_v12 = vld [vmem:[%s12005_s10 + $0x4] ss:$8 sps:$4 sm:$0xff]   ;;  %v1902_v45 = vadd.s32 8, %v9683_v17 }
0x10df   :  { %v1867_v30 = vadd.f32 %v1861_v3, %v1813_v22  ;;  %v1817_v5 = vpop.f32.mrb[47].mxu1  ;;  %2011 = vmatprep.subr.bf16.mxu1 %v9032_v12  ;;  %v1904_v22 = vand.u32 127, %v106_v16  ;;  %v1909_v38 = vand.u32 1, %v9683_v17 }
0x10e0   :  { %2012 = vmatpush1.bf16.msra.mxu1 %v9030_v11  ;;  %v1916_v5 = vand.u32 1, %v1902_v45 }
0x10e1   :  { %v7705_v63 = vmul.f32 -1.442695, %v1867_v30  ;;  %2013 = vmatprep.subr.bf16.mxu1 %v9035_v34  ;;  %v1933_v30 = vand.u32 1, %v1904_v22 }
0x10e3   :  { %9412 = vpow2.f32 %v7705_v63  ;;  %vm1941_vm6 = vcmp.eq.s32.totalorder %v1909_v38, %v1933_v30  ;;  %vm1942_vm7 = vcmp.eq.s32.totalorder %v1916_v5, %v1933_v30 }
0x10e4   :  { %2014 = vmatpush1.bf16.msra.mxu1 %v9033_v41 }
0x10e5   :  { %2015 = vmatprep.subr.bf16.mxu1 %v9038_v42 }
0x10e8   :  { %2016 = vmatpush1.bf16.msra.mxu1 %v9036_v47 }
0x10e9   :  { %2017 = vmatprep.subr.bf16.mxu1 %v9041_v23 }
0x10ec   :  { %2018 = vmatpush1.bf16.msra.mxu1 %v9039_v14 }
0x10ed   :  { %v9413_v27 = vpop.eup %9412  ;;  %8917 = vmatprep.subr.bf16.mxu1 %v9490_v0 }
0x10ee   :  { %v1871_v13 = vadd.f32 1.0, %v9413_v27  ;;  %v9492_v27 = vmov -1e+30  }
0x10f0   :  { %9414 = vrcp.f32 %v1871_v13  ;;  %v10417_v13 = vsel %vm1941_vm6, 0.0, %v9492_v27 }
0x10fa   :  { %v9415_v15 = vpop.eup %9414 }
0x10fb   :  { %v1874_v50 = vmul.f32 %v9415_v15, %v1863_v35  ;;  %v1877_v24 = vsub.f32 1.0, %v9415_v15  ;;  %v1883_v25 = vmul.f32 %v9415_v15, %v10292_v60 }
0x10fd   :  { %v1875_v33 = vadd.f32 %v1874_v50, %v1815_v49  ;;  %v10419_v50 = vsel %vm1942_vm7, 0.0, %v9492_v27 }
0x10ff   :  { %9416 = vtanh.f32 %v1875_v33 }
0x1109   :  { %v9417_v26 = vpop.eup %9416 }
0x110a   :  { %1879 = vrot.lane.b32.xlu0 %v9417_v26, %s9489_s8 }
0x110e   :  { %1891 = vrot.lane.b32.xlu0 %v7706_v28, %s9489_s8 }
0x1112   :  { %715 = vrot.lane.b32.xlu0 %v713_v58, %s9489_s8 }
0x1116   :  { %1111 = vrot.lane.b32.xlu0 %v1109_v29, %s9489_s8 }
0x111a   :  { %1500 = vrot.lane.b32.xlu0 %v1498_v37, %s9489_s8 }
0x117c   :  { %v1880_v48 = vpop.permute.xlu0 %1879 }
0x117d   :  { %v1882_v52 = vmul.f32 %v1880_v48, %v1877_v24 }
0x117f   :  { %v1884_v56 = vadd.f32 %v1883_v25, %v1882_v52 }
0x1180   :  { %v1892_v57 = vpop.permute.xlu0 %1891 }
0x1181   :  { %v1894_v59 = vadd.f32 %v1892_v57, %v1884_v56 }
0x1183   :  { %1896 = vrot.lane.b32.xlu0 %v1894_v59, %s9489_s8 }
0x1184   :  { %v716_v62 = vpop.permute.xlu0 %715 }
0x1185   :  { %718 = vst.msk [vmem:[#allocation2 + $0x2] sm:$0x3] %vm519_vm3, %v716_v62 }
0x1188   :  { %v1112_v51 = vpop.permute.xlu0 %1111 }
0x1189   :  { %1114 = vst.msk [vmem:[#allocation2 + $0x6] sm:$0x3] %vm519_vm3, %v1112_v51 }
0x118c   :  { %v1501_v4 = vpop.permute.xlu0 %1500 }
0x118d   :  { %1503 = vst.msk [vmem:[#allocation2 + $0xa] sm:$0x3] %vm519_vm3, %v1501_v4 }
0x1190   :  { %v10386_v54 = vld [vmem:[#allocation2] sm:$0xff] }
0x11f5   :  { %v1897_v6 = vpop.permute.xlu0 %1896 }
0x11f6   :  { %1899 = vst.msk [vmem:[#allocation2 + $0xe] sm:$0x3] %vm519_vm3, %v1897_v6 }
0x11fd   :  { %v10388_v60 = vld [vmem:[#allocation2 + $0x8] sm:$0xff] }
0x11fe   :  { %v1947_v40 = vpack.c.bf16 %v10388_v60, %v10386_v54 }
0x1200   :  { %7715 = vmatmul.mubr.msk.bf16.vlgmr.msra.gmra.mrb[48].mxu1 %vm255_vm2, %v1947_v40 }
0x1201   :  { %8921 = vmatprep.mubr.msk.bf16.mxu1 %vm9491_vm4, %v9490_v0 }
0x12d3   :  { %v2045_v2 = vpop.f32.mrb[48].mxu1 }
0x12d4   :  { %v2047_v36 = vpop.f32.mrb[49].mxu1  ;;  %v2046_v39 = vadd.f32 %v2045_v2, %v1961_v43 }
0x12d5   :  { %v2049_v19 = vpop.f32.mrb[50].mxu1  ;;  %v2048_v31 = vadd.f32 %v2047_v36, %v1965_v7 }
0x12d6   :  { %v2050_v53 = vadd.f32 %v2049_v19, %v1961_v43  ;;  %v2051_v9 = vpop.f32.mrb[51].mxu1 }
0x12d7   :  { %v2052_v10 = vadd.f32 %v2051_v9, %v1965_v7 }
0x12d8   :  { %v2054_v8 = vpack.c.bf16 %v2050_v53, %v2046_v39 }
0x12d9   :  { %v10404_v32 = vpack.c.bf16 %v2052_v10, %v2048_v31 }
0x12da   :  { %2065 = vrot.lane.b32.xlu1 %v2054_v8, %s9489_s8 }
0x134c   :  { %v2066_v21 = vpop.permute.xlu1 %2065 }
0x134d   :  { %v2072_v3 = vsel %vm2067_vm5, %v2066_v21, 0 }
0x134e   :  { %8894 = vmatpush3.bf16.xpose.msra.mxu0 %v2072_v3 }
0x134f   :  { %8899 = vmatprep.subr.bf16.mxu0 %v9490_v0 }
0x1355   :  { %8896 = vmatmul.mubr.msk.bf16.vlgmr.msra.gmra.mrb[52].mxu0 %vm2067_vm5, %v2054_v8 }
0x1356   :  { %8900 = vmatpush3.bf16.msra.mxu0 %v10404_v32  ;;  %8901 = vmatprep.mubr.msk.bf16.mxu0 %vm9491_vm4, %v9490_v0 }
0x1357   :  { %8905 = vmatprep.subr.bf16.mxu0 %v9490_v0 }
0x1428   :  { %v2108_v63 = vpop.f32.mrb[52].mxu0 }
0x1429   :  { %v2115_v35 = vmul.f32 0.17677669, %v2108_v63  ;;  %v8897_v15 = vpop.f32.mrb[53].mxu0 }
0x142a   :  { %v2111_v49 = vpop.f32.mrb[54].mxu0 }
0x142b   :  { %v2116_v33 = vmul.f32 0.17677669, %v2111_v49  ;;  %v8898_v16 = vpop.f32.mrb[55].mxu0  ;;  %v2117_v26 = vadd.f32 %v2115_v35, %v10417_v13  ;;  %v9044_v35 = vld [vmem:[%s12007_s12 + $0x10] sm:$0xff]  }
0x142c   :  { %8918 = vmatpush3.bf16.msra.mxu1 %v9044_v35 }
0x142d   :  { %v2120_v55 = vsel %vm2119_vm8, %v2117_v26, -inf  ;;  %v2118_v28 = vadd.f32 %v2116_v33, %v10419_v50  ;;  %8919 = vmatprep.subr.bf16.mxu1 %v9490_v0 }
0x142e   :  { %2121 = vmax.xlane.f32.xlu0 %v2120_v55 }
0x142f   :  { %v2123_v11 = vsel %vm2119_vm8, %v2118_v28, -inf }
0x1430   :  { %2124 = vmax.xlane.f32.xlu1 %v2123_v11 }
0x1441   :  { %2190 = vrot.lane.b32.xlu1 %v2054_v8, %s9493_s1 }
0x14bb   :  { %v2122_v44 = vpop.xlane.xlu0 %2121 }
0x14bc   :  { %v2126_v12 = vsub.f32 %v2117_v26, %v2122_v44  ;;  %v9043_v44 = vld [vmem:[%s12007_s12 + $0x8] sm:$0xff]  }
0x14bd   :  { %v2125_v58 = vpop.xlane.xlu1 %2124 }
0x14be   :  { %v2128_v41 = vmul.f32 1.442695, %v2126_v12  ;;  %v2127_v34 = vsub.f32 %v2118_v28, %v2125_v58  ;;  %v9045_v12 = vld [vmem:[%s12007_s12 + $0x18] sm:$0xff]  }
0x14bf   :  { %8920 = vmatpush3.bf16.msra.mxu1 %v9045_v12  ;;  %v2532_v12 = vld [vmem:[%s12009_s16 + $0x180] sm:$0xff] }
0x14c0   :  { %9418 = vpow2.f32 %v2128_v41  ;;  %v2130_v29 = vmul.f32 1.442695, %v2127_v34 }
0x14c1   :  { %v2191_v56 = vpop.permute.xlu1 %2190 }
0x14c2   :  { %9420 = vpow2.f32 %v2130_v29  ;;  %v2196_v59 = vsel %vm2067_vm5, %v2191_v56, 0 }
0x14ca   :  { %v9419_v46 = vpop.eup %9418 }
0x14cb   :  { %v2132_v37 = vsel %vm2119_vm8, %v9419_v46, 0.0 }
0x14cc   :  { %v9421_v47 = vpop.eup %9420  ;;  %2133 = vadd.xlane.f32.xlu0 %v2132_v37 }
0x14cd   :  { %v2135_v42 = vsel %vm2119_vm8, %v9421_v47, 0.0 }
0x14d0   :  { %2136 = vadd.xlane.f32.xlu0 %v2135_v42 }
0x14e6   :  { %2188 = vrot.lane.b32.xlu0 %v2054_v8, %s9494_s5 }
0x1559   :  { %v2134_v23 = vpop.xlane.xlu0 %2133 }
0x155a   :  { %9422 = vrcp.f32 %v2134_v23 }
0x155d   :  { %v2137_v14 = vpop.xlane.xlu0 %2136 }
0x155e   :  { %9424 = vrcp.f32 %v2137_v14 }
0x1561   :  { %v2189_v62 = vpop.permute.xlu0 %2188 }
0x1564   :  { %v9423_v24 = vpop.eup %9422 }
0x1565   :  { %v2140_v52 = vmul.f32 %v9423_v24, %v9419_v46  ;;  %v7726_v24 = vld [vmem:[%s12008_s13] ss:$0 sm:$0xff] }
0x1568   :  { %v9425_v48 = vpop.eup %9424 }
0x1569   :  { %v2141_v25 = vmul.f32 %v9425_v48, %v9421_v47 }
0x156b   :  { %v2142_v57 = vpack.c.bf16 %v2141_v25, %v2140_v52 }
0x156d   :  { %8902 = vmatmul.mubr.msk.bf16.vlgmr.msra.gmra.mrb[56].mxu0 %vm2119_vm8, %v2142_v57 }
0x156e   :  { %8906 = vmatpush3.bf16.xpose.msra.mxu0 %v2196_v59  ;;  %8907 = vmatprep.mubr.msk.bf16.mxu0 %vm9491_vm4, %v9490_v0 }
0x156f   :  { %8911 = vmatprep.subr.bf16.mxu0 %v9490_v0 }
0x1575   :  { %8908 = vmatmul.mubr.msk.bf16.vlgmr.msra.gmra.mrb[60].mxu0 %vm2067_vm5, %v2189_v62 }
0x1576   :  { %8913 = vmatprep.mubr.msk.bf16.mxu0 %vm9491_vm4, %v9490_v0 }
0x1640   :  { %v2180_v51 = vpop.f32.mrb[56].mxu0 }
0x1641   :  { %v8903_v4 = vpop.f32.mrb[57].mxu0 }
0x1642   :  { %v2183_v6 = vpop.f32.mrb[58].mxu0 }
0x1643   :  { %v2187_v40 = vpack.c.bf16 %v2183_v6, %v2180_v51  ;;  %v8904_v61 = vpop.f32.mrb[59].mxu0 }
0x1648   :  { %v2232_v43 = vpop.f32.mrb[60].mxu0 }
0x1649   :  { %v2239_v2 = vmul.f32 0.17677669, %v2232_v43  ;;  %v8909_v7 = vpop.f32.mrb[61].mxu0 }
0x164a   :  { %v2235_v36 = vpop.f32.mrb[62].mxu0 }
0x164b   :  { %v2240_v19 = vmul.f32 0.17677669, %v2235_v36  ;;  %v8910_v39 = vpop.f32.mrb[63].mxu0  ;;  %v2241_v53 = vadd.f32 %v2239_v2, %v10417_v13 }
0x164d   :  { %v2243_v9 = vsel %vm2119_vm8, %v2241_v53, -inf  ;;  %v2242_v31 = vadd.f32 %v2240_v19, %v10419_v50 }
0x164e   :  { %2244 = vmax.xlane.f32.xlu1 %v2243_v9  ;;  %v2484_v9 = vld [vmem:[%s12009_s16] sm:$0xff] }
0x164f   :  { %v2246_v10 = vsel %vm2119_vm8, %v2242_v31, -inf }
0x1650   :  { %2247 = vmax.xlane.f32.xlu0 %v2246_v10  ;;  %v2485_v10 = vld [vmem:[%s12009_s16 + $0x8] sm:$0xff] }
0x16db   :  { %v2245_v8 = vpop.xlane.xlu1 %2244 }
0x16dc   :  { %v2249_v21 = vsub.f32 %v2241_v53, %v2245_v8 }
0x16dd   :  { %v2248_v3 = vpop.xlane.xlu0 %2247 }
0x16de   :  { %v2251_v22 = vmul.f32 1.442695, %v2249_v21  ;;  %v2250_v45 = vsub.f32 %v2242_v31, %v2248_v3  ;;  %v2492_v31 = vld [vmem:[%s12009_s16 + $0x40] sm:$0xff]  ;;  %v2493_v21 = vld [vmem:[%s12009_s16 + $0x48] sm:$0xff] }
0x16df   :  { %v7730_v8 = vcombine.high %v2484_v9, %v2492_v31  ;;  %v7729_v3 = vcombine.low %v2484_v9, %v2492_v31  ;;  %v2511_v9 = vld [vmem:[%s12009_s16 + $0xd8] sm:$0xff] }
0x16e0   :  { %9426 = vpow2.f32 %v2251_v22  ;;  %v2253_v38 = vmul.f32 1.442695, %v2250_v45  ;;  %v7731_v22 = vcombine.low %v2485_v10, %v2493_v21  ;;  %v7732_v45 = vcombine.high %v2485_v10, %v2493_v21  ;;  %v2526_v21 = vld [vmem:[%s12009_s16 + $0x150] sm:$0xff] }
0x16e1   :  { %2955 = vmatprep.subr.bf16.mxu1 %v7730_v8  ;;  %v2518_v8 = vld [vmem:[%s12009_s16 + $0x110] sm:$0xff] }
0x16e2   :  { %9428 = vpow2.f32 %v2253_v38  ;;  %v2500_v38 = vld [vmem:[%s12009_s16 + $0x80] sm:$0xff] }
0x16ea   :  { %v9427_v30 = vpop.eup %9426 }
0x16eb   :  { %v2255_v5 = vsel %vm2119_vm8, %v9427_v30, 0.0 }
0x16ec   :  { %v9429_v63 = vpop.eup %9428  ;;  %2256 = vadd.xlane.f32.xlu1 %v2255_v5  ;;  %v2501_v5 = vld [vmem:[%s12009_s16 + $0x88] sm:$0xff] }
0x16ed   :  { %v2258_v27 = vsel %vm2119_vm8, %v9429_v63, 0.0 }
0x16ee   :  { %2259 = vadd.xlane.f32.xlu0 %v2258_v27  ;;  %v2509_v27 = vld [vmem:[%s12009_s16 + $0xc8] sm:$0xff] }
0x16fd   :  { %2267 = vrot.lane.b32.xlu1 %v10404_v32, %s9494_s5  ;;  %v9042_v32 = vld [vmem:[%s12007_s12] sm:$0xff]  }
0x1779   :  { %v2257_v15 = vpop.xlane.xlu1 %2256 }
0x177a   :  { %9430 = vrcp.f32 %v2257_v15  ;;  %v7747_v15 = vcombine.low %v2501_v5, %v2509_v27 }
0x177b   :  { %v2260_v49 = vpop.xlane.xlu0 %2259 }
0x177c   :  { %9432 = vrcp.f32 %v2260_v49  ;;  %v7748_v49 = vcombine.high %v2501_v5, %v2509_v27  ;;  %v2534_v27 = vld [vmem:[%s12009_s16 + $0x190] sm:$0xff] }
0x177d   :  { %v2268_v33 = vpop.permute.xlu1 %2267 }
0x177e   :  { %8912 = vmatpush3.bf16.msra.mxu0 %v2268_v33  ;;  %v2516_v33 = vld [vmem:[%s12009_s16 + $0x100] sm:$0xff] }
0x177f   :  { %8925 = vmatprep.subr.bf16.mxu0 %v9490_v0 }
0x1784   :  { %v9431_v16 = vpop.eup %9430 }
0x1785   :  { %v2263_v55 = vmul.f32 %v9431_v16, %v9427_v30  ;;  %v2508_v30 = vld [vmem:[%s12009_s16 + $0xc0] sm:$0xff] }
0x1786   :  { %v9433_v26 = vpop.eup %9432  ;;  %v7745_v35 = vcombine.low %v2500_v38, %v2508_v30  ;;  %v2524_v16 = vld [vmem:[%s12009_s16 + $0x140] sm:$0xff] }
0x1787   :  { %v2264_v28 = vmul.f32 %v9433_v26, %v9429_v63  ;;  %v7746_v63 = vcombine.high %v2500_v38, %v2508_v30  ;;  %v2517_v26 = vld [vmem:[%s12009_s16 + $0x108] sm:$0xff] }
0x1789   :  { %v2265_v11 = vpack.c.bf16 %v2264_v28, %v2263_v55  ;;  %v7762_v55 = vcombine.high %v2516_v33, %v2524_v16  ;;  %v2525_v28 = vld [vmem:[%s12009_s16 + $0x148] sm:$0xff] }
0x178b   :  { %8914 = vmatmul.mubr.msk.bf16.vlgmr.msra.gmra.mrb[64].mxu0 %vm2119_vm8, %v2265_v11  ;;  %v7763_v11 = vcombine.low %v2517_v26, %v2525_v28 }
0x178c   :  { %8926 = vmatpush3.bf16.msra.mxu0 %v9042_v32  ;;  %8929 = vmatprep.mubr.msk.bf16.mxu0 %vm9491_vm4, %v9490_v0  ;;  %v7761_v32 = vcombine.low %v2516_v33, %v2524_v16  ;;  %v7766_v33 = vcombine.high %v2518_v8, %v2526_v21 }
0x178d   :  { %8927 = vmatprep.subr.bf16.mxu0 %v9490_v0 }
0x1790   :  { %8928 = vmatpush3.bf16.msra.mxu0 %v9043_v44  ;;  %v7764_v44 = vcombine.high %v2517_v26, %v2525_v28  ;;  %v7765_v26 = vcombine.low %v2518_v8, %v2526_v21  ;;  %v2488_v28 = vld [vmem:[%s12009_s16 + $0x20] sm:$0xff] }
0x1791   :  { %2998 = vmatprep.subr.bf16.mxu0 %v7732_v45 }
0x1793   :  { %8930 = vmatmul.mubr.msk.bf16.vlgmr.msra.gmra.mrb[68].mxu0 %vm2067_vm5, %v2187_v40 }
0x1794   :  { %3030 = vmatprep.mubr.bf16.mxu0 %v9488_v1  ;;  %2999 = vmatpush1.bf16.msra.mxu0 %v7731_v22  ;;  %v2527_v22 = vld [vmem:[%s12009_s16 + $0x158] sm:$0xff] }
0x1795   :  { %3000 = vmatprep.subr.bf16.mxu0 %v7748_v49  ;;  %v2543_v49 = vld [vmem:[%s12009_s16 + $0x1d8] sm:$0xff] }
0x1798   :  { %3001 = vmatpush1.bf16.msra.mxu0 %v7747_v15  ;;  %v2535_v15 = vld [vmem:[%s12009_s16 + $0x198] sm:$0xff] }
0x1799   :  { %3002 = vmatprep.subr.bf16.mxu0 %v7764_v44  ;;  %v2497_v44 = vld [vmem:[%s12009_s16 + $0x68] sm:$0xff] }
0x179c   :  { %3003 = vmatpush1.bf16.msra.mxu0 %v7763_v11  ;;  %v2489_v11 = vld [vmem:[%s12009_s16 + $0x28] sm:$0xff] }
0x185e   :  { %v2307_v58 = vpop.f32.mrb[64].mxu0 }
0x185f   :  { %v8915_v41 = vpop.f32.mrb[65].mxu0 }
0x1860   :  { %v2310_v34 = vpop.f32.mrb[66].mxu0  ;;  %v2533_v41 = vld [vmem:[%s12009_s16 + $0x188] sm:$0xff] }
0x1861   :  { %v2314_v29 = vpack.c.bf16 %v2310_v34, %v2307_v58  ;;  %v8916_v46 = vpop.f32.mrb[67].mxu0  ;;  %v2540_v58 = vld [vmem:[%s12009_s16 + $0x1c0] sm:$0xff] }
0x1862   :  { %v7778_v34 = vcombine.high %v2532_v12, %v2540_v58  ;;  %v7777_v46 = vcombine.low %v2532_v12, %v2540_v58  ;;  %v7784_v58 = vcombine.high %v2535_v15, %v2543_v49 }
0x1863   :  { %8922 = vmatmul.mubr.msk.bf16.vlgmr.msra.gmra.mrb[52].mxu1 %vm2067_vm5, %v2314_v29  ;;  %v2541_v29 = vld [vmem:[%s12009_s16 + $0x1c8] sm:$0xff] }
0x1864   :  { %2987 = vmatprep.mubr.bf16.mxu1 %v9488_v1  ;;  %2956 = vmatpush1.bf16.msra.mxu1 %v7729_v3  ;;  %v2519_v3 = vld [vmem:[%s12009_s16 + $0x118] sm:$0xff] }
0x1865   :  { %2957 = vmatprep.subr.bf16.mxu1 %v7746_v63  ;;  %v7768_v16 = vcombine.high %v2519_v3, %v2527_v22 }
0x1866   :  { %v2420_v37 = vpop.f32.mrb[68].mxu0 }
0x1867   :  { %v8931_v47 = vpop.f32.mrb[69].mxu0 }
0x1868   :  { %v2423_v42 = vpop.f32.mrb[70].mxu0  ;;  %2958 = vmatpush1.bf16.msra.mxu1 %v7745_v35  ;;  %v7780_v47 = vcombine.high %v2533_v41, %v2541_v29  ;;  %v2542_v35 = vld [vmem:[%s12009_s16 + $0x1d0] sm:$0xff] }
0x1869   :  { %v8932_v23 = vpop.f32.mrb[71].mxu0  ;;  %2959 = vmatprep.subr.bf16.mxu1 %v7762_v55  ;;  %v7767_v55 = vcombine.low %v2519_v3, %v2527_v22  ;;  %v7782_v12 = vcombine.high %v2534_v27, %v2542_v35  ;;  %v2506_v3 = vld [vmem:[%s12009_s16 + $0xb0] sm:$0xff] }
0x186a   :  { %3004 = vmatprep.subr.bf16.mxu0 %v7780_v47  ;;  %v2494_v23 = vld [vmem:[%s12009_s16 + $0x50] sm:$0xff]  ;;  %v2513_v47 = vld [vmem:[%s12009_s16 + $0xe8] sm:$0xff] }
0x186b   :  { %v2514_v22 = vld [vmem:[%s12009_s16 + $0xf0] sm:$0xff] }
0x186c   :  { %2960 = vmatpush1.bf16.msra.mxu1 %v7761_v32  ;;  %v2496_v32 = vld [vmem:[%s12009_s16 + $0x60] sm:$0xff] }
0x186d   :  { %2961 = vmatprep.subr.bf16.mxu1 %v7778_v34  ;;  %v7783_v34 = vcombine.low %v2535_v15, %v2543_v49  ;;  %v2522_v15 = vld [vmem:[%s12009_s16 + $0x130] sm:$0xff] }
0x186e   :  { %v2530_v49 = vld [vmem:[%s12009_s16 + $0x170] sm:$0xff] }
0x1870   :  { %2962 = vmatpush1.bf16.msra.mxu1 %v7777_v46  ;;  %v2512_v46 = vld [vmem:[%s12009_s16 + $0xe0] sm:$0xff] }
0x1936   :  { %v2364_v14 = vpop.f32.mrb[52].mxu1 }
0x1937   :  { %v2421_v48 = vadd.f32 %v2420_v37, %v2364_v14  ;;  %v8923_v52 = vpop.f32.mrb[53].mxu1  ;;  %v7779_v37 = vcombine.low %v2533_v41, %v2541_v29  ;;  %v2487_v14 = vld [vmem:[%s12009_s16 + $0x18] sm:$0xff]  ;;  %v7781_v41 = vcombine.low %v2534_v27, %v2542_v35  ;;  %v2504_v29 = vld [vmem:[%s12009_s16 + $0xa0] sm:$0xff] }
0x1938   :  { %v2367_v25 = vpop.f32.mrb[54].mxu1  ;;  %v2495_v52 = vld [vmem:[%s12009_s16 + $0x58] sm:$0xff] }
0x1939   :  { %v2434_v56 = vadd.f32 %v7726_v24, %v2421_v48  ;;  %v2424_v57 = vadd.f32 %v2423_v42, %v2367_v25  ;;  %v8924_v59 = vpop.f32.mrb[55].mxu1  ;;  %v2486_v42 = vld [vmem:[%s12009_s16 + $0x10] sm:$0xff]  ;;  %3005 = vmatpush1.bf16.msra.mxu0 %v7779_v37  ;;  %v7735_v25 = vcombine.low %v2487_v14, %v2495_v52  ;;  %v2505_v37 = vld [vmem:[%s12009_s16 + $0xa8] sm:$0xff] }
0x193a   :  { %v7734_v48 = vcombine.high %v2486_v42, %v2494_v23 }
0x193b   :  { %v2435_v62 = vadd.f32 %v7726_v24, %v2424_v57  ;;  %v2438_v51 = vadd.f32 %v2434_v56, %v10386_v54  ;;  %v7733_v24 = vcombine.low %v2486_v42, %v2494_v23  ;;  %v7736_v56 = vcombine.high %v2487_v14, %v2495_v52  ;;  %v2528_v52 = vld [vmem:[%s12009_s16 + $0x160] sm:$0xff] }
0x193c   :  { %3041 = vmatprep.subr.bf16.mxu1 %v7734_v48  ;;  %v7738_v42 = vcombine.high %v2488_v28, %v2496_v32  ;;  %v7740_v23 = vcombine.high %v2489_v11, %v2497_v44  ;;  %v7737_v14 = vcombine.low %v2488_v28, %v2496_v32  ;;  %v2520_v48 = vld [vmem:[%s12009_s16 + $0x120] sm:$0xff]  ;;  %v7757_v28 = vcombine.low %v2506_v3, %v2514_v22 }
0x193d   :  { %v2440_v4 = vsel %vm255_vm2, %v2438_v51, 0.0  ;;  %v2439_v6 = vadd.f32 %v2435_v62, %v10388_v60  ;;  %3084 = vmatprep.subr.bf16.mxu0 %v7736_v56  ;;  %v2529_v56 = vld [vmem:[%s12009_s16 + $0x168] sm:$0xff] }
0x193e   :  { %2441 = vadd.xlane.f32.xlu0 %v2440_v4 }
0x193f   :  { %v2443_v40 = vsel %vm255_vm2, %v2439_v6, 0.0 }
0x1942   :  { %2444 = vadd.xlane.f32.xlu0 %v2443_v40 }
0x19cb   :  { %v2442_v61 = vpop.xlane.xlu0 %2441 }
0x19cc   :  { %v2447_v43 = vmul.f32 0.015625, %v2442_v61  ;;  %v7727_v61 = vld [vmem:[%s12011_s14] ss:$0 sm:$0xff] }
0x19ce   :  { %v10474_v2 = vsub.f32 %v2438_v51, %v2447_v43 }
0x19cf   :  { %v2445_v7 = vpop.xlane.xlu0 %2444 }
0x19d0   :  { %v2448_v36 = vmul.f32 0.015625, %v2445_v7  ;;  %v2451_v19 = vmul.f32 %v10474_v2, %v10474_v2 }
0x19d2   :  { %v10478_v39 = vsub.f32 %v2439_v6, %v2448_v36  ;;  %v2453_v54 = vsel %vm255_vm2, %v2451_v19, 0.0  ;;  %v7728_v36 = vld [vmem:[%s12012_s15] ss:$0 sm:$0xff] }
0x19d3   :  { %2454 = vadd.xlane.f32.xlu0 %v2453_v54 }
0x19d4   :  { %v2452_v60 = vmul.f32 %v10478_v39, %v10478_v39 }
0x19d6   :  { %v2456_v53 = vsel %vm255_vm2, %v2452_v60, 0.0  ;;  %v2502_v60 = vld [vmem:[%s12009_s16 + $0x90] sm:$0xff] }
0x19d7   :  { %2457 = vadd.xlane.f32.xlu0 %v2456_v53  ;;  %v2510_v53 = vld [vmem:[%s12009_s16 + $0xd0] sm:$0xff] }
0x19d8   :  { %v7750_v38 = vcombine.high %v2502_v60, %v2510_v53  ;;  %v7749_v5 = vcombine.low %v2502_v60, %v2510_v53  ;;  %v2498_v60 = vld [vmem:[%s12009_s16 + $0x70] sm:$0xff]  ;;  %v2491_v53 = vld [vmem:[%s12009_s16 + $0x38] sm:$0xff] }
0x1a60   :  { %v2455_v57 = vpop.xlane.xlu0 %2454 }
0x1a61   :  { %v2459_v59 = vmul.f32 0.015625, %v2455_v57  ;;  %v7754_v57 = vcombine.high %v2504_v29, %v2512_v46 }
0x1a63   :  { %v2461_v62 = vadd.f32 1e-05, %v2459_v59  ;;  %v7756_v59 = vcombine.high %v2505_v37, %v2513_v47 }
0x1a64   :  { %v2458_v51 = vpop.xlane.xlu0 %2457 }
0x1a65   :  { %9434 = vrsqrt.f32 %v2461_v62  ;;  %v2460_v4 = vmul.f32 0.015625, %v2458_v51  ;;  %v7753_v62 = vcombine.low %v2504_v29, %v2512_v46  ;;  %v7755_v51 = vcombine.low %v2505_v37, %v2513_v47 }
0x1a66   :  { %v7773_v29 = vcombine.low %v2522_v15, %v2530_v49 }
0x1a67   :  { %v2462_v6 = vadd.f32 1e-05, %v2460_v4  ;;  %v2536_v4 = vld [vmem:[%s12009_s16 + $0x1a0] sm:$0xff] }
0x1a69   :  { %9436 = vrsqrt.f32 %v2462_v6  ;;  %v2544_v6 = vld [vmem:[%s12009_s16 + $0x1e0] sm:$0xff] }
0x1a6a   :  { %v7785_v8 = vcombine.low %v2536_v4, %v2544_v6 }
0x1a6f   :  { %v9435_v40 = vpop.eup %9434 }
0x1a70   :  { %v2465_v43 = vmul.f32 %v9435_v40, %v10474_v2  ;;  %v2503_v2 = vld [vmem:[%s12009_s16 + $0x98] sm:$0xff]  ;;  %v2537_v40 = vld [vmem:[%s12009_s16 + $0x1a8] sm:$0xff] }
0x1a71   :  { %v7752_v30 = vcombine.high %v2503_v2, %v2511_v9  ;;  %v7751_v63 = vcombine.low %v2503_v2, %v2511_v9  ;;  %v2499_v2 = vld [vmem:[%s12009_s16 + $0x78] sm:$0xff]  ;;  %v7786_v9 = vcombine.high %v2536_v4, %v2544_v6  ;;  %v9056_v4 = vld [vmem:[%s12010_s18 + $0x10] sm:$0xff]  }
0x1a72   :  { %v2473_v19 = vmul.f32 %v7727_v61, %v2465_v43  ;;  %v7770_v43 = vcombine.high %v2520_v48, %v2528_v52  ;;  %v7743_v35 = vcombine.low %v2491_v53, %v2499_v2  ;;  %v9058_v6 = vld [vmem:[%s12010_s18 + $0x58] sm:$0xff]  }
0x1a73   :  { %v9437_v7 = vpop.eup %9436 }
0x1a74   :  { %v2466_v54 = vmul.f32 %v9437_v7, %v10478_v39  ;;  %v10564_v10 = vadd.f32 %v7728_v36, %v2473_v19 }
0x1a76   :  { %v2474_v31 = vmul.f32 %v7727_v61, %v2466_v54  ;;  %v2545_v61 = vld [vmem:[%s12009_s16 + $0x1e8] sm:$0xff]  ;;  %v2490_v54 = vld [vmem:[%s12009_s16 + $0x30] sm:$0xff] }
0x1a77   :  { %v7787_v21 = vcombine.low %v2537_v40, %v2545_v61  ;;  %v7741_v27 = vcombine.low %v2490_v54, %v2498_v60 }
0x1a78   :  { %v10566_v39 = vadd.f32 %v7728_v36, %v2474_v31  ;;  %v7769_v36 = vcombine.low %v2520_v48, %v2528_v52  ;;  %v7788_v31 = vcombine.high %v2537_v40, %v2545_v61  ;;  %v9048_v48 = vld [vmem:[%s12010_s18] sm:$0xff]   ;;  %v9059_v40 = vld [vmem:[%s12010_s18 + $0xd8] sm:$0xff]  }
0x1a79   :  { %v9049_v52 = vld [vmem:[%s12010_s18 + $0x80] sm:$0xff]   ;;  %v9060_v61 = vld [vmem:[%s12010_s18 + $0x18] sm:$0xff]  }
0x1a7a   :  { %v10582_v45 = vpack.c.bf16 %v10566_v39, %v10564_v10 }
0x1a7c   :  { %7793 = vmatmul.mubr.msk.bf16.vlgmr.msra.gmra.mrb[56].mxu1 %vm255_vm2, %v10582_v45  ;;  %7794 = vmatmul.mubr.msk.bf16.vlgmr.msra.gmra.mrb[72].mxu0 %vm255_vm2, %v10582_v45 }
0x1a7d   :  { %3042 = vmatpush1.bf16.msra.mxu1 %v7733_v24  ;;  %3085 = vmatpush1.bf16.msra.mxu0 %v7735_v25  ;;  %v7739_v24 = vcombine.low %v2489_v11, %v2497_v44  ;;  %v2521_v25 = vld [vmem:[%s12009_s16 + $0x128] sm:$0xff]  ;;  %v2538_v11 = vld [vmem:[%s12009_s16 + $0x1b0] sm:$0xff] }
0x1a7e   :  { %3043 = vmatprep.subr.bf16.mxu1 %v7750_v38  ;;  %3086 = vmatprep.subr.bf16.mxu0 %v7752_v30  ;;  %v7772_v7 = vcombine.high %v2521_v25, %v2529_v56  ;;  %v7771_v19 = vcombine.low %v2521_v25, %v2529_v56  ;;  %v2507_v38 = vld [vmem:[%s12009_s16 + $0xb8] sm:$0xff]  ;;  %v2546_v44 = vld [vmem:[%s12009_s16 + $0x1f0] sm:$0xff]  ;;  %v9050_v25 = vld [vmem:[%s12010_s18 + $0x48] sm:$0xff]  }
0x1a7f   :  { %3073 = vmatprep.mubr.bf16.mxu1 %v9488_v1  ;;  %3116 = vmatprep.mubr.bf16.mxu0 %v9488_v1  ;;  %v2515_v30 = vld [vmem:[%s12009_s16 + $0xf8] sm:$0xff]  ;;  %v7790_v37 = vcombine.high %v2538_v11, %v2546_v44  ;;  %v9051_v56 = vld [vmem:[%s12010_s18 + $0xc8] sm:$0xff]  }
0x1a80   :  { %v7759_v32 = vcombine.low %v2507_v38, %v2515_v30 }
0x1a81   :  { %3044 = vmatpush1.bf16.msra.mxu1 %v7749_v5  ;;  %3087 = vmatpush1.bf16.msra.mxu0 %v7751_v63  ;;  %v7742_v5 = vcombine.high %v2490_v54, %v2498_v60  ;;  %v7744_v63 = vcombine.high %v2491_v53, %v2499_v2  ;;  %v9065_v54 = vld [vmem:[%s12010_s18 + $0xa0] sm:$0xff]   ;;  %v9066_v60 = vld [vmem:[%s12010_s18 + $0x68] sm:$0xff]  }
0x1a82   :  { %3045 = vmatprep.subr.bf16.mxu1 %v7766_v33  ;;  %3088 = vmatprep.subr.bf16.mxu0 %v7768_v16  ;;  %v2523_v33 = vld [vmem:[%s12009_s16 + $0x138] sm:$0xff]  ;;  %v9067_v53 = vld [vmem:[%s12010_s18 + $0xe8] sm:$0xff]  }
0x1a83   :  { %v2531_v16 = vld [vmem:[%s12009_s16 + $0x178] sm:$0xff]  ;;  %v9068_v2 = vld [vmem:[%s12010_s18 + $0x28] sm:$0xff]  }
0x1a84   :  { %v7775_v46 = vcombine.low %v2523_v33, %v2531_v16 }
0x1a85   :  { %3046 = vmatpush1.bf16.msra.mxu1 %v7765_v26  ;;  %3089 = vmatpush1.bf16.msra.mxu0 %v7767_v55  ;;  %v7758_v26 = vcombine.high %v2506_v3, %v2514_v22  ;;  %v7760_v55 = vcombine.high %v2507_v38, %v2515_v30  ;;  %v9073_v3 = vld [vmem:[%s12010_s18 + $0xb0] sm:$0xff]   ;;  %v9074_v22 = vld [vmem:[%s12010_s18 + $0x78] sm:$0xff]  }
0x1a86   :  { %3047 = vmatprep.subr.bf16.mxu1 %v7782_v12  ;;  %3090 = vmatprep.subr.bf16.mxu0 %v7784_v58  ;;  %v2539_v12 = vld [vmem:[%s12009_s16 + $0x1b8] sm:$0xff] }
0x1a87   :  { %v2547_v58 = vld [vmem:[%s12009_s16 + $0x1f8] sm:$0xff] }
0x1a88   :  { %v7792_v47 = vcombine.high %v2539_v12, %v2547_v58  ;;  %v9075_v38 = vld [vmem:[%s12010_s18 + $0xf8] sm:$0xff]  }
0x1a89   :  { %3048 = vmatpush1.bf16.msra.mxu1 %v7781_v41  ;;  %3091 = vmatpush1.bf16.msra.mxu0 %v7783_v34  ;;  %v7774_v41 = vcombine.high %v2522_v15, %v2530_v49  ;;  %v7776_v34 = vcombine.high %v2523_v33, %v2531_v16  ;;  %v9076_v30 = vld [vmem:[%s12010_s18 + $0x38] sm:$0xff]   ;;  %v2548_v15 = vld [vmem:[%s12013_s17] sm:$0xff]  ;;  %v10823_v49 = vsub.s32 3, %v9683_v17 }
0x1a8a   :  { %3127 = vmatprep.subr.bf16.mxu1 %v7738_v42  ;;  %3170 = vmatprep.subr.bf16.mxu0 %v7740_v23  ;;  %v9046_v42 = vld [vmem:[%s12010_s18 + $0x40] sm:$0xff]   ;;  %v2555_v33 = vrot.slane %v2548_v15, %v9686_v18 }
0x1a8b   :  { %v9047_v23 = vld [vmem:[%s12010_s18 + $0xc0] sm:$0xff]  }
0x1a8c   :  { %7795 = vmatmul.mubr.msk.bf16.vlgmr.msra.gmra.mrb[60].mxu1 %vm255_vm2, %v10582_v45  ;;  %7796 = vmatmul.mubr.msk.bf16.vlgmr.msra.gmra.mrb[76].mxu0 %vm255_vm2, %v10582_v45 }
0x1a8d   :  { %3128 = vmatpush1.bf16.msra.mxu1 %v7737_v14  ;;  %3171 = vmatpush1.bf16.msra.mxu0 %v7739_v24  ;;  %v7789_v14 = vcombine.low %v2538_v11, %v2546_v44  ;;  %v7791_v24 = vcombine.low %v2539_v12, %v2547_v58 }
0x1a8e   :  { %3129 = vmatprep.subr.bf16.mxu1 %v7754_v57  ;;  %3172 = vmatprep.subr.bf16.mxu0 %v7756_v59  ;;  %v9052_v57 = vld [vmem:[%s12010_s18 + $0x8] sm:$0xff]  }
0x1a8f   :  { %3159 = vmatprep.mubr.bf16.mxu1 %v9488_v1  ;;  %3202 = vmatprep.mubr.bf16.mxu0 %v9488_v1  ;;  %v9053_v59 = vld [vmem:[%s12010_s18 + $0x88] sm:$0xff]  }
0x1a91   :  { %3130 = vmatpush1.bf16.msra.mxu1 %v7753_v62  ;;  %3173 = vmatpush1.bf16.msra.mxu0 %v7755_v51  ;;  %v9054_v62 = vld [vmem:[%s12010_s18 + $0x50] sm:$0xff]  }
0x1a92   :  { %3131 = vmatprep.subr.bf16.mxu1 %v7770_v43  ;;  %3174 = vmatprep.subr.bf16.mxu0 %v7772_v7  ;;  %v9055_v51 = vld [vmem:[%s12010_s18 + $0xd0] sm:$0xff]   ;;  %v9061_v43 = vld [vmem:[%s12010_s18 + $0x98] sm:$0xff]   ;;  %v9062_v7 = vld [vmem:[%s12010_s18 + $0x60] sm:$0xff]  }
0x1a95   :  { %3132 = vmatpush1.bf16.msra.mxu1 %v7769_v36  ;;  %3175 = vmatpush1.bf16.msra.mxu0 %v7771_v19  ;;  %v9063_v36 = vld [vmem:[%s12010_s18 + $0xe0] sm:$0xff]  }
0x1a96   :  { %3133 = vmatprep.subr.bf16.mxu1 %v7786_v9  ;;  %3176 = vmatprep.subr.bf16.mxu0 %v7788_v31  ;;  %v9064_v19 = vld [vmem:[%s12010_s18 + $0x20] sm:$0xff]   ;;  %v9069_v9 = vld [vmem:[%s12010_s18 + $0xa8] sm:$0xff]   ;;  %v9070_v31 = vld [vmem:[%s12010_s18 + $0x70] sm:$0xff]  }
0x1a99   :  { %3134 = vmatpush1.bf16.msra.mxu1 %v7785_v8  ;;  %3177 = vmatpush1.bf16.msra.mxu0 %v7787_v21  ;;  %v9071_v8 = vld [vmem:[%s12010_s18 + $0xf0] sm:$0xff]  }
0x1a9a   :  { %3213 = vmatprep.subr.bf16.mxu1 %v7742_v5  ;;  %3256 = vmatprep.subr.bf16.mxu0 %v7744_v63  ;;  %v9072_v21 = vld [vmem:[%s12010_s18 + $0x30] sm:$0xff]   ;;  %v9077_v5 = vld [vmem:[%s12010_s18 + $0xb8] sm:$0xff]   ;;  %v9078_v63 = vld [vmem:[%s12010_s18 + $0x140] sm:$0xff]  }
0x1a9c   :  { %7797 = vmatmul.mubr.msk.bf16.vlgmr.msra.gmra.mrb[64].mxu1 %vm255_vm2, %v10582_v45  ;;  %7798 = vmatmul.mubr.msk.bf16.vlgmr.msra.gmra.mrb[80].mxu0 %vm255_vm2, %v10582_v45 }
0x1a9d   :  { %3214 = vmatpush1.bf16.msra.mxu1 %v7741_v27  ;;  %3257 = vmatpush1.bf16.msra.mxu0 %v7743_v35  ;;  %v9079_v27 = vld [vmem:[%s12010_s18 + $0x1c0] sm:$0xff]   ;;  %v10817_v35 = vsub.s32 2, %v9683_v17 }
0x1a9e   :  { %3215 = vmatprep.subr.bf16.mxu1 %v7758_v26  ;;  %3258 = vmatprep.subr.bf16.mxu0 %v7760_v55  ;;  %v2559_v26 = vrot.slane %v2548_v15, %v9692_v20  ;;  %v2567_v55 = vrot.slane %v2548_v15, %v10823_v49 }
0x1a9f   :  { %3245 = vmatprep.mubr.bf16.mxu1 %v9488_v1  ;;  %3288 = vmatprep.mubr.bf16.mxu0 %v9488_v1  ;;  %v2563_v16 = vrot.slane %v2548_v15, %v10817_v35 }
0x1aa1   :  { %3216 = vmatpush1.bf16.msra.mxu1 %v7757_v28  ;;  %3259 = vmatpush1.bf16.msra.mxu0 %v7759_v32 }
0x1aa2   :  { %3217 = vmatprep.subr.bf16.mxu1 %v7774_v41  ;;  %3260 = vmatprep.subr.bf16.mxu0 %v7776_v34 }
0x1aa5   :  { %3218 = vmatpush1.bf16.msra.mxu1 %v7773_v29  ;;  %3261 = vmatpush1.bf16.msra.mxu0 %v7775_v46 }
0x1aa6   :  { %3219 = vmatprep.subr.bf16.mxu1 %v7790_v37  ;;  %3262 = vmatprep.subr.bf16.mxu0 %v7792_v47 }
0x1aa9   :  { %3220 = vmatpush1.bf16.msra.mxu1 %v7789_v14  ;;  %3263 = vmatpush1.bf16.msra.mxu0 %v7791_v24 }
0x1aaa   :  { %8522 = vmatprep.subr.bf16.mxu1 %v9046_v42  ;;  %8544 = vmatprep.subr.bf16.mxu0 %v9047_v23 }
0x1aac   :  { %7799 = vmatmul.mubr.msk.bf16.vlgmr.msra.gmra.mrb[68].mxu1 %vm255_vm2, %v10582_v45  ;;  %7800 = vmatmul.mubr.msk.bf16.vlgmr.msra.gmra.mrb[84].mxu0 %vm255_vm2, %v10582_v45  ;;  %v9057_v45 = vld [vmem:[%s12010_s18 + $0x90] sm:$0xff]  }
0x1aad   :  { %8523 = vmatpush3.bf16.msra.mxu1 %v9048_v48  ;;  %8545 = vmatpush3.bf16.msra.mxu0 %v9049_v52 }
0x1aae   :  { %8524 = vmatprep.subr.bf16.mxu1 %v9050_v25  ;;  %8546 = vmatprep.subr.bf16.mxu0 %v9051_v56 }
0x1ab1   :  { %8525 = vmatpush3.bf16.msra.mxu1 %v9052_v57  ;;  %8547 = vmatpush3.bf16.msra.mxu0 %v9053_v59 }
0x1ab2   :  { %8526 = vmatprep.subr.bf16.mxu1 %v9054_v62  ;;  %8548 = vmatprep.subr.bf16.mxu0 %v9055_v51 }
0x1ab5   :  { %8527 = vmatpush3.bf16.msra.mxu1 %v9056_v4  ;;  %8549 = vmatpush3.bf16.msra.mxu0 %v9057_v45 }
0x1ab6   :  { %8528 = vmatprep.subr.bf16.mxu1 %v9058_v6  ;;  %8550 = vmatprep.subr.bf16.mxu0 %v9059_v40 }
0x1ab9   :  { %8529 = vmatpush3.bf16.msra.mxu1 %v9060_v61  ;;  %8551 = vmatpush3.bf16.msra.mxu0 %v9061_v43  ;;  %v9080_v61 = vld [vmem:[%s12010_s18 + $0x100] sm:$0xff]  }
0x1aba   :  { %8530 = vmatprep.subr.bf16.mxu1 %v9062_v7  ;;  %8552 = vmatprep.subr.bf16.mxu0 %v9063_v36  ;;  %v9081_v43 = vld [vmem:[%s12010_s18 + $0x180] sm:$0xff]   ;;  %v9082_v7 = vld [vmem:[%s12010_s18 + $0x148] sm:$0xff]  }
0x1abb   :  { %v9083_v36 = vld [vmem:[%s12010_s18 + $0x1c8] sm:$0xff]  }
0x1abd   :  { %8531 = vmatpush3.bf16.msra.mxu1 %v9064_v19  ;;  %8553 = vmatpush3.bf16.msra.mxu0 %v9065_v54  ;;  %v10842_v19 = vsub.s32 4, %v9683_v17  ;;  %v10845_v54 = vsub.s32 6, %v9683_v17 }
0x1abe   :  { %8532 = vmatprep.subr.bf16.mxu1 %v9066_v60  ;;  %8554 = vmatprep.subr.bf16.mxu0 %v9067_v53  ;;  %v10848_v60 = vsub.s32 5, %v9683_v17  ;;  %v10851_v53 = vsub.s32 7, %v9683_v17  ;;  %v9086_v17 = vld [vmem:[%s12010_s18 + $0x150] sm:$0xff]  }
0x1ac1   :  { %8533 = vmatpush3.bf16.msra.mxu1 %v9068_v2  ;;  %8555 = vmatpush3.bf16.msra.mxu0 %v9069_v9  ;;  %v9084_v2 = vld [vmem:[%s12010_s18 + $0x108] sm:$0xff]  }
0x1ac2   :  { %8534 = vmatprep.subr.bf16.mxu1 %v9070_v31  ;;  %8556 = vmatprep.subr.bf16.mxu0 %v9071_v8  ;;  %v9085_v9 = vld [vmem:[%s12010_s18 + $0x188] sm:$0xff]   ;;  %v2571_v31 = vrot.slane %v2548_v15, %v10842_v19  ;;  %v2579_v8 = vrot.slane %v2548_v15, %v10845_v54 }
0x1ac5   :  { %8535 = vmatpush3.bf16.msra.mxu1 %v9072_v21  ;;  %8557 = vmatpush3.bf16.msra.mxu0 %v9073_v3  ;;  %v9087_v21 = vld [vmem:[%s12010_s18 + $0x1d0] sm:$0xff]   ;;  %v2575_v3 = vrot.slane %v2548_v15, %v10848_v60 }
0x1ac6   :  { %8536 = vmatprep.subr.bf16.mxu1 %v9074_v22  ;;  %8558 = vmatprep.subr.bf16.mxu0 %v9075_v38  ;;  %v2583_v22 = vrot.slane %v2548_v15, %v10851_v53  ;;  %v9090_v15 = vld [vmem:[%s12010_s18 + $0x158] sm:$0xff]  }
0x1ac9   :  { %8537 = vmatpush3.bf16.msra.mxu1 %v9076_v30  ;;  %8559 = vmatpush3.bf16.msra.mxu0 %v9077_v5  ;;  %v9088_v5 = vld [vmem:[%s12010_s18 + $0x110] sm:$0xff]  }
0x1aca   :  { %8566 = vmatprep.subr.bf16.mxu1 %v9078_v63  ;;  %8588 = vmatprep.subr.bf16.mxu0 %v9079_v27  ;;  %v9089_v63 = vld [vmem:[%s12010_s18 + $0x190] sm:$0xff]  }
0x1b4f   :  { %v2989_v28 = vpop.f32.mrb[56].mxu1  ;;  %v3032_v32 = vpop.f32.mrb[72].mxu0 }
0x1b50   :  { %v2990_v11 = vadd.f32 %v2989_v28, %v2555_v33  ;;  %v3033_v44 = vadd.f32 %v3032_v32, %v2563_v16  ;;  %v2991_v12 = vpop.f32.mrb[57].mxu1  ;;  %v3034_v58 = vpop.f32.mrb[73].mxu0 }
0x1b51   :  { %v2992_v41 = vadd.f32 %v2991_v12, %v2559_v26  ;;  %v3035_v34 = vadd.f32 %v3034_v58, %v2567_v55  ;;  %v2993_v29 = vpop.f32.mrb[58].mxu1  ;;  %v3036_v46 = vpop.f32.mrb[74].mxu0 }
0x1b52   :  { %v2994_v37 = vadd.f32 %v2993_v29, %v2555_v33  ;;  %v3037_v47 = vadd.f32 %v3036_v46, %v2563_v16  ;;  %v2995_v42 = vpop.f32.mrb[59].mxu1  ;;  %v3038_v23 = vpop.f32.mrb[75].mxu0  ;;  %v3299_v48 = vmax.f32 %v2990_v11, 0.0  ;;  %v3301_v52 = vmax.f32 %v3033_v44, 0.0 }
0x1b53   :  { %v2996_v14 = vadd.f32 %v2995_v42, %v2559_v26  ;;  %v3039_v24 = vadd.f32 %v3038_v23, %v2567_v55  ;;  %v3300_v57 = vmax.f32 %v2992_v41, 0.0  ;;  %v3302_v59 = vmax.f32 %v3035_v34, 0.0  ;;  %v9091_v55 = vld [vmem:[%s12010_s18 + $0x1d8] sm:$0xff]  }
0x1b54   :  { %v3315_v25 = vmax.f32 %v2994_v37, 0.0  ;;  %v3317_v56 = vmax.f32 %v3037_v47, 0.0  ;;  %v9092_v37 = vld [vmem:[%s12010_s18 + $0x118] sm:$0xff]  }
0x1b55   :  { %v3316_v62 = vmax.f32 %v2996_v14, 0.0  ;;  %v3318_v51 = vmax.f32 %v3039_v24, 0.0  ;;  %v9093_v47 = vld [vmem:[%s12010_s18 + $0x198] sm:$0xff]  }
0x1b56   :  { %v3331_v4 = vpack.c.bf16 %v3315_v25, %v3299_v48  ;;  %v3333_v45 = vpack.c.bf16 %v3317_v56, %v3301_v52  ;;  %v9094_v48 = vld [vmem:[%s12010_s18 + $0x160] sm:$0xff]  }
0x1b57   :  { %v3332_v6 = vpack.c.bf16 %v3316_v62, %v3300_v57  ;;  %v3334_v40 = vpack.c.bf16 %v3318_v51, %v3302_v59  ;;  %v9095_v52 = vld [vmem:[%s12010_s18 + $0x1e0] sm:$0xff]  }
0x1b59   :  { %4410 = vmatprep.mubr.bf16.mxu1 %v3332_v6  ;;  %4451 = vmatprep.mubr.bf16.mxu0 %v3334_v40  ;;  %v9096_v6 = vld [vmem:[%s12010_s18 + $0x120] sm:$0xff]  }
0x1b5a   :  { %4411 = vmatmul.mubr.bf16.vlgmr.msra.gmra.mrb[72].mxu1 %v3331_v4  ;;  %4452 = vmatmul.mubr.bf16.vlgmr.msra.gmra.mrb[88].mxu0 %v3333_v45  ;;  %v9097_v40 = vld [vmem:[%s12010_s18 + $0x1a0] sm:$0xff]  }
0x1b5b   :  { %8567 = vmatpush3.bf16.msra.mxu1 %v9080_v61  ;;  %8589 = vmatpush3.bf16.msra.mxu0 %v9081_v43  ;;  %v9098_v61 = vld [vmem:[%s12010_s18 + $0x168] sm:$0xff]  }
0x1b5c   :  { %8568 = vmatprep.subr.bf16.mxu1 %v9082_v7  ;;  %8590 = vmatprep.subr.bf16.mxu0 %v9083_v36  ;;  %v9099_v43 = vld [vmem:[%s12010_s18 + $0x1e8] sm:$0xff]  }
0x1b5d   :  { %v10912_v7 = vld [vmem:[%s12013_s17 + $0x8] sm:$0xff] }
0x1b5e   :  { %v9100_v36 = vld [vmem:[%s12010_s18 + $0x128] sm:$0xff]  }
0x1b5f   :  { %v3075_v38 = vpop.f32.mrb[60].mxu1  ;;  %v3118_v30 = vpop.f32.mrb[76].mxu0  ;;  %8569 = vmatpush3.bf16.msra.mxu1 %v9084_v2  ;;  %8591 = vmatpush3.bf16.msra.mxu0 %v9085_v9  ;;  %v9101_v2 = vld [vmem:[%s12010_s18 + $0x1a8] sm:$0xff]   ;;  %v2587_v9 = vrot.slane %v10912_v7, %v9686_v18 }
0x1b60   :  { %v3076_v27 = vadd.f32 %v3075_v38, %v2571_v31  ;;  %v3119_v33 = vadd.f32 %v3118_v30, %v2579_v8  ;;  %v3077_v16 = vpop.f32.mrb[61].mxu1  ;;  %v3120_v26 = vpop.f32.mrb[77].mxu0  ;;  %8570 = vmatprep.subr.bf16.mxu1 %v9086_v17  ;;  %8592 = vmatprep.subr.bf16.mxu0 %v9087_v21  ;;  %v9103_v17 = vld [vmem:[%s12010_s18 + $0x1f0] sm:$0xff]   ;;  %v2591_v21 = vrot.slane %v10912_v7, %v9692_v20 }
0x1b61   :  { %v3078_v28 = vadd.f32 %v3077_v16, %v2575_v3  ;;  %v3121_v32 = vadd.f32 %v3120_v26, %v2583_v22  ;;  %v3079_v11 = vpop.f32.mrb[62].mxu1  ;;  %v3122_v44 = vpop.f32.mrb[78].mxu0  ;;  %v9104_v30 = vld [vmem:[%s12010_s18 + $0x130] sm:$0xff]   ;;  %v9106_v26 = vld [vmem:[%s12010_s18 + $0x178] sm:$0xff]  }
0x1b62   :  { %v3080_v12 = vadd.f32 %v3079_v11, %v2571_v31  ;;  %v3123_v58 = vadd.f32 %v3122_v44, %v2579_v8  ;;  %v3081_v41 = vpop.f32.mrb[63].mxu1  ;;  %v3124_v34 = vpop.f32.mrb[79].mxu0  ;;  %v3303_v42 = vmax.f32 %v3076_v27, 0.0  ;;  %v3305_v23 = vmax.f32 %v3119_v33, 0.0  ;;  %v9102_v8 = vld [vmem:[%s12010_s18 + $0x170] sm:$0xff]  }
0x1b63   :  { %v3082_v29 = vadd.f32 %v3081_v41, %v2575_v3  ;;  %v3125_v46 = vadd.f32 %v3124_v34, %v2583_v22  ;;  %8571 = vmatpush3.bf16.msra.mxu1 %v9088_v5  ;;  %8593 = vmatpush3.bf16.msra.mxu0 %v9089_v63  ;;  %v3304_v25 = vmax.f32 %v3078_v28, 0.0  ;;  %v3306_v56 = vmax.f32 %v3121_v32, 0.0  ;;  %v9105_v5 = vld [vmem:[%s12010_s18 + $0x1b0] sm:$0xff]  }
0x1b64   :  { %v3319_v14 = vmax.f32 %v3080_v12, 0.0  ;;  %v3321_v24 = vmax.f32 %v3123_v58, 0.0  ;;  %8572 = vmatprep.subr.bf16.mxu1 %v9090_v15  ;;  %8594 = vmatprep.subr.bf16.mxu0 %v9091_v55  ;;  %v2595_v31 = vrot.slane %v10912_v7, %v10817_v35  ;;  %v2599_v3 = vrot.slane %v10912_v7, %v10823_v49  ;;  %v9107_v15 = vld [vmem:[%s12010_s18 + $0x1f8] sm:$0xff]  }
0x1b65   :  { %v3320_v57 = vmax.f32 %v3082_v29, 0.0  ;;  %v3322_v59 = vmax.f32 %v3125_v46, 0.0  ;;  %v9108_v46 = vld [vmem:[%s12010_s18 + $0x138] sm:$0xff]  }
0x1b66   :  { %v10893_v62 = vpack.c.bf16 %v3319_v14, %v3303_v42  ;;  %v10895_v51 = vpack.c.bf16 %v3321_v24, %v3305_v23  ;;  %v9110_v24 = vld [vmem:[%s12010_s18 + $0x240] sm:$0xff]  }
0x1b67   :  { %v3336_v4 = vpack.c.bf16 %v3320_v57, %v3304_v25  ;;  %v3338_v45 = vpack.c.bf16 %v3322_v59, %v3306_v56  ;;  %8573 = vmatpush3.bf16.msra.mxu1 %v9092_v37  ;;  %8595 = vmatpush3.bf16.msra.mxu0 %v9093_v47  ;;  %v9109_v37 = vld [vmem:[%s12010_s18 + $0x1b8] sm:$0xff]  }
0x1b68   :  { %8574 = vmatprep.subr.bf16.mxu1 %v9094_v48  ;;  %8596 = vmatprep.subr.bf16.mxu0 %v9095_v52  ;;  %v9111_v48 = vld [vmem:[%s12010_s18 + $0x2c0] sm:$0xff]  }
0x1b69   :  { %4492 = vmatprep.mubr.bf16.mxu1 %v3336_v4  ;;  %4533 = vmatprep.mubr.bf16.mxu0 %v3338_v45 }
0x1b6b   :  { %8575 = vmatpush3.bf16.msra.mxu1 %v9096_v6  ;;  %8597 = vmatpush3.bf16.msra.mxu0 %v9097_v40  ;;  %v9112_v40 = vld [vmem:[%s12010_s18 + $0x200] sm:$0xff]  }
0x1b6c   :  { %8576 = vmatprep.subr.bf16.mxu1 %v9098_v61  ;;  %8598 = vmatprep.subr.bf16.mxu0 %v9099_v43  ;;  %v9113_v61 = vld [vmem:[%s12010_s18 + $0x280] sm:$0xff]   ;;  %v9114_v43 = vld [vmem:[%s12010_s18 + $0x248] sm:$0xff]  }
0x1b6f   :  { %v3161_v22 = vpop.f32.mrb[64].mxu1  ;;  %v3204_v38 = vpop.f32.mrb[80].mxu0  ;;  %8577 = vmatpush3.bf16.msra.mxu1 %v9100_v36  ;;  %8599 = vmatpush3.bf16.msra.mxu0 %v9101_v2  ;;  %v9115_v36 = vld [vmem:[%s12010_s18 + $0x2c8] sm:$0xff]  }
0x1b70   :  { %v3162_v63 = vadd.f32 %v3161_v22, %v2587_v9  ;;  %v3205_v27 = vadd.f32 %v3204_v38, %v2595_v31  ;;  %v3163_v33 = vpop.f32.mrb[65].mxu1  ;;  %v3206_v16 = vpop.f32.mrb[81].mxu0  ;;  %8578 = vmatprep.subr.bf16.mxu1 %v9102_v8  ;;  %8600 = vmatprep.subr.bf16.mxu0 %v9103_v17  ;;  %v9116_v2 = vld [vmem:[%s12010_s18 + $0x208] sm:$0xff]   ;;  %v2607_v8 = vrot.slane %v10912_v7, %v10848_v60  ;;  %v9120_v38 = vld [vmem:[%s12010_s18 + $0x210] sm:$0xff]  }
0x1b71   :  { %v3164_v55 = vadd.f32 %v3163_v33, %v2591_v21  ;;  %v3207_v28 = vadd.f32 %v3206_v16, %v2599_v3  ;;  %v3165_v32 = vpop.f32.mrb[66].mxu1  ;;  %v3208_v11 = vpop.f32.mrb[82].mxu0  ;;  %v2615_v17 = vrot.slane %v10912_v7, %v10851_v53  ;;  %v9122_v33 = vld [vmem:[%s12010_s18 + $0x258] sm:$0xff]  }
0x1b72   :  { %v3166_v44 = vadd.f32 %v3165_v32, %v2587_v9  ;;  %v3209_v12 = vadd.f32 %v3208_v11, %v2595_v31  ;;  %v3167_v58 = vpop.f32.mrb[67].mxu1  ;;  %v3210_v41 = vpop.f32.mrb[83].mxu0  ;;  %v3307_v47 = vmax.f32 %v3162_v63, 0.0  ;;  %v3309_v42 = vmax.f32 %v3205_v27, 0.0 }
0x1b73   :  { %v3168_v34 = vadd.f32 %v3167_v58, %v2591_v21  ;;  %v3211_v29 = vadd.f32 %v3210_v41, %v2599_v3  ;;  %8579 = vmatpush3.bf16.msra.mxu1 %v9104_v30  ;;  %8601 = vmatpush3.bf16.msra.mxu0 %v9105_v5  ;;  %v3308_v52 = vmax.f32 %v3164_v55, 0.0  ;;  %v3310_v25 = vmax.f32 %v3207_v28, 0.0  ;;  %v9119_v21 = vld [vmem:[%s12010_s18 + $0x2d0] sm:$0xff]   ;;  %v9123_v28 = vld [vmem:[%s12010_s18 + $0x2d8] sm:$0xff]  }
0x1b74   :  { %v3323_v23 = vmax.f32 %v3166_v44, 0.0  ;;  %v3325_v14 = vmax.f32 %v3209_v12, 0.0  ;;  %8580 = vmatprep.subr.bf16.mxu1 %v9106_v26  ;;  %8602 = vmatprep.subr.bf16.mxu0 %v9107_v15  ;;  %v2603_v9 = vrot.slane %v10912_v7, %v10842_v19  ;;  %v2611_v31 = vrot.slane %v10912_v7, %v10845_v54  ;;  %v9121_v7 = vld [vmem:[%s12010_s18 + $0x290] sm:$0xff]  }
0x1b75   :  { %v3324_v56 = vmax.f32 %v3168_v34, 0.0  ;;  %v3326_v57 = vmax.f32 %v3211_v29, 0.0  ;;  %v9124_v34 = vld [vmem:[%s12010_s18 + $0x218] sm:$0xff]  }
0x1b76   :  { %v10958_v59 = vpack.c.bf16 %v3323_v23, %v3307_v47  ;;  %v10960_v4 = vpack.c.bf16 %v3325_v14, %v3309_v42  ;;  %v9125_v42 = vld [vmem:[%s12010_s18 + $0x298] sm:$0xff]   ;;  %v9126_v23 = vld [vmem:[%s12010_s18 + $0x260] sm:$0xff]  }
0x1b77   :  { %v3340_v45 = vpack.c.bf16 %v3324_v56, %v3308_v52  ;;  %v3342_v6 = vpack.c.bf16 %v3326_v57, %v3310_v25  ;;  %8581 = vmatpush3.bf16.msra.mxu1 %v9108_v46  ;;  %8603 = vmatpush3.bf16.msra.mxu0 %v9109_v37  ;;  %v9127_v25 = vld [vmem:[%s12010_s18 + $0x2e0] sm:$0xff]  }
0x1b78   :  { %8610 = vmatprep.subr.bf16.mxu1 %v9110_v24  ;;  %8632 = vmatprep.subr.bf16.mxu0 %v9111_v48 }
0x1b7a   :  { %4493 = vmatmul.mubr.bf16.vlgmr.msra.gmra.mrb[76].mxu1 %v10893_v62  ;;  %4534 = vmatmul.mubr.bf16.vlgmr.msra.gmra.mrb[92].mxu0 %v10895_v51  ;;  %v9117_v62 = vld [vmem:[%s12010_s18 + $0x288] sm:$0xff]   ;;  %v9118_v51 = vld [vmem:[%s12010_s18 + $0x250] sm:$0xff]  }
0x1b7b   :  { %8611 = vmatpush3.bf16.msra.mxu1 %v9112_v40  ;;  %4574 = vmatprep.mubr.bf16.mxu1 %v3340_v45  ;;  %v9128_v40 = vld [vmem:[%s12010_s18 + $0x220] sm:$0xff]  }
0x1b7c   :  { %8633 = vmatpush3.bf16.msra.mxu0 %v9113_v61  ;;  %4615 = vmatprep.mubr.bf16.mxu0 %v3342_v6  ;;  %v9129_v61 = vld [vmem:[%s12010_s18 + $0x2a0] sm:$0xff]  }
0x1b7d   :  { %8612 = vmatprep.subr.bf16.mxu1 %v9114_v43  ;;  %8634 = vmatprep.subr.bf16.mxu0 %v9115_v36  ;;  %v9130_v43 = vld [vmem:[%s12010_s18 + $0x268] sm:$0xff]  }
0x1b7e   :  { %v9131_v36 = vld [vmem:[%s12010_s18 + $0x2e8] sm:$0xff]  }
0x1b7f   :  { %v3247_v3 = vpop.f32.mrb[68].mxu1  ;;  %v3290_v22 = vpop.f32.mrb[84].mxu0  ;;  %8613 = vmatpush3.bf16.msra.mxu1 %v9116_v2  ;;  %v9132_v2 = vld [vmem:[%s12010_s18 + $0x228] sm:$0xff]  }
0x1b80   :  { %v3248_v30 = vadd.f32 %v3247_v3, %v2603_v9  ;;  %v3291_v5 = vadd.f32 %v3290_v22, %v2611_v31  ;;  %8635 = vmatpush3.bf16.msra.mxu0 %v9117_v62  ;;  %v3249_v63 = vpop.f32.mrb[69].mxu1  ;;  %v3292_v27 = vpop.f32.mrb[85].mxu0  ;;  %8614 = vmatprep.subr.bf16.mxu1 %v9118_v51  ;;  %v9135_v62 = vld [vmem:[%s12010_s18 + $0x2f0] sm:$0xff]   ;;  %v9140_v3 = vld [vmem:[%s12010_s18 + $0x238] sm:$0xff]  }
0x1b81   :  { %v3250_v16 = vadd.f32 %v3249_v63, %v2607_v8  ;;  %v3293_v26 = vadd.f32 %v3292_v27, %v2615_v17  ;;  %v3251_v15 = vpop.f32.mrb[70].mxu1  ;;  %v3294_v55 = vpop.f32.mrb[86].mxu0  ;;  %8636 = vmatprep.subr.bf16.mxu0 %v9119_v21  ;;  %v9136_v51 = vld [vmem:[%s12010_s18 + $0x230] sm:$0xff]   ;;  %v9139_v21 = vld [vmem:[%s12010_s18 + $0x2f8] sm:$0xff]   ;;  %v9145_v63 = vld [vmem:[%s12010_s18 + $0x380] sm:$0xff]  }
0x1b82   :  { %v3252_v32 = vadd.f32 %v3251_v15, %v2603_v9  ;;  %v3295_v11 = vadd.f32 %v3294_v55, %v2611_v31  ;;  %v3253_v44 = vpop.f32.mrb[71].mxu1  ;;  %v3296_v12 = vpop.f32.mrb[87].mxu0  ;;  %v3311_v29 = vmax.f32 %v3248_v30, 0.0  ;;  %v3313_v46 = vmax.f32 %v3291_v5, 0.0  ;;  %v9133_v9 = vld [vmem:[%s12010_s18 + $0x2a8] sm:$0xff]   ;;  %v9134_v31 = vld [vmem:[%s12010_s18 + $0x270] sm:$0xff]  }
0x1b83   :  { %v3254_v58 = vadd.f32 %v3253_v44, %v2607_v8  ;;  %v3297_v41 = vadd.f32 %v3296_v12, %v2615_v17  ;;  %8615 = vmatpush3.bf16.msra.mxu1 %v9120_v38  ;;  %v3312_v14 = vmax.f32 %v3250_v16, 0.0  ;;  %v3314_v24 = vmax.f32 %v3293_v26, 0.0  ;;  %v9137_v8 = vld [vmem:[%s12010_s18 + $0x2b0] sm:$0xff]   ;;  %v9138_v17 = vld [vmem:[%s12010_s18 + $0x278] sm:$0xff]   ;;  %v9142_v38 = vld [vmem:[%s12010_s18 + $0x340] sm:$0xff]  }
0x1b84   :  { %v3327_v37 = vmax.f32 %v3252_v32, 0.0  ;;  %v3329_v47 = vmax.f32 %v3295_v11, 0.0  ;;  %8637 = vmatpush3.bf16.msra.mxu0 %v9121_v7  ;;  %8616 = vmatprep.subr.bf16.mxu1 %v9122_v33  ;;  %v9141_v22 = vld [vmem:[%s12010_s18 + $0x2b8] sm:$0xff]   ;;  %v9143_v30 = vld [vmem:[%s12010_s18 + $0x3c0] sm:$0xff]   ;;  %v9146_v27 = vld [vmem:[%s12010_s18 + $0x348] sm:$0xff]  }
0x1b85   :  { %v3328_v48 = vmax.f32 %v3254_v58, 0.0  ;;  %v3330_v52 = vmax.f32 %v3297_v41, 0.0  ;;  %8638 = vmatprep.subr.bf16.mxu0 %v9123_v28  ;;  %v9144_v5 = vld [vmem:[%s12010_s18 + $0x300] sm:$0xff]   ;;  %v9147_v7 = vld [vmem:[%s12010_s18 + $0x3c8] sm:$0xff]   ;;  %v9152_v26 = vld [vmem:[%s12010_s18 + $0x310] sm:$0xff]  }
0x1b86   :  { %v11020_v56 = vpack.c.bf16 %v3327_v37, %v3311_v29  ;;  %v11022_v57 = vpack.c.bf16 %v3329_v47, %v3313_v46  ;;  %v9148_v33 = vld [vmem:[%s12010_s18 + $0x308] sm:$0xff]   ;;  %v9153_v15 = vld [vmem:[%s12010_s18 + $0x390] sm:$0xff]   ;;  %v9154_v55 = vld [vmem:[%s12010_s18 + $0x358] sm:$0xff]  }
0x1b87   :  { %v3344_v45 = vpack.c.bf16 %v3328_v48, %v3312_v14  ;;  %v3346_v6 = vpack.c.bf16 %v3330_v52, %v3314_v24  ;;  %8617 = vmatpush3.bf16.msra.mxu1 %v9124_v34  ;;  %v9149_v16 = vld [vmem:[%s12010_s18 + $0x388] sm:$0xff]   ;;  %v9155_v28 = vld [vmem:[%s12010_s18 + $0x3d8] sm:$0xff]   ;;  %v9158_v44 = vld [vmem:[%s12010_s18 + $0x360] sm:$0xff]  }
0x1b88   :  { %8639 = vmatpush3.bf16.msra.mxu0 %v9125_v42  ;;  %8618 = vmatprep.subr.bf16.mxu1 %v9126_v23  ;;  %v9156_v32 = vld [vmem:[%s12010_s18 + $0x318] sm:$0xff]   ;;  %v9159_v12 = vld [vmem:[%s12010_s18 + $0x3e0] sm:$0xff]   ;;  %v9162_v34 = vld [vmem:[%s12010_s18 + $0x368] sm:$0xff]  }
0x1b89   :  { %8640 = vmatprep.subr.bf16.mxu0 %v9127_v25  ;;  %v9157_v11 = vld [vmem:[%s12010_s18 + $0x398] sm:$0xff]   ;;  %v9160_v58 = vld [vmem:[%s12010_s18 + $0x320] sm:$0xff]   ;;  %v9163_v29 = vld [vmem:[%s12010_s18 + $0x3e8] sm:$0xff]  }
0x1b8a   :  { %v9161_v41 = vld [vmem:[%s12010_s18 + $0x3a0] sm:$0xff]   ;;  %v9164_v46 = vld [vmem:[%s12010_s18 + $0x328] sm:$0xff]   ;;  %v9166_v47 = vld [vmem:[%s12010_s18 + $0x370] sm:$0xff]  }
0x1b8b   :  { %8619 = vmatpush3.bf16.msra.mxu1 %v9128_v40  ;;  %v9165_v37 = vld [vmem:[%s12010_s18 + $0x3a8] sm:$0xff]   ;;  %v9167_v42 = vld [vmem:[%s12010_s18 + $0x3f0] sm:$0xff]   ;;  %v9170_v24 = vld [vmem:[%s12010_s18 + $0x378] sm:$0xff]  }
0x1b8c   :  { %8641 = vmatpush3.bf16.msra.mxu0 %v9129_v61  ;;  %8620 = vmatprep.subr.bf16.mxu1 %v9130_v43  ;;  %v9168_v23 = vld [vmem:[%s12010_s18 + $0x330] sm:$0xff]   ;;  %v9171_v48 = vld [vmem:[%s12010_s18 + $0x3f8] sm:$0xff]   ;;  %v7801_v40 = vld [vmem:[%s12014_s19] ss:$0 sm:$0xff] }
0x1b8d   :  { %8642 = vmatprep.subr.bf16.mxu0 %v9131_v36  ;;  %v9169_v14 = vld [vmem:[%s12010_s18 + $0x3b0] sm:$0xff]   ;;  %v9172_v52 = vld [vmem:[%s12010_s18 + $0x338] sm:$0xff]  }
0x1b8e   :  { %v9173_v25 = vld [vmem:[%s12010_s18 + $0x3b8] sm:$0xff]  }
0x1b8f   :  { %8621 = vmatpush3.bf16.msra.mxu1 %v9132_v2 }
0x1b90   :  { %8643 = vmatpush3.bf16.msra.mxu0 %v9133_v9  ;;  %8622 = vmatprep.subr.bf16.mxu1 %v9134_v31 }
0x1b91   :  { %8644 = vmatprep.subr.bf16.mxu0 %v9135_v62 }
0x1b93   :  { %8623 = vmatpush3.bf16.msra.mxu1 %v9136_v51 }
0x1b94   :  { %8645 = vmatpush3.bf16.msra.mxu0 %v9137_v8  ;;  %8624 = vmatprep.subr.bf16.mxu1 %v9138_v17 }
0x1b95   :  { %8646 = vmatprep.subr.bf16.mxu0 %v9139_v21 }
0x1b97   :  { %8625 = vmatpush3.bf16.msra.mxu1 %v9140_v3 }
0x1b98   :  { %8647 = vmatpush3.bf16.msra.mxu0 %v9141_v22  ;;  %8654 = vmatprep.subr.bf16.mxu1 %v9142_v38 }
0x1b99   :  { %8676 = vmatprep.subr.bf16.mxu0 %v9143_v30 }
0x1b9a   :  { %4575 = vmatmul.mubr.bf16.vlgmr.msra.gmra.mrb[80].mxu1 %v10958_v59  ;;  %v9150_v59 = vld [vmem:[%s12010_s18 + $0x350] sm:$0xff]  }
0x1b9b   :  { %4616 = vmatmul.mubr.bf16.vlgmr.msra.gmra.mrb[96].mxu0 %v10960_v4  ;;  %8655 = vmatpush3.bf16.msra.mxu1 %v9144_v5  ;;  %v9151_v4 = vld [vmem:[%s12010_s18 + $0x3d0] sm:$0xff]  }
0x1b9c   :  { %4656 = vmatprep.mubr.bf16.mxu1 %v3344_v45  ;;  %8677 = vmatpush3.bf16.msra.mxu0 %v9145_v63 }
0x1b9d   :  { %4697 = vmatprep.mubr.bf16.mxu0 %v3346_v6  ;;  %8656 = vmatprep.subr.bf16.mxu1 %v9146_v27 }
0x1b9e   :  { %8678 = vmatprep.subr.bf16.mxu0 %v9147_v7 }
0x1b9f   :  { %8657 = vmatpush3.bf16.msra.mxu1 %v9148_v33 }
0x1ba0   :  { %8679 = vmatpush3.bf16.msra.mxu0 %v9149_v16  ;;  %8658 = vmatprep.subr.bf16.mxu1 %v9150_v59 }
0x1ba1   :  { %8680 = vmatprep.subr.bf16.mxu0 %v9151_v4 }
0x1ba3   :  { %8659 = vmatpush3.bf16.msra.mxu1 %v9152_v26 }
0x1ba4   :  { %8681 = vmatpush3.bf16.msra.mxu0 %v9153_v15  ;;  %8660 = vmatprep.subr.bf16.mxu1 %v9154_v55 }
0x1ba5   :  { %8682 = vmatprep.subr.bf16.mxu0 %v9155_v28 }
0x1ba7   :  { %8661 = vmatpush3.bf16.msra.mxu1 %v9156_v32 }
0x1ba8   :  { %8683 = vmatpush3.bf16.msra.mxu0 %v9157_v11  ;;  %8662 = vmatprep.subr.bf16.mxu1 %v9158_v44 }
0x1ba9   :  { %8684 = vmatprep.subr.bf16.mxu0 %v9159_v12 }
0x1bab   :  { %8663 = vmatpush3.bf16.msra.mxu1 %v9160_v58 }
0x1bac   :  { %8685 = vmatpush3.bf16.msra.mxu0 %v9161_v41  ;;  %8664 = vmatprep.subr.bf16.mxu1 %v9162_v34 }
0x1bad   :  { %8686 = vmatprep.subr.bf16.mxu0 %v9163_v29 }
0x1baf   :  { %8665 = vmatpush3.bf16.msra.mxu1 %v9164_v46 }
0x1bb0   :  { %8687 = vmatpush3.bf16.msra.mxu0 %v9165_v37  ;;  %8666 = vmatprep.subr.bf16.mxu1 %v9166_v47 }
0x1bb1   :  { %8688 = vmatprep.subr.bf16.mxu0 %v9167_v42 }
0x1bb3   :  { %8667 = vmatpush3.bf16.msra.mxu1 %v9168_v23 }
0x1bb4   :  { %8689 = vmatpush3.bf16.msra.mxu0 %v9169_v14  ;;  %8668 = vmatprep.subr.bf16.mxu1 %v9170_v24 }
0x1bb5   :  { %8690 = vmatprep.subr.bf16.mxu0 %v9171_v48 }
0x1bb7   :  { %8669 = vmatpush3.bf16.msra.mxu1 %v9172_v52 }
0x1bb8   :  { %8691 = vmatpush3.bf16.msra.mxu0 %v9173_v25 }
0x1bb9   :  { %8933 = vmatprep.subr.bf16.mxu0 %v9490_v0 }
0x1bba   :  { %4657 = vmatmul.mubr.bf16.vlgmr.msra.gmra.mrb[84].mxu1 %v11020_v56 }
0x1bbb   :  { %4698 = vmatmul.mubr.bf16.vlgmr.msra.gmra.mrb[100].mxu0 %v11022_v57  ;;  %4850 = vmatprep.mubr.bf16.mxu1 %v9488_v1 }
0x1bbc   :  { %8935 = vmatprep.mubr.msk.bf16.mxu0 %vm9491_vm4, %v9490_v0 }
0x1c2d   :  { %v8538_v45 = vpop.f32.mrb[72].mxu1  ;;  %v8560_v6 = vpop.f32.mrb[88].mxu0 }
0x1c2e   :  { %v8539_v61 = vpop.f32.mrb[73].mxu1  ;;  %v8561_v43 = vpop.f32.mrb[89].mxu0 }
0x1c2f   :  { %v8540_v36 = vadd.f32 %v8539_v61, %v8538_v45  ;;  %v8562_v2 = vadd.f32 %v8561_v43, %v8560_v6  ;;  %v8541_v9 = vpop.f32.mrb[74].mxu1  ;;  %v8563_v31 = vpop.f32.mrb[90].mxu0 }
0x1c30   :  { %v8542_v56 = vpop.f32.mrb[75].mxu1  ;;  %v8564_v62 = vpop.f32.mrb[91].mxu0 }
0x1c31   :  { %v4413_v57 = vadd.f32 %v8540_v36, %v7801_v40  ;;  %v8543_v51 = vadd.f32 %v8542_v56, %v8541_v9  ;;  %v8565_v8 = vadd.f32 %v8564_v62, %v8563_v31 }
0x1c33   :  { %v4454_v17 = vadd.f32 %v8562_v2, %v4413_v57  ;;  %v4416_v21 = vadd.f32 %v8543_v51, %v7801_v40 }
0x1c35   :  { %v4457_v3 = vadd.f32 %v8565_v8, %v4416_v21 }
0x1c4d   :  { %v8582_v22 = vpop.f32.mrb[76].mxu1  ;;  %v8604_v38 = vpop.f32.mrb[92].mxu0 }
0x1c4e   :  { %v8583_v30 = vpop.f32.mrb[77].mxu1  ;;  %v8605_v5 = vpop.f32.mrb[93].mxu0 }
0x1c4f   :  { %v8584_v63 = vadd.f32 %v8583_v30, %v8582_v22  ;;  %v8606_v27 = vadd.f32 %v8605_v5, %v8604_v38  ;;  %v8585_v7 = vpop.f32.mrb[78].mxu1  ;;  %v8607_v33 = vpop.f32.mrb[94].mxu0 }
0x1c50   :  { %v8586_v16 = vpop.f32.mrb[79].mxu1  ;;  %v8608_v59 = vpop.f32.mrb[95].mxu0 }
0x1c51   :  { %v4495_v4 = vadd.f32 %v8584_v63, %v4454_v17  ;;  %v8587_v26 = vadd.f32 %v8586_v16, %v8585_v7  ;;  %v8609_v15 = vadd.f32 %v8608_v59, %v8607_v33 }
0x1c53   :  { %v4536_v55 = vadd.f32 %v8606_v27, %v4495_v4  ;;  %v4498_v28 = vadd.f32 %v8587_v26, %v4457_v3  ;;  %v9174_v26 = vld [vmem:[%s12005_s10 + $0x40] ss:$8 sps:$4 sm:$0xff]  }
0x1c55   :  { %v4539_v32 = vadd.f32 %v8609_v15, %v4498_v28  ;;  %v9179_v15 = vld [vmem:[%s12005_s10 + $0x54] ss:$8 sps:$4 sm:$0xff]   ;;  %v9182_v28 = vld [vmem:[%s12005_s10 + $0x64] ss:$8 sps:$4 sm:$0xff]  }
0x1c6d   :  { %v8626_v11 = vpop.f32.mrb[80].mxu1 }
0x1c6e   :  { %v8648_v44 = vpop.f32.mrb[96].mxu0  ;;  %v8627_v12 = vpop.f32.mrb[81].mxu1 }
0x1c6f   :  { %v8628_v58 = vadd.f32 %v8627_v12, %v8626_v11  ;;  %v8649_v41 = vpop.f32.mrb[97].mxu0  ;;  %v8629_v34 = vpop.f32.mrb[82].mxu1  ;;  %v9185_v11 = vld [vmem:[%s12005_s10 + $0x74] ss:$8 sps:$4 sm:$0xff]  }
0x1c70   :  { %v8650_v29 = vadd.f32 %v8649_v41, %v8648_v44  ;;  %v8651_v46 = vpop.f32.mrb[98].mxu0  ;;  %v8630_v37 = vpop.f32.mrb[83].mxu1  ;;  %v9183_v44 = vld [vmem:[%s12005_s10 + $0x70] ss:$8 sps:$4 sm:$0xff]  }
0x1c71   :  { %v4577_v47 = vadd.f32 %v8628_v58, %v4536_v55  ;;  %v8631_v42 = vadd.f32 %v8630_v37, %v8629_v34  ;;  %v8652_v23 = vpop.f32.mrb[99].mxu0  ;;  %v9177_v55 = vld [vmem:[%s12005_s10 + $0x50] ss:$8 sps:$4 sm:$0xff]  }
0x1c72   :  { %v8653_v14 = vadd.f32 %v8652_v23, %v8651_v46 }
0x1c73   :  { %v4618_v24 = vadd.f32 %v8650_v29, %v4577_v47  ;;  %v4580_v48 = vadd.f32 %v8631_v42, %v4539_v32  ;;  %v9180_v32 = vld [vmem:[%s12005_s10 + $0x60] ss:$8 sps:$4 sm:$0xff]  }
0x1c74   :  { %v7930_v42 = vld [vmem:[%s12015_s20] ss:$0 sm:$0xff] }
0x1c75   :  { %v4621_v52 = vadd.f32 %v8653_v14, %v4580_v48  ;;  %v7931_v48 = vld [vmem:[%s12016_s21] ss:$0 sm:$0xff] }
0x1c8d   :  { %v8670_v25 = vpop.f32.mrb[84].mxu1 }
0x1c8e   :  { %v8692_v45 = vpop.f32.mrb[100].mxu0  ;;  %v8671_v6 = vpop.f32.mrb[85].mxu1 }
0x1c8f   :  { %v8672_v40 = vadd.f32 %v8671_v6, %v8670_v25  ;;  %v8693_v61 = vpop.f32.mrb[101].mxu0  ;;  %v8673_v43 = vpop.f32.mrb[86].mxu1 }
0x1c90   :  { %v8694_v36 = vadd.f32 %v8693_v61, %v8692_v45  ;;  %v8695_v2 = vpop.f32.mrb[102].mxu0  ;;  %v8674_v9 = vpop.f32.mrb[87].mxu1 }
0x1c91   :  { %v4659_v31 = vadd.f32 %v8672_v40, %v4618_v24  ;;  %v8675_v56 = vadd.f32 %v8674_v9, %v8673_v43  ;;  %v8696_v62 = vpop.f32.mrb[103].mxu0  ;;  %v7940_v40 = vld [vmem:[%s12006_s11 + $0x2] sm:$0x3] }
0x1c92   :  { %v8697_v57 = vadd.f32 %v8696_v62, %v8695_v2  ;;  %v4768_v61 = vrot.slane %v7940_v40, %v9686_v18 }
0x1c93   :  { %v4700_v51 = vadd.f32 %v8694_v36, %v4659_v31  ;;  %v4662_v8 = vadd.f32 %v8675_v56, %v4621_v52  ;;  %v4772_v36 = vrot.slane %v7940_v40, %v9692_v20 }
0x1c95   :  { %v4703_v17 = vadd.f32 %v8697_v57, %v4662_v8  ;;  %v4708_v21 = vadd.f32 %v4700_v51, %v10564_v10 }
0x1c97   :  { %v4710_v3 = vsel %vm255_vm2, %v4708_v21, 0.0  ;;  %v4709_v22 = vadd.f32 %v4703_v17, %v10566_v39  ;;  %v9176_v39 = vld [vmem:[%s12005_s10 + $0x44] ss:$8 sps:$4 sm:$0xff]  }
0x1c98   :  { %4711 = vadd.xlane.f32.xlu1 %v4710_v3  ;;  %4818 = vmatprep.subr.bf16.mxu1 %v9176_v39 }
0x1c99   :  { %v4713_v38 = vsel %vm255_vm2, %v4709_v22, 0.0  ;;  %4819 = vmatpush1.bf16.msra.mxu1 %v9174_v26 }
0x1c9a   :  { %4714 = vadd.xlane.f32.xlu0 %v4713_v38  ;;  %4820 = vmatprep.subr.bf16.mxu1 %v9179_v15 }
0x1c9d   :  { %4821 = vmatpush1.bf16.msra.mxu1 %v9177_v55 }
0x1c9e   :  { %4822 = vmatprep.subr.bf16.mxu1 %v9182_v28 }
0x1ca1   :  { %4823 = vmatpush1.bf16.msra.mxu1 %v9180_v32 }
0x1ca2   :  { %4824 = vmatprep.subr.bf16.mxu1 %v9185_v11 }
0x1ca5   :  { %4825 = vmatpush1.bf16.msra.mxu1 %v9183_v44 }
0x1ca6   :  { %8945 = vmatprep.subr.bf16.mxu1 %v9490_v0 }
0x1d25   :  { %v4712_v30 = vpop.xlane.xlu1 %4711 }
0x1d26   :  { %v4716_v5 = vmul.f32 0.015625, %v4712_v30 }
0x1d27   :  { %v4715_v63 = vpop.xlane.xlu0 %4714 }
0x1d28   :  { %v4718_v27 = vsub.f32 %v4708_v21, %v4716_v5  ;;  %v4717_v7 = vmul.f32 0.015625, %v4715_v63 }
0x1d2a   :  { %v4719_v33 = vsub.f32 %v4709_v22, %v4717_v7  ;;  %v4720_v16 = vmul.f32 %v4718_v27, %v4718_v27 }
0x1d2c   :  { %v4722_v59 = vsel %vm255_vm2, %v4720_v16, 0.0  ;;  %v4721_v4 = vmul.f32 %v4719_v33, %v4719_v33 }
0x1d2d   :  { %4723 = vadd.xlane.f32.xlu0 %v4722_v59 }
0x1d2e   :  { %v4725_v10 = vsel %vm255_vm2, %v4721_v4, 0.0 }
0x1d31   :  { %4726 = vadd.xlane.f32.xlu0 %v4725_v10 }
0x1dba   :  { %v4724_v12 = vpop.xlane.xlu0 %4723 }
0x1dbb   :  { %v4728_v58 = vmul.f32 0.015625, %v4724_v12 }
0x1dbd   :  { %v4730_v41 = vadd.f32 1e-05, %v4728_v58 }
0x1dbe   :  { %v4727_v34 = vpop.xlane.xlu0 %4726 }
0x1dbf   :  { %9438 = vrsqrt.f32 %v4730_v41  ;;  %v4729_v29 = vmul.f32 0.015625, %v4727_v34 }
0x1dc1   :  { %v4731_v46 = vadd.f32 1e-05, %v4729_v29 }
0x1dc3   :  { %9440 = vrsqrt.f32 %v4731_v46 }
0x1dc9   :  { %v9439_v37 = vpop.eup %9438 }
0x1dca   :  { %v4734_v47 = vmul.f32 %v9439_v37, %v4718_v27 }
0x1dcc   :  { %v4742_v14 = vmul.f32 %v7930_v42, %v4734_v47 }
0x1dcd   :  { %v9441_v23 = vpop.eup %9440 }
0x1dce   :  { %v4735_v24 = vmul.f32 %v9441_v23, %v4719_v33  ;;  %v11210_v25 = vadd.f32 %v7931_v48, %v4742_v14 }
0x1dd0   :  { %v4743_v52 = vmul.f32 %v7930_v42, %v4735_v24 }
0x1dd2   :  { %v11212_v45 = vadd.f32 %v7931_v48, %v4743_v52 }
0x1dd4   :  { %v4752_v6 = vpack.c.bf16 %v11212_v45, %v11210_v25 }
0x1dd6   :  { %7949 = vmatmul.mubr.msk.bf16.vlgmr.msra.gmra.mrb[88].mxu1 %vm255_vm2, %v4752_v6 }
0x1dd7   :  { %8947 = vmatprep.mubr.msk.bf16.mxu1 %vm9491_vm4, %v9490_v0 }
0x1ea9   :  { %v4852_v43 = vpop.f32.mrb[88].mxu1 }
0x1eaa   :  { %v4854_v2 = vpop.f32.mrb[89].mxu1  ;;  %v4853_v31 = vadd.f32 %v4852_v43, %v4768_v61 }
0x1eab   :  { %v4856_v9 = vpop.f32.mrb[90].mxu1  ;;  %v4855_v57 = vadd.f32 %v4854_v2, %v4772_v36 }
0x1eac   :  { %v4857_v56 = vadd.f32 %v4856_v9, %v4768_v61  ;;  %v4858_v62 = vpop.f32.mrb[91].mxu1 }
0x1ead   :  { %v4859_v51 = vadd.f32 %v4858_v62, %v4772_v36 }
0x1eae   :  { %v4861_v8 = vpack.c.bf16 %v4857_v56, %v4853_v31 }
0x1eaf   :  { %v11224_v17 = vpack.c.bf16 %v4859_v51, %v4855_v57 }
0x1eb0   :  { %4994 = vrot.lane.b32.xlu1 %v4861_v8, %s9494_s5  ;;  %4873 = vrot.lane.b32.xlu0 %v4861_v8, %s9489_s8 }
0x1eb4   :  { %4996 = vrot.lane.b32.xlu0 %v4861_v8, %s9493_s1 }
0x1f22   :  { %v4874_v21 = vpop.permute.xlu0 %4873  ;;  %v4995_v30 = vpop.permute.xlu1 %4994 }
0x1f23   :  { %v4879_v3 = vsel %vm2067_vm5, %v4874_v21, 0 }
0x1f24   :  { %8934 = vmatpush3.bf16.xpose.msra.mxu0 %v4879_v3 }
0x1f25   :  { %8939 = vmatprep.subr.bf16.mxu0 %v9490_v0 }
0x1f26   :  { %v4997_v22 = vpop.permute.xlu0 %4996 }
0x1f27   :  { %v5002_v38 = vsel %vm2067_vm5, %v4997_v22, 0 }
0x1f28   :  { %8946 = vmatpush3.bf16.xpose.msra.mxu1 %v5002_v38 }
0x1f29   :  { %8957 = vmatprep.subr.bf16.mxu1 %v9490_v0 }
0x1f2b   :  { %8936 = vmatmul.mubr.msk.bf16.vlgmr.msra.gmra.mrb[104].mxu0 %vm2067_vm5, %v4861_v8 }
0x1f2c   :  { %8940 = vmatpush3.bf16.msra.mxu0 %v11224_v17  ;;  %8941 = vmatprep.mubr.msk.bf16.mxu0 %vm9491_vm4, %v9490_v0 }
0x1f2d   :  { %8951 = vmatprep.subr.bf16.mxu0 %v9490_v0 }
0x1f2f   :  { %8948 = vmatmul.mubr.msk.bf16.vlgmr.msra.gmra.mrb[92].mxu1 %vm2067_vm5, %v4995_v30 }
0x1f30   :  { %8961 = vmatprep.mubr.msk.bf16.mxu1 %vm9491_vm4, %v9490_v0 }
0x1ffe   :  { %v4915_v5 = vpop.f32.mrb[104].mxu0 }
0x1fff   :  { %v4922_v63 = vmul.f32 0.17677669, %v4915_v5  ;;  %v8937_v27 = vpop.f32.mrb[105].mxu0 }
0x2000   :  { %v4918_v7 = vpop.f32.mrb[106].mxu0  ;;  %v9186_v27 = vld [vmem:[%s12007_s12 + $0x20] sm:$0xff]  }
0x2001   :  { %v4923_v33 = vmul.f32 0.17677669, %v4918_v7  ;;  %v8938_v16 = vpop.f32.mrb[107].mxu0  ;;  %v4924_v59 = vadd.f32 %v4922_v63, %v10417_v13 }
0x2002   :  { %v5038_v4 = vpop.f32.mrb[92].mxu1  ;;  %v9188_v16 = vld [vmem:[%s12007_s12 + $0x30] sm:$0xff]  }
0x2003   :  { %v5045_v10 = vmul.f32 0.17677669, %v5038_v4  ;;  %v8949_v39 = vpop.f32.mrb[93].mxu1  ;;  %v4926_v26 = vsel %vm2119_vm8, %v4924_v59, -inf  ;;  %v4925_v15 = vadd.f32 %v4923_v33, %v10419_v50  ;;  %v9187_v33 = vld [vmem:[%s12007_s12 + $0x28] sm:$0xff]   ;;  %8958 = vmatpush3.bf16.msra.mxu1 %v9188_v16 }
0x2004   :  { %4927 = vmax.xlane.f32.xlu0 %v4926_v26  ;;  %v5041_v55 = vpop.f32.mrb[94].mxu1  ;;  %8959 = vmatprep.subr.bf16.mxu1 %v9490_v0 }
0x2005   :  { %v5046_v28 = vmul.f32 0.17677669, %v5041_v55  ;;  %v8950_v32 = vpop.f32.mrb[95].mxu1  ;;  %v4929_v11 = vsel %vm2119_vm8, %v4925_v15, -inf  ;;  %v5047_v44 = vadd.f32 %v5045_v10, %v10417_v13 }
0x2006   :  { %4930 = vmax.xlane.f32.xlu1 %v4929_v11 }
0x2007   :  { %v5049_v12 = vsel %vm2119_vm8, %v5047_v44, -inf  ;;  %v5048_v58 = vadd.f32 %v5046_v28, %v10419_v50 }
0x2008   :  { %5050 = vmax.xlane.f32.xlu0 %v5049_v12 }
0x2009   :  { %v5052_v41 = vsel %vm2119_vm8, %v5048_v58, -inf }
0x200c   :  { %5053 = vmax.xlane.f32.xlu0 %v5052_v41 }
0x2091   :  { %v4928_v34 = vpop.xlane.xlu0 %4927 }
0x2092   :  { %v4932_v29 = vsub.f32 %v4924_v59, %v4928_v34  ;;  %v9189_v59 = vld [vmem:[%s12007_s12 + $0x38] sm:$0xff]  }
0x2093   :  { %v4931_v46 = vpop.xlane.xlu1 %4930  ;;  %8960 = vmatpush3.bf16.msra.mxu1 %v9189_v59  ;;  %v8006_v59 = vld [vmem:[%s12009_s16 + $0x300] sm:$0xff] }
0x2094   :  { %v4934_v37 = vmul.f32 1.442695, %v4932_v29  ;;  %v4933_v47 = vsub.f32 %v4925_v15, %v4931_v46  ;;  %v7969_v46 = vld [vmem:[%s12008_s13 + $0x1] ss:$0 sm:$0xff] }
0x2095   :  { %v5051_v42 = vpop.xlane.xlu0 %5050 }
0x2096   :  { %9442 = vpow2.f32 %v4934_v37  ;;  %v4936_v23 = vmul.f32 1.442695, %v4933_v47  ;;  %v5055_v14 = vsub.f32 %v5047_v44, %v5051_v42 }
0x2098   :  { %9444 = vpow2.f32 %v4936_v23  ;;  %v5057_v13 = vmul.f32 1.442695, %v5055_v14 }
0x2099   :  { %v5054_v24 = vpop.xlane.xlu0 %5053 }
0x209a   :  { %v5056_v48 = vsub.f32 %v5048_v58, %v5054_v24  ;;  %9446 = vpow2.f32 %v5057_v13 }
0x209c   :  { %v5059_v52 = vmul.f32 1.442695, %v5056_v48 }
0x209e   :  { %9448 = vpow2.f32 %v5059_v52 }
0x20a0   :  { %v9443_v50 = vpop.eup %9442 }
0x20a1   :  { %v4938_v6 = vsel %vm2119_vm8, %v9443_v50, 0.0 }
0x20a2   :  { %v9445_v40 = vpop.eup %9444  ;;  %4939 = vadd.xlane.f32.xlu0 %v4938_v6 }
0x20a3   :  { %v4941_v61 = vsel %vm2119_vm8, %v9445_v40, 0.0 }
0x20a4   :  { %v9447_v43 = vpop.eup %9446 }
0x20a5   :  { %v5061_v2 = vsel %vm2119_vm8, %v9447_v43, 0.0 }
0x20a6   :  { %4942 = vadd.xlane.f32.xlu0 %v4941_v61 }
0x20a8   :  { %v9449_v36 = vpop.eup %9448 }
0x20a9   :  { %v5064_v9 = vsel %vm2119_vm8, %v9449_v36, 0.0 }
0x20aa   :  { %5062 = vadd.xlane.f32.xlu0 %v5061_v2  ;;  %5065 = vadd.xlane.f32.xlu1 %v5064_v9 }
0x20c0   :  { %5073 = vrot.lane.b32.xlu0 %v11224_v17, %s9494_s5 }
0x212f   :  { %v4940_v31 = vpop.xlane.xlu0 %4939 }
0x2130   :  { %9450 = vrcp.f32 %v4940_v31 }
0x2133   :  { %v4943_v56 = vpop.xlane.xlu0 %4942 }
0x2134   :  { %9452 = vrcp.f32 %v4943_v56 }
0x2137   :  { %v5066_v62 = vpop.xlane.xlu1 %5065  ;;  %v5063_v57 = vpop.xlane.xlu0 %5062 }
0x2138   :  { %9454 = vrcp.f32 %v5066_v62  ;;  %v7974_v62 = vld [vmem:[%s12009_s16 + $0x200] sm:$0xff] }
0x2139   :  { %9456 = vrcp.f32 %v5063_v57  ;;  %v7982_v57 = vld [vmem:[%s12009_s16 + $0x240] sm:$0xff] }
0x213a   :  { %v9451_v51 = vpop.eup %9450 }
0x213b   :  { %v4946_v21 = vmul.f32 %v9451_v51, %v9443_v50  ;;  %v5074_v5 = vpop.permute.xlu0 %5073  ;;  %v7975_v51 = vld [vmem:[%s12009_s16 + $0x208] sm:$0xff] }
0x213e   :  { %v9453_v8 = vpop.eup %9452 }
0x213f   :  { %v4947_v3 = vmul.f32 %v9453_v8, %v9445_v40  ;;  %v8041_v8 = vcombine.high %v7974_v62, %v7982_v57 }
0x2141   :  { %v4948_v22 = vpack.c.bf16 %v4947_v3, %v4946_v21  ;;  %v7983_v21 = vld [vmem:[%s12009_s16 + $0x248] sm:$0xff]  ;;  %v8040_v3 = vcombine.low %v7974_v62, %v7982_v57  ;;  %5765 = vmatprep.subr.bf16.mxu1 %v8041_v8  ;;  %v7973_v62 = vld [vmem:[%s12012_s15 + $0x1] ss:$0 sm:$0xff]  ;;  %v7993_v8 = vld [vmem:[%s12009_s16 + $0x298] sm:$0xff] }
0x2142   :  { %v9455_v38 = vpop.eup %9454 }
0x2143   :  { %v9457_v30 = vpop.eup %9456  ;;  %8942 = vmatmul.mubr.msk.bf16.vlgmr.msra.gmra.mrb[108].mxu0 %vm2119_vm8, %v4948_v22  ;;  %v5070_v17 = vmul.f32 %v9455_v38, %v9449_v36  ;;  %v8042_v22 = vcombine.low %v7975_v51, %v7983_v21  ;;  %v8043_v38 = vcombine.high %v7975_v51, %v7983_v21  ;;  %v7992_v51 = vld [vmem:[%s12009_s16 + $0x290] sm:$0xff] }
0x2144   :  { %8952 = vmatpush3.bf16.msra.mxu0 %v5074_v5  ;;  %8953 = vmatprep.mubr.msk.bf16.mxu0 %vm9491_vm4, %v9490_v0  ;;  %v5069_v63 = vmul.f32 %v9457_v30, %v9447_v43  ;;  %v7990_v30 = vld [vmem:[%s12009_s16 + $0x280] sm:$0xff] }
0x2145   :  { %8965 = vmatprep.subr.bf16.mxu0 %v9490_v0  ;;  %v7998_v5 = vld [vmem:[%s12009_s16 + $0x2c0] sm:$0xff] }
0x2146   :  { %v5071_v7 = vpack.c.bf16 %v5070_v17, %v5069_v63  ;;  %v7991_v17 = vld [vmem:[%s12009_s16 + $0x288] sm:$0xff]  ;;  %v8057_v63 = vcombine.high %v7990_v30, %v7998_v5 }
0x214b   :  { %8954 = vmatmul.mubr.msk.bf16.vlgmr.msra.gmra.mrb[112].mxu0 %vm2119_vm8, %v5071_v7  ;;  %v8056_v7 = vcombine.low %v7990_v30, %v7998_v5  ;;  %v8008_v5 = vld [vmem:[%s12009_s16 + $0x310] sm:$0xff] }
0x214c   :  { %8966 = vmatpush3.bf16.msra.mxu0 %v9186_v27  ;;  %8969 = vmatprep.mubr.msk.bf16.mxu0 %vm9491_vm4, %v9490_v0  ;;  %v7999_v27 = vld [vmem:[%s12009_s16 + $0x2c8] sm:$0xff] }
0x214d   :  { %8967 = vmatprep.subr.bf16.mxu0 %v9490_v0  ;;  %v8059_v16 = vcombine.high %v7991_v17, %v7999_v27 }
0x2150   :  { %8968 = vmatpush3.bf16.msra.mxu0 %v9187_v33  ;;  %v8058_v33 = vcombine.low %v7991_v17, %v7999_v27  ;;  %v8016_v17 = vld [vmem:[%s12009_s16 + $0x350] sm:$0xff]  ;;  %v8017_v27 = vld [vmem:[%s12009_s16 + $0x358] sm:$0xff] }
0x2151   :  { %5808 = vmatprep.subr.bf16.mxu0 %v8043_v38 }
0x2216   :  { %v4986_v4 = vpop.f32.mrb[108].mxu0 }
0x2217   :  { %v8943_v10 = vpop.f32.mrb[109].mxu0 }
0x2218   :  { %v4989_v39 = vpop.f32.mrb[110].mxu0  ;;  %v8007_v10 = vld [vmem:[%s12009_s16 + $0x308] sm:$0xff] }
0x2219   :  { %v4993_v26 = vpack.c.bf16 %v4989_v39, %v4986_v4  ;;  %v8944_v15 = vpop.f32.mrb[111].mxu0  ;;  %v8014_v4 = vld [vmem:[%s12009_s16 + $0x340] sm:$0xff] }
0x221a   :  { %v8073_v39 = vcombine.high %v8006_v59, %v8014_v4  ;;  %v8072_v15 = vcombine.low %v8006_v59, %v8014_v4  ;;  %v8024_v4 = vld [vmem:[%s12009_s16 + $0x390] sm:$0xff] }
0x221b   :  { %8970 = vmatmul.mubr.msk.bf16.vlgmr.msra.gmra.mrb[116].mxu0 %vm2067_vm5, %v4993_v26  ;;  %v8015_v26 = vld [vmem:[%s12009_s16 + $0x348] sm:$0xff] }
0x221c   :  { %5840 = vmatprep.mubr.bf16.mxu0 %v9488_v1  ;;  %5809 = vmatpush1.bf16.msra.mxu0 %v8042_v22 }
0x221d   :  { %5810 = vmatprep.subr.bf16.mxu0 %v8059_v16  ;;  %v8077_v16 = vcombine.high %v8008_v5, %v8016_v17 }
0x221e   :  { %v5113_v55 = vpop.f32.mrb[112].mxu0 }
0x221f   :  { %v8955_v28 = vpop.f32.mrb[113].mxu0 }
0x2220   :  { %v5116_v32 = vpop.f32.mrb[114].mxu0  ;;  %5811 = vmatpush1.bf16.msra.mxu0 %v8058_v33  ;;  %v8075_v28 = vcombine.high %v8007_v10, %v8015_v26 }
0x2221   :  { %v5120_v11 = vpack.c.bf16 %v5116_v32, %v5113_v55  ;;  %v8956_v44 = vpop.f32.mrb[115].mxu0  ;;  %v8074_v55 = vcombine.low %v8007_v10, %v8015_v26  ;;  %v8022_v32 = vld [vmem:[%s12009_s16 + $0x380] sm:$0xff]  ;;  %v8032_v10 = vld [vmem:[%s12009_s16 + $0x3d0] sm:$0xff]  ;;  %v8033_v26 = vld [vmem:[%s12009_s16 + $0x3d8] sm:$0xff] }
0x2222   :  { %5812 = vmatprep.subr.bf16.mxu0 %v8075_v28  ;;  %v8023_v44 = vld [vmem:[%s12009_s16 + $0x388] sm:$0xff]  ;;  %v8093_v28 = vcombine.high %v8024_v4, %v8032_v10 }
0x2223   :  { %8962 = vmatmul.mubr.msk.bf16.vlgmr.msra.gmra.mrb[96].mxu1 %vm2067_vm5, %v5120_v11  ;;  %v8030_v11 = vld [vmem:[%s12009_s16 + $0x3c0] sm:$0xff] }
0x2224   :  { %5797 = vmatprep.mubr.bf16.mxu1 %v9488_v1  ;;  %5766 = vmatpush1.bf16.msra.mxu1 %v8040_v3 }
0x2225   :  { %5767 = vmatprep.subr.bf16.mxu1 %v8057_v63  ;;  %5813 = vmatpush1.bf16.msra.mxu0 %v8074_v55  ;;  %v8009_v63 = vld [vmem:[%s12009_s16 + $0x318] sm:$0xff] }
0x2226   :  { %v8079_v59 = vcombine.high %v8009_v63, %v8017_v27  ;;  %v8078_v55 = vcombine.low %v8009_v63, %v8017_v27 }
0x2228   :  { %5768 = vmatpush1.bf16.msra.mxu1 %v8056_v7 }
0x2229   :  { %5769 = vmatprep.subr.bf16.mxu1 %v8073_v39  ;;  %v8025_v39 = vld [vmem:[%s12009_s16 + $0x398] sm:$0xff] }
0x222c   :  { %5770 = vmatpush1.bf16.msra.mxu1 %v8072_v15  ;;  %v8076_v15 = vcombine.low %v8008_v5, %v8016_v17 }
0x22ee   :  { %v5226_v12 = vpop.f32.mrb[116].mxu0 }
0x22ef   :  { %v8971_v58 = vpop.f32.mrb[117].mxu0 }
0x22f0   :  { %v5229_v41 = vpop.f32.mrb[118].mxu0  ;;  %v8031_v58 = vld [vmem:[%s12009_s16 + $0x3c8] sm:$0xff] }
0x22f1   :  { %v8972_v34 = vpop.f32.mrb[119].mxu0 }
0x22f2   :  { %v8090_v34 = vcombine.low %v8023_v44, %v8031_v58 }
0x22f6   :  { %v5170_v29 = vpop.f32.mrb[96].mxu1 }
0x22f7   :  { %v5227_v37 = vadd.f32 %v5226_v12, %v5170_v29  ;;  %v8963_v47 = vpop.f32.mrb[97].mxu1  ;;  %v8089_v12 = vcombine.high %v8022_v32, %v8030_v11  ;;  %v8091_v29 = vcombine.high %v8023_v44, %v8031_v58  ;;  %v7986_v44 = vld [vmem:[%s12009_s16 + $0x260] sm:$0xff]  ;;  %v7987_v58 = vld [vmem:[%s12009_s16 + $0x268] sm:$0xff] }
0x22f8   :  { %v5173_v42 = vpop.f32.mrb[98].mxu1  ;;  %v7977_v47 = vld [vmem:[%s12009_s16 + $0x218] sm:$0xff] }
0x22f9   :  { %v5241_v23 = vadd.f32 %v7969_v46, %v5227_v37  ;;  %v5230_v14 = vadd.f32 %v5229_v41, %v5173_v42  ;;  %v8964_v13 = vpop.f32.mrb[99].mxu1  ;;  %v8088_v41 = vcombine.low %v8022_v32, %v8030_v11  ;;  %5771 = vmatprep.subr.bf16.mxu1 %v8089_v12  ;;  %5814 = vmatprep.subr.bf16.mxu0 %v8091_v29  ;;  %v7984_v37 = vld [vmem:[%s12009_s16 + $0x250] sm:$0xff]  ;;  %v7978_v11 = vld [vmem:[%s12009_s16 + $0x220] sm:$0xff]  ;;  %v7979_v12 = vld [vmem:[%s12009_s16 + $0x228] sm:$0xff] }
0x22fa   :  { %5815 = vmatpush1.bf16.msra.mxu0 %v8090_v34  ;;  %v8095_v32 = vcombine.high %v8025_v39, %v8033_v26  ;;  %v8094_v34 = vcombine.low %v8025_v39, %v8033_v26  ;;  %v8049_v29 = vcombine.high %v7978_v11, %v7986_v44 }
0x22fb   :  { %v5242_v24 = vadd.f32 %v7969_v46, %v5230_v14  ;;  %v5247_v48 = vadd.f32 %v5241_v23, %v11210_v25  ;;  %5772 = vmatpush1.bf16.msra.mxu1 %v8088_v41  ;;  %v7976_v46 = vld [vmem:[%s12009_s16 + $0x210] sm:$0xff]  ;;  %v7985_v14 = vld [vmem:[%s12009_s16 + $0x258] sm:$0xff]  ;;  %v8092_v41 = vcombine.low %v8024_v4, %v8032_v10 }
0x22fc   :  { %v8044_v42 = vcombine.low %v7976_v46, %v7984_v37  ;;  %v8045_v23 = vcombine.high %v7976_v46, %v7984_v37  ;;  %v8046_v13 = vcombine.low %v7977_v47, %v7985_v14  ;;  %v8051_v46 = vcombine.high %v7979_v12, %v7987_v58  ;;  %v7994_v37 = vld [vmem:[%s12009_s16 + $0x2a0] sm:$0xff] }
0x22fd   :  { %v5249_v52 = vsel %vm255_vm2, %v5247_v48, 0.0  ;;  %v5248_v50 = vadd.f32 %v5242_v24, %v11212_v45  ;;  %v8047_v24 = vcombine.high %v7977_v47, %v7985_v14  ;;  %v8002_v47 = vld [vmem:[%s12009_s16 + $0x2e0] sm:$0xff]  ;;  %v8048_v14 = vcombine.low %v7978_v11, %v7986_v44 }
0x22fe   :  { %5250 = vadd.xlane.f32.xlu1 %v5249_v52  ;;  %5851 = vmatprep.subr.bf16.mxu1 %v8045_v23  ;;  %v8003_v23 = vld [vmem:[%s12009_s16 + $0x2e8] sm:$0xff] }
0x22ff   :  { %v5252_v6 = vsel %vm255_vm2, %v5248_v50, 0.0  ;;  %5894 = vmatprep.subr.bf16.mxu0 %v8047_v24  ;;  %v8065_v24 = vcombine.high %v7994_v37, %v8002_v47 }
0x2302   :  { %5253 = vadd.xlane.f32.xlu1 %v5252_v6 }
0x238b   :  { %v5251_v40 = vpop.xlane.xlu1 %5250 }
0x238c   :  { %v5255_v61 = vmul.f32 0.015625, %v5251_v40 }
0x238e   :  { %v11287_v43 = vsub.f32 %v5247_v48, %v5255_v61 }
0x238f   :  { %v5254_v36 = vpop.xlane.xlu1 %5253 }
0x2390   :  { %v5256_v2 = vmul.f32 0.015625, %v5254_v36  ;;  %v5259_v9 = vmul.f32 %v11287_v43, %v11287_v43 }
0x2392   :  { %v11291_v31 = vsub.f32 %v5248_v50, %v5256_v2  ;;  %v5261_v25 = vsel %vm255_vm2, %v5259_v9, 0.0  ;;  %v7972_v9 = vld [vmem:[%s12011_s14 + $0x1] ss:$0 sm:$0xff] }
0x2393   :  { %5262 = vadd.xlane.f32.xlu1 %v5261_v25 }
0x2394   :  { %v5260_v45 = vmul.f32 %v11291_v31, %v11291_v31 }
0x2396   :  { %v5264_v56 = vsel %vm255_vm2, %v5260_v45, 0.0 }
0x2397   :  { %5265 = vadd.xlane.f32.xlu1 %v5264_v56 }
0x2420   :  { %v5263_v48 = vpop.xlane.xlu1 %5262 }
0x2421   :  { %v5267_v52 = vmul.f32 0.015625, %v5263_v48 }
0x2423   :  { %v5269_v50 = vadd.f32 1e-05, %v5267_v52  ;;  %v8010_v52 = vld [vmem:[%s12009_s16 + $0x320] sm:$0xff] }
0x2424   :  { %v5266_v6 = vpop.xlane.xlu1 %5265 }
0x2425   :  { %9458 = vrsqrt.f32 %v5269_v50  ;;  %v5268_v40 = vmul.f32 0.015625, %v5266_v6  ;;  %v8018_v50 = vld [vmem:[%s12009_s16 + $0x360] sm:$0xff]  ;;  %v8011_v6 = vld [vmem:[%s12009_s16 + $0x328] sm:$0xff] }
0x2427   :  { %v5270_v61 = vadd.f32 1e-05, %v5268_v40  ;;  %v8019_v40 = vld [vmem:[%s12009_s16 + $0x368] sm:$0xff] }
0x2429   :  { %9460 = vrsqrt.f32 %v5270_v61  ;;  %v8064_v61 = vcombine.low %v7994_v37, %v8002_v47 }
0x242f   :  { %v9459_v36 = vpop.eup %9458 }
0x2430   :  { %v5273_v2 = vmul.f32 %v9459_v36, %v11287_v43  ;;  %v8000_v43 = vld [vmem:[%s12009_s16 + $0x2d0] sm:$0xff] }
0x2431   :  { %v8061_v38 = vcombine.high %v7992_v51, %v8000_v43  ;;  %v8060_v7 = vcombine.low %v7992_v51, %v8000_v43  ;;  %v8082_v51 = vcombine.low %v8011_v6, %v8019_v40 }
0x2432   :  { %v5281_v45 = vmul.f32 %v7972_v9, %v5273_v2  ;;  %v8081_v2 = vcombine.high %v8010_v52, %v8018_v50 }
0x2433   :  { %v9461_v25 = vpop.eup %9460 }
0x2434   :  { %v5274_v56 = vmul.f32 %v9461_v25, %v11291_v31  ;;  %v8001_v31 = vld [vmem:[%s12009_s16 + $0x2d8] sm:$0xff]  ;;  %v5289_v21 = vadd.f32 %v7973_v62, %v5281_v45  ;;  %v8026_v25 = vld [vmem:[%s12009_s16 + $0x3a0] sm:$0xff] }
0x2435   :  { %v8063_v30 = vcombine.high %v7993_v8, %v8001_v31  ;;  %v8062_v33 = vcombine.low %v7993_v8, %v8001_v31  ;;  %v8034_v45 = vld [vmem:[%s12009_s16 + $0x3e0] sm:$0xff]  ;;  %v7980_v31 = vld [vmem:[%s12009_s16 + $0x230] sm:$0xff] }
0x2436   :  { %v5282_v57 = vmul.f32 %v7972_v9, %v5274_v56  ;;  %v8083_v9 = vcombine.high %v8011_v6, %v8019_v40  ;;  %v8027_v56 = vld [vmem:[%s12009_s16 + $0x3a8] sm:$0xff]  ;;  %v8097_v43 = vcombine.high %v8026_v25, %v8034_v45  ;;  %v8096_v5 = vcombine.low %v8026_v25, %v8034_v45  ;;  %v9202_v25 = vld [vmem:[%s12010_s18 + $0x458] sm:$0xff]  }
0x2437   :  { %v9195_v6 = vld [vmem:[%s12010_s18 + $0x4c8] sm:$0xff]   ;;  %v9203_v45 = vld [vmem:[%s12010_s18 + $0x4d8] sm:$0xff]  }
0x2438   :  { %v11377_v3 = vadd.f32 %v7973_v62, %v5282_v57  ;;  %v8035_v62 = vld [vmem:[%s12009_s16 + $0x3e8] sm:$0xff]  ;;  %v8080_v57 = vcombine.low %v8010_v52, %v8018_v50  ;;  %v9193_v52 = vld [vmem:[%s12010_s18 + $0x480] sm:$0xff]  }
0x2439   :  { %v8099_v8 = vcombine.high %v8027_v56, %v8035_v62  ;;  %v8098_v17 = vcombine.low %v8027_v56, %v8035_v62  ;;  %v9194_v50 = vld [vmem:[%s12010_s18 + $0x448] sm:$0xff]   ;;  %v9204_v56 = vld [vmem:[%s12010_s18 + $0x418] sm:$0xff]  }
0x243a   :  { %v11380_v22 = vpack.c.bf16 %v11377_v3, %v5289_v21  ;;  %v7988_v21 = vld [vmem:[%s12009_s16 + $0x270] sm:$0xff]  ;;  %v9196_v40 = vld [vmem:[%s12010_s18 + $0x408] sm:$0xff]   ;;  %v9205_v62 = vld [vmem:[%s12010_s18 + $0x498] sm:$0xff]  }
0x243b   :  { %v8053_v63 = vcombine.high %v7980_v31, %v7988_v21  ;;  %v8052_v4 = vcombine.low %v7980_v31, %v7988_v21  ;;  %v9210_v31 = vld [vmem:[%s12010_s18 + $0x468] sm:$0xff]  }
0x243c   :  { %8104 = vmatmul.mubr.msk.bf16.vlgmr.msra.gmra.mrb[100].mxu1 %vm255_vm2, %v11380_v22  ;;  %8105 = vmatmul.mubr.msk.bf16.vlgmr.msra.gmra.mrb[120].mxu0 %vm255_vm2, %v11380_v22  ;;  %v9211_v21 = vld [vmem:[%s12010_s18 + $0x4e8] sm:$0xff]  }
0x243d   :  { %5852 = vmatpush1.bf16.msra.mxu1 %v8044_v42  ;;  %5895 = vmatpush1.bf16.msra.mxu0 %v8046_v13  ;;  %v7995_v42 = vld [vmem:[%s12009_s16 + $0x2a8] sm:$0xff]  ;;  %v8050_v13 = vcombine.low %v7979_v12, %v7987_v58 }
0x243e   :  { %5853 = vmatprep.subr.bf16.mxu1 %v8061_v38  ;;  %5896 = vmatprep.subr.bf16.mxu0 %v8063_v30  ;;  %v8067_v48 = vcombine.high %v7995_v42, %v8003_v23  ;;  %v8066_v36 = vcombine.low %v7995_v42, %v8003_v23  ;;  %v7981_v38 = vld [vmem:[%s12009_s16 + $0x238] sm:$0xff] }
0x243f   :  { %5883 = vmatprep.mubr.bf16.mxu1 %v9488_v1  ;;  %5926 = vmatprep.mubr.bf16.mxu0 %v9488_v1  ;;  %v7989_v30 = vld [vmem:[%s12009_s16 + $0x278] sm:$0xff] }
0x2440   :  { %v8055_v27 = vcombine.high %v7981_v38, %v7989_v30  ;;  %v8054_v10 = vcombine.low %v7981_v38, %v7989_v30  ;;  %v9212_v38 = vld [vmem:[%s12010_s18 + $0x428] sm:$0xff]  }
0x2441   :  { %5854 = vmatpush1.bf16.msra.mxu1 %v8060_v7  ;;  %5897 = vmatpush1.bf16.msra.mxu0 %v8062_v33  ;;  %v7996_v7 = vld [vmem:[%s12009_s16 + $0x2b0] sm:$0xff]  ;;  %v9213_v30 = vld [vmem:[%s12010_s18 + $0x4a8] sm:$0xff]  }
0x2442   :  { %5855 = vmatprep.subr.bf16.mxu1 %v8077_v16  ;;  %5898 = vmatprep.subr.bf16.mxu0 %v8079_v59  ;;  %v8004_v33 = vld [vmem:[%s12009_s16 + $0x2f0] sm:$0xff]  ;;  %v7997_v16 = vld [vmem:[%s12009_s16 + $0x2b8] sm:$0xff] }
0x2443   :  { %v8005_v59 = vld [vmem:[%s12009_s16 + $0x2f8] sm:$0xff]  ;;  %v8069_v39 = vcombine.high %v7996_v7, %v8004_v33  ;;  %v8068_v11 = vcombine.low %v7996_v7, %v8004_v33 }
0x2444   :  { %v8071_v26 = vcombine.high %v7997_v16, %v8005_v59  ;;  %v8070_v44 = vcombine.low %v7997_v16, %v8005_v59  ;;  %v9218_v7 = vld [vmem:[%s12010_s18 + $0x478] sm:$0xff]  }
0x2445   :  { %5856 = vmatpush1.bf16.msra.mxu1 %v8076_v15  ;;  %5899 = vmatpush1.bf16.msra.mxu0 %v8078_v55  ;;  %v8012_v15 = vld [vmem:[%s12009_s16 + $0x330] sm:$0xff]  ;;  %v9219_v33 = vld [vmem:[%s12010_s18 + $0x4f8] sm:$0xff]  }
0x2446   :  { %5857 = vmatprep.subr.bf16.mxu1 %v8093_v28  ;;  %5900 = vmatprep.subr.bf16.mxu0 %v8095_v32  ;;  %v8020_v55 = vld [vmem:[%s12009_s16 + $0x370] sm:$0xff]  ;;  %v8013_v28 = vld [vmem:[%s12009_s16 + $0x338] sm:$0xff] }
0x2447   :  { %v8021_v32 = vld [vmem:[%s12009_s16 + $0x378] sm:$0xff]  ;;  %v8085_v12 = vcombine.high %v8012_v15, %v8020_v55  ;;  %v8084_v37 = vcombine.low %v8012_v15, %v8020_v55 }
0x2448   :  { %v8087_v58 = vcombine.high %v8013_v28, %v8021_v32  ;;  %v8086_v47 = vcombine.low %v8013_v28, %v8021_v32  ;;  %v9220_v16 = vld [vmem:[%s12010_s18 + $0x438] sm:$0xff]  }
0x2449   :  { %5858 = vmatpush1.bf16.msra.mxu1 %v8092_v41  ;;  %5901 = vmatpush1.bf16.msra.mxu0 %v8094_v34  ;;  %v8028_v41 = vld [vmem:[%s12009_s16 + $0x3b0] sm:$0xff]  ;;  %v9221_v59 = vld [vmem:[%s12010_s18 + $0x4b8] sm:$0xff]  }
0x244a   :  { %5937 = vmatprep.subr.bf16.mxu1 %v8049_v29  ;;  %5980 = vmatprep.subr.bf16.mxu0 %v8051_v46  ;;  %v8036_v34 = vld [vmem:[%s12009_s16 + $0x3f0] sm:$0xff]  ;;  %v8029_v29 = vld [vmem:[%s12009_s16 + $0x3b8] sm:$0xff] }
0x244b   :  { %v8037_v46 = vld [vmem:[%s12009_s16 + $0x3f8] sm:$0xff]  ;;  %v8101_v42 = vcombine.high %v8028_v41, %v8036_v34 }
0x244c   :  { %8106 = vmatmul.mubr.msk.bf16.vlgmr.msra.gmra.mrb[104].mxu1 %vm255_vm2, %v11380_v22  ;;  %8107 = vmatmul.mubr.msk.bf16.vlgmr.msra.gmra.mrb[124].mxu0 %vm255_vm2, %v11380_v22  ;;  %v8103_v23 = vcombine.high %v8029_v29, %v8037_v46 }
0x244d   :  { %5938 = vmatpush1.bf16.msra.mxu1 %v8048_v14  ;;  %5981 = vmatpush1.bf16.msra.mxu0 %v8050_v13  ;;  %v8100_v14 = vcombine.low %v8028_v41, %v8036_v34  ;;  %v8102_v13 = vcombine.low %v8029_v29, %v8037_v46 }
0x244e   :  { %5939 = vmatprep.subr.bf16.mxu1 %v8065_v24  ;;  %5982 = vmatprep.subr.bf16.mxu0 %v8067_v48  ;;  %v9190_v24 = vld [vmem:[%s12010_s18 + $0x440] sm:$0xff]  }
0x244f   :  { %5969 = vmatprep.mubr.bf16.mxu1 %v9488_v1  ;;  %6012 = vmatprep.mubr.bf16.mxu0 %v9488_v1  ;;  %v9192_v48 = vld [vmem:[%s12010_s18 + $0x400] sm:$0xff]  }
0x2451   :  { %5940 = vmatpush1.bf16.msra.mxu1 %v8064_v61  ;;  %5983 = vmatpush1.bf16.msra.mxu0 %v8066_v36  ;;  %v9197_v61 = vld [vmem:[%s12010_s18 + $0x488] sm:$0xff]   ;;  %v9198_v36 = vld [vmem:[%s12010_s18 + $0x450] sm:$0xff]  }
0x2452   :  { %5941 = vmatprep.subr.bf16.mxu1 %v8081_v2  ;;  %5984 = vmatprep.subr.bf16.mxu0 %v8083_v9  ;;  %v9200_v2 = vld [vmem:[%s12010_s18 + $0x410] sm:$0xff]  }
0x2453   :  { %v9201_v9 = vld [vmem:[%s12010_s18 + $0x490] sm:$0xff]  }
0x2455   :  { %5942 = vmatpush1.bf16.msra.mxu1 %v8080_v57  ;;  %5985 = vmatpush1.bf16.msra.mxu0 %v8082_v51  ;;  %v9206_v57 = vld [vmem:[%s12010_s18 + $0x460] sm:$0xff]  }
0x2456   :  { %5943 = vmatprep.subr.bf16.mxu1 %v8097_v43  ;;  %5986 = vmatprep.subr.bf16.mxu0 %v8099_v8  ;;  %v9207_v51 = vld [vmem:[%s12010_s18 + $0x4e0] sm:$0xff]  }
0x2457   :  { %v9208_v43 = vld [vmem:[%s12010_s18 + $0x420] sm:$0xff]  }
0x2458   :  { %v9209_v8 = vld [vmem:[%s12010_s18 + $0x4a0] sm:$0xff]  }
0x2459   :  { %5944 = vmatpush1.bf16.msra.mxu1 %v8096_v5  ;;  %5987 = vmatpush1.bf16.msra.mxu0 %v8098_v17  ;;  %v9214_v5 = vld [vmem:[%s12010_s18 + $0x470] sm:$0xff]  }
0x245a   :  { %6023 = vmatprep.subr.bf16.mxu1 %v8053_v63  ;;  %6066 = vmatprep.subr.bf16.mxu0 %v8055_v27  ;;  %v9215_v17 = vld [vmem:[%s12010_s18 + $0x4f0] sm:$0xff]  }
0x245b   :  { %v9216_v63 = vld [vmem:[%s12010_s18 + $0x430] sm:$0xff]  }
0x245c   :  { %8108 = vmatmul.mubr.msk.bf16.vlgmr.msra.gmra.mrb[108].mxu1 %vm255_vm2, %v11380_v22  ;;  %8109 = vmatmul.mubr.msk.bf16.vlgmr.msra.gmra.mrb[128].mxu0 %vm255_vm2, %v11380_v22  ;;  %v9217_v27 = vld [vmem:[%s12010_s18 + $0x4b0] sm:$0xff]  }
0x245d   :  { %6024 = vmatpush1.bf16.msra.mxu1 %v8052_v4  ;;  %6067 = vmatpush1.bf16.msra.mxu0 %v8054_v10  ;;  %v9222_v4 = vld [vmem:[%s12010_s18 + $0x540] sm:$0xff]  }
0x245e   :  { %6025 = vmatprep.subr.bf16.mxu1 %v8069_v39  ;;  %6068 = vmatprep.subr.bf16.mxu0 %v8071_v26  ;;  %v9223_v10 = vld [vmem:[%s12010_s18 + $0x5c0] sm:$0xff]   ;;  %v8038_v39 = vld [vmem:[%s12013_s17 + $0x10] sm:$0xff] }
0x245f   :  { %6055 = vmatprep.mubr.bf16.mxu1 %v9488_v1  ;;  %6098 = vmatprep.mubr.bf16.mxu0 %v9488_v1  ;;  %v9191_v1 = vld [vmem:[%s12010_s18 + $0x4c0] sm:$0xff]   ;;  %v5365_v26 = vrot.slane %v8038_v39, %v9686_v18  ;;  %v5373_v15 = vrot.slane %v8038_v39, %v10817_v35  ;;  %v5369_v55 = vrot.slane %v8038_v39, %v9692_v20 }
0x2460   :  { %v5377_v28 = vrot.slane %v8038_v39, %v10823_v49 }
0x2461   :  { %6026 = vmatpush1.bf16.msra.mxu1 %v8068_v11  ;;  %6069 = vmatpush1.bf16.msra.mxu0 %v8070_v44 }
0x2462   :  { %6027 = vmatprep.subr.bf16.mxu1 %v8085_v12  ;;  %6070 = vmatprep.subr.bf16.mxu0 %v8087_v58 }
0x2465   :  { %6028 = vmatpush1.bf16.msra.mxu1 %v8084_v37  ;;  %6071 = vmatpush1.bf16.msra.mxu0 %v8086_v47 }
0x2466   :  { %6029 = vmatprep.subr.bf16.mxu1 %v8101_v42  ;;  %6072 = vmatprep.subr.bf16.mxu0 %v8103_v23 }
0x2469   :  { %6030 = vmatpush1.bf16.msra.mxu1 %v8100_v14  ;;  %6073 = vmatpush1.bf16.msra.mxu0 %v8102_v13 }
0x246a   :  { %8712 = vmatprep.subr.bf16.mxu1 %v9190_v24  ;;  %8734 = vmatprep.subr.bf16.mxu0 %v9191_v1 }
0x246c   :  { %8110 = vmatmul.mubr.msk.bf16.vlgmr.msra.gmra.mrb[112].mxu1 %vm255_vm2, %v11380_v22  ;;  %8111 = vmatmul.mubr.msk.bf16.vlgmr.msra.gmra.mrb[132].mxu0 %vm255_vm2, %v11380_v22  ;;  %v9199_v22 = vld [vmem:[%s12010_s18 + $0x4d0] sm:$0xff]  }
0x246d   :  { %8713 = vmatpush3.bf16.msra.mxu1 %v9192_v48  ;;  %8735 = vmatpush3.bf16.msra.mxu0 %v9193_v52 }
0x246e   :  { %8714 = vmatprep.subr.bf16.mxu1 %v9194_v50  ;;  %8736 = vmatprep.subr.bf16.mxu0 %v9195_v6 }
0x2471   :  { %8715 = vmatpush3.bf16.msra.mxu1 %v9196_v40  ;;  %8737 = vmatpush3.bf16.msra.mxu0 %v9197_v61 }
0x2472   :  { %8716 = vmatprep.subr.bf16.mxu1 %v9198_v36  ;;  %8738 = vmatprep.subr.bf16.mxu0 %v9199_v22 }
0x2475   :  { %8717 = vmatpush3.bf16.msra.mxu1 %v9200_v2  ;;  %8739 = vmatpush3.bf16.msra.mxu0 %v9201_v9 }
0x2476   :  { %8718 = vmatprep.subr.bf16.mxu1 %v9202_v25  ;;  %8740 = vmatprep.subr.bf16.mxu0 %v9203_v45  ;;  %v9224_v45 = vld [vmem:[%s12010_s18 + $0x500] sm:$0xff]  }
0x2479   :  { %8719 = vmatpush3.bf16.msra.mxu1 %v9204_v56  ;;  %8741 = vmatpush3.bf16.msra.mxu0 %v9205_v62  ;;  %v9225_v56 = vld [vmem:[%s12010_s18 + $0x580] sm:$0xff]   ;;  %v9226_v62 = vld [vmem:[%s12010_s18 + $0x548] sm:$0xff]  }
0x247a   :  { %8720 = vmatprep.subr.bf16.mxu1 %v9206_v57  ;;  %8742 = vmatprep.subr.bf16.mxu0 %v9207_v51  ;;  %v9227_v57 = vld [vmem:[%s12010_s18 + $0x5c8] sm:$0xff]  }
0x247b   :  { %v9228_v51 = vld [vmem:[%s12010_s18 + $0x508] sm:$0xff]  }
0x247d   :  { %8721 = vmatpush3.bf16.msra.mxu1 %v9208_v43  ;;  %8743 = vmatpush3.bf16.msra.mxu0 %v9209_v8  ;;  %v9229_v43 = vld [vmem:[%s12010_s18 + $0x588] sm:$0xff]   ;;  %v5381_v8 = vrot.slane %v8038_v39, %v10842_v19 }
0x247e   :  { %8722 = vmatprep.subr.bf16.mxu1 %v9210_v31  ;;  %8744 = vmatprep.subr.bf16.mxu0 %v9211_v21  ;;  %v5389_v31 = vrot.slane %v8038_v39, %v10845_v54  ;;  %v9230_v21 = vld [vmem:[%s12010_s18 + $0x550] sm:$0xff]  }
0x2481   :  { %8723 = vmatpush3.bf16.msra.mxu1 %v9212_v38  ;;  %8745 = vmatpush3.bf16.msra.mxu0 %v9213_v30  ;;  %v9231_v38 = vld [vmem:[%s12010_s18 + $0x5d0] sm:$0xff]   ;;  %v5385_v30 = vrot.slane %v8038_v39, %v10848_v60 }
0x2482   :  { %8724 = vmatprep.subr.bf16.mxu1 %v9214_v5  ;;  %8746 = vmatprep.subr.bf16.mxu0 %v9215_v17  ;;  %v5393_v5 = vrot.slane %v8038_v39, %v10851_v53  ;;  %v9235_v39 = vld [vmem:[%s12010_s18 + $0x5d8] sm:$0xff]  }
0x2485   :  { %8725 = vmatpush3.bf16.msra.mxu1 %v9216_v63  ;;  %8747 = vmatpush3.bf16.msra.mxu0 %v9217_v27  ;;  %v9232_v27 = vld [vmem:[%s12010_s18 + $0x510] sm:$0xff]  }
0x2486   :  { %8726 = vmatprep.subr.bf16.mxu1 %v9218_v7  ;;  %8748 = vmatprep.subr.bf16.mxu0 %v9219_v33  ;;  %v9233_v7 = vld [vmem:[%s12010_s18 + $0x590] sm:$0xff]  }
0x2489   :  { %8727 = vmatpush3.bf16.msra.mxu1 %v9220_v16  ;;  %8749 = vmatpush3.bf16.msra.mxu0 %v9221_v59 }
0x248a   :  { %8756 = vmatprep.subr.bf16.mxu1 %v9222_v4  ;;  %8778 = vmatprep.subr.bf16.mxu0 %v9223_v10  ;;  %v9234_v10 = vld [vmem:[%s12010_s18 + $0x558] sm:$0xff]  }
0x250f   :  { %v5799_v32 = vpop.f32.mrb[100].mxu1  ;;  %v5842_v11 = vpop.f32.mrb[120].mxu0 }
0x2510   :  { %v5800_v44 = vadd.f32 %v5799_v32, %v5365_v26  ;;  %v5843_v12 = vadd.f32 %v5842_v11, %v5373_v15  ;;  %v5801_v58 = vpop.f32.mrb[101].mxu1  ;;  %v5844_v41 = vpop.f32.mrb[121].mxu0 }
0x2511   :  { %v5802_v34 = vadd.f32 %v5801_v58, %v5369_v55  ;;  %v5845_v29 = vadd.f32 %v5844_v41, %v5377_v28  ;;  %v5803_v46 = vpop.f32.mrb[102].mxu1  ;;  %v5846_v37 = vpop.f32.mrb[122].mxu0 }
0x2512   :  { %v5804_v47 = vadd.f32 %v5803_v46, %v5365_v26  ;;  %v5847_v42 = vadd.f32 %v5846_v37, %v5373_v15  ;;  %v5805_v23 = vpop.f32.mrb[103].mxu1  ;;  %v5848_v14 = vpop.f32.mrb[123].mxu0  ;;  %v6109_v1 = vmax.f32 %v5800_v44, 0.0  ;;  %v6111_v48 = vmax.f32 %v5843_v12, 0.0 }
0x2513   :  { %v5806_v13 = vadd.f32 %v5805_v23, %v5369_v55  ;;  %v5849_v24 = vadd.f32 %v5848_v14, %v5377_v28  ;;  %v6110_v6 = vmax.f32 %v5802_v34, 0.0  ;;  %v6112_v40 = vmax.f32 %v5845_v29, 0.0  ;;  %v9236_v34 = vld [vmem:[%s12010_s18 + $0x518] sm:$0xff]   ;;  %v9238_v23 = vld [vmem:[%s12010_s18 + $0x560] sm:$0xff]  }
0x2514   :  { %v6125_v52 = vmax.f32 %v5804_v47, 0.0  ;;  %v6127_v50 = vmax.f32 %v5847_v42, 0.0  ;;  %v9237_v29 = vld [vmem:[%s12010_s18 + $0x598] sm:$0xff]   ;;  %v9239_v14 = vld [vmem:[%s12010_s18 + $0x5e0] sm:$0xff]  }
0x2515   :  { %v6126_v61 = vmax.f32 %v5806_v13, 0.0  ;;  %v6128_v36 = vmax.f32 %v5849_v24, 0.0 }
0x2516   :  { %v6141_v22 = vpack.c.bf16 %v6125_v52, %v6109_v1  ;;  %v6143_v2 = vpack.c.bf16 %v6127_v50, %v6111_v48 }
0x2517   :  { %v6142_v9 = vpack.c.bf16 %v6126_v61, %v6110_v6  ;;  %v6144_v25 = vpack.c.bf16 %v6128_v36, %v6112_v40  ;;  %v9240_v61 = vld [vmem:[%s12010_s18 + $0x520] sm:$0xff]  }
0x2518   :  { %v9241_v36 = vld [vmem:[%s12010_s18 + $0x5a0] sm:$0xff]  }
0x2519   :  { %7222 = vmatprep.mubr.bf16.mxu1 %v6142_v9  ;;  %7262 = vmatprep.mubr.bf16.mxu0 %v6144_v25  ;;  %v11704_v9 = vld [vmem:[%s12013_s17 + $0x18] sm:$0xff]  ;;  %v9244_v25 = vld [vmem:[%s12010_s18 + $0x528] sm:$0xff]  }
0x251a   :  { %7223 = vmatmul.mubr.bf16.vlgmr.msra.gmra.mrb[116].mxu1 %v6141_v22  ;;  %7263 = vmatmul.mubr.bf16.vlgmr.msra.gmra.mrb[136].mxu0 %v6143_v2  ;;  %v9242_v22 = vld [vmem:[%s12010_s18 + $0x568] sm:$0xff]  }
0x251b   :  { %8757 = vmatpush3.bf16.msra.mxu1 %v9224_v45  ;;  %8779 = vmatpush3.bf16.msra.mxu0 %v9225_v56  ;;  %v9243_v2 = vld [vmem:[%s12010_s18 + $0x5e8] sm:$0xff]   ;;  %v5397_v56 = vrot.slane %v11704_v9, %v9686_v18  ;;  %v9248_v18 = vld [vmem:[%s12010_s18 + $0x530] sm:$0xff]  }
0x251c   :  { %8758 = vmatprep.subr.bf16.mxu1 %v9226_v62  ;;  %8780 = vmatprep.subr.bf16.mxu0 %v9227_v57  ;;  %v9245_v45 = vld [vmem:[%s12010_s18 + $0x5a8] sm:$0xff]   ;;  %v5405_v62 = vrot.slane %v11704_v9, %v10817_v35  ;;  %v9246_v57 = vld [vmem:[%s12010_s18 + $0x570] sm:$0xff]  }
0x251d   :  { %v9249_v35 = vld [vmem:[%s12010_s18 + $0x5b0] sm:$0xff]  }
0x251f   :  { %v5885_v17 = vpop.f32.mrb[104].mxu1  ;;  %v5928_v63 = vpop.f32.mrb[124].mxu0  ;;  %8759 = vmatpush3.bf16.msra.mxu1 %v9228_v51  ;;  %8781 = vmatpush3.bf16.msra.mxu0 %v9229_v43  ;;  %v9247_v51 = vld [vmem:[%s12010_s18 + $0x5f0] sm:$0xff]   ;;  %v5401_v43 = vrot.slane %v11704_v9, %v9692_v20  ;;  %v9250_v20 = vld [vmem:[%s12010_s18 + $0x578] sm:$0xff]  }
0x2520   :  { %v5886_v33 = vadd.f32 %v5885_v17, %v5381_v8  ;;  %v5929_v16 = vadd.f32 %v5928_v63, %v5389_v31  ;;  %v5887_v59 = vpop.f32.mrb[105].mxu1  ;;  %v5930_v4 = vpop.f32.mrb[125].mxu0  ;;  %8760 = vmatprep.subr.bf16.mxu1 %v9230_v21  ;;  %8782 = vmatprep.subr.bf16.mxu0 %v9231_v38 }
0x2521   :  { %v5888_v26 = vadd.f32 %v5887_v59, %v5385_v30  ;;  %v5931_v15 = vadd.f32 %v5930_v4, %v5393_v5  ;;  %v5889_v55 = vpop.f32.mrb[106].mxu1  ;;  %v5932_v28 = vpop.f32.mrb[126].mxu0 }
0x2522   :  { %v5890_v32 = vadd.f32 %v5889_v55, %v5381_v8  ;;  %v5933_v11 = vadd.f32 %v5932_v28, %v5389_v31  ;;  %v5891_v44 = vpop.f32.mrb[107].mxu1  ;;  %v5934_v12 = vpop.f32.mrb[127].mxu0  ;;  %v6113_v46 = vmax.f32 %v5886_v33, 0.0  ;;  %v6115_v37 = vmax.f32 %v5929_v16, 0.0  ;;  %v9253_v55 = vld [vmem:[%s12010_s18 + $0x5b8] sm:$0xff]  }
0x2523   :  { %v5892_v58 = vadd.f32 %v5891_v44, %v5385_v30  ;;  %v5935_v41 = vadd.f32 %v5934_v12, %v5393_v5  ;;  %8761 = vmatpush3.bf16.msra.mxu1 %v9232_v27  ;;  %8783 = vmatpush3.bf16.msra.mxu0 %v9233_v7  ;;  %v6114_v13 = vmax.f32 %v5888_v26, 0.0  ;;  %v6116_v24 = vmax.f32 %v5931_v15, 0.0  ;;  %v9252_v15 = vld [vmem:[%s12010_s18 + $0x538] sm:$0xff]   ;;  %v9254_v12 = vld [vmem:[%s12010_s18 + $0x640] sm:$0xff]  }
0x2524   :  { %v6129_v47 = vmax.f32 %v5890_v32, 0.0  ;;  %v6131_v42 = vmax.f32 %v5933_v11, 0.0  ;;  %8762 = vmatprep.subr.bf16.mxu1 %v9234_v10  ;;  %8784 = vmatprep.subr.bf16.mxu0 %v9235_v39  ;;  %v5409_v8 = vrot.slane %v11704_v9, %v10823_v49  ;;  %v9251_v49 = vld [vmem:[%s12010_s18 + $0x5f8] sm:$0xff]  }
0x2525   :  { %v6130_v1 = vmax.f32 %v5892_v58, 0.0  ;;  %v6132_v48 = vmax.f32 %v5935_v41, 0.0  ;;  %v9255_v58 = vld [vmem:[%s12010_s18 + $0x6c0] sm:$0xff]  }
0x2526   :  { %v11685_v52 = vpack.c.bf16 %v6129_v47, %v6113_v46  ;;  %v11687_v50 = vpack.c.bf16 %v6131_v42, %v6115_v37 }
0x2527   :  { %v6146_v6 = vpack.c.bf16 %v6130_v1, %v6114_v13  ;;  %v6148_v40 = vpack.c.bf16 %v6132_v48, %v6116_v24  ;;  %8763 = vmatpush3.bf16.msra.mxu1 %v9236_v34  ;;  %8785 = vmatpush3.bf16.msra.mxu0 %v9237_v29  ;;  %v9257_v13 = vld [vmem:[%s12010_s18 + $0x680] sm:$0xff]   ;;  %v9258_v24 = vld [vmem:[%s12010_s18 + $0x648] sm:$0xff]  }
0x2528   :  { %8764 = vmatprep.subr.bf16.mxu1 %v9238_v23  ;;  %8786 = vmatprep.subr.bf16.mxu0 %v9239_v14  ;;  %v9256_v14 = vld [vmem:[%s12010_s18 + $0x600] sm:$0xff]   ;;  %v9259_v1 = vld [vmem:[%s12010_s18 + $0x6c8] sm:$0xff]  }
0x2529   :  { %7302 = vmatprep.mubr.bf16.mxu1 %v6146_v6  ;;  %7342 = vmatprep.mubr.bf16.mxu0 %v6148_v40  ;;  %v9260_v48 = vld [vmem:[%s12010_s18 + $0x608] sm:$0xff]   ;;  %v5413_v6 = vrot.slane %v11704_v9, %v10842_v19  ;;  %v5421_v40 = vrot.slane %v11704_v9, %v10845_v54  ;;  %v9263_v19 = vld [vmem:[%s12010_s18 + $0x6d0] sm:$0xff]  }
0x252b   :  { %8765 = vmatpush3.bf16.msra.mxu1 %v9240_v61  ;;  %8787 = vmatpush3.bf16.msra.mxu0 %v9241_v36  ;;  %v5417_v61 = vrot.slane %v11704_v9, %v10848_v60  ;;  %v5425_v36 = vrot.slane %v11704_v9, %v10851_v53  ;;  %v9265_v60 = vld [vmem:[%s12010_s18 + $0x690] sm:$0xff]   ;;  %v9266_v53 = vld [vmem:[%s12010_s18 + $0x658] sm:$0xff]  }
0x252c   :  { %8766 = vmatprep.subr.bf16.mxu1 %v9242_v22  ;;  %8788 = vmatprep.subr.bf16.mxu0 %v9243_v2  ;;  %v9264_v2 = vld [vmem:[%s12010_s18 + $0x610] sm:$0xff]  }
0x252f   :  { %v5971_v31 = vpop.f32.mrb[108].mxu1  ;;  %v6014_v21 = vpop.f32.mrb[128].mxu0  ;;  %8767 = vmatpush3.bf16.msra.mxu1 %v9244_v25  ;;  %8789 = vmatpush3.bf16.msra.mxu0 %v9245_v45 }
0x2530   :  { %v5972_v38 = vadd.f32 %v5971_v31, %v5397_v56  ;;  %v6015_v30 = vadd.f32 %v6014_v21, %v5405_v62  ;;  %v5973_v5 = vpop.f32.mrb[109].mxu1  ;;  %v6016_v17 = vpop.f32.mrb[129].mxu0  ;;  %8768 = vmatprep.subr.bf16.mxu1 %v9246_v57  ;;  %8790 = vmatprep.subr.bf16.mxu0 %v9247_v51 }
0x2531   :  { %v5974_v63 = vadd.f32 %v5973_v5, %v5401_v43  ;;  %v6017_v27 = vadd.f32 %v6016_v17, %v5409_v8  ;;  %v5975_v7 = vpop.f32.mrb[110].mxu1  ;;  %v6018_v33 = vpop.f32.mrb[130].mxu0  ;;  %v9268_v5 = vld [vmem:[%s12010_s18 + $0x618] sm:$0xff]  }
0x2532   :  { %v5976_v16 = vadd.f32 %v5975_v7, %v5397_v56  ;;  %v6019_v59 = vadd.f32 %v6018_v33, %v5405_v62  ;;  %v5977_v4 = vpop.f32.mrb[111].mxu1  ;;  %v6020_v10 = vpop.f32.mrb[131].mxu0  ;;  %v6117_v28 = vmax.f32 %v5972_v38, 0.0  ;;  %v6119_v32 = vmax.f32 %v6015_v30, 0.0  ;;  %v9270_v7 = vld [vmem:[%s12010_s18 + $0x660] sm:$0xff]  }
0x2533   :  { %v5978_v39 = vadd.f32 %v5977_v4, %v5401_v43  ;;  %v6021_v26 = vadd.f32 %v6020_v10, %v5409_v8  ;;  %8769 = vmatpush3.bf16.msra.mxu1 %v9248_v18  ;;  %8791 = vmatpush3.bf16.msra.mxu0 %v9249_v35  ;;  %v6118_v41 = vmax.f32 %v5974_v63, 0.0  ;;  %v6120_v34 = vmax.f32 %v6017_v27, 0.0  ;;  %v9267_v8 = vld [vmem:[%s12010_s18 + $0x6d8] sm:$0xff]   ;;  %v9271_v10 = vld [vmem:[%s12010_s18 + $0x6e0] sm:$0xff]  }
0x2534   :  { %v6133_v11 = vmax.f32 %v5976_v16, 0.0  ;;  %v6135_v44 = vmax.f32 %v6019_v59, 0.0  ;;  %8770 = vmatprep.subr.bf16.mxu1 %v9250_v20  ;;  %8792 = vmatprep.subr.bf16.mxu0 %v9251_v49  ;;  %v9269_v27 = vld [vmem:[%s12010_s18 + $0x698] sm:$0xff]  }
0x2535   :  { %v6134_v29 = vmax.f32 %v5978_v39, 0.0  ;;  %v6136_v46 = vmax.f32 %v6021_v26, 0.0 }
0x2536   :  { %v11750_v37 = vpack.c.bf16 %v6133_v11, %v6117_v28  ;;  %v11752_v47 = vpack.c.bf16 %v6135_v44, %v6119_v32  ;;  %v9272_v28 = vld [vmem:[%s12010_s18 + $0x620] sm:$0xff]   ;;  %v9274_v11 = vld [vmem:[%s12010_s18 + $0x668] sm:$0xff]  }
0x2537   :  { %v6150_v42 = vpack.c.bf16 %v6134_v29, %v6118_v41  ;;  %v6152_v23 = vpack.c.bf16 %v6136_v46, %v6120_v34  ;;  %8771 = vmatpush3.bf16.msra.mxu1 %v9252_v15  ;;  %8793 = vmatpush3.bf16.msra.mxu0 %v9253_v55  ;;  %v9273_v32 = vld [vmem:[%s12010_s18 + $0x6a0] sm:$0xff]   ;;  %v9275_v44 = vld [vmem:[%s12010_s18 + $0x6e8] sm:$0xff]   ;;  %v9278_v41 = vld [vmem:[%s12010_s18 + $0x670] sm:$0xff]  }
0x2538   :  { %8800 = vmatprep.subr.bf16.mxu1 %v9254_v12  ;;  %8822 = vmatprep.subr.bf16.mxu0 %v9255_v58  ;;  %v9276_v12 = vld [vmem:[%s12010_s18 + $0x628] sm:$0xff]   ;;  %v9279_v34 = vld [vmem:[%s12010_s18 + $0x6f0] sm:$0xff]  }
0x2539   :  { %v9277_v58 = vld [vmem:[%s12010_s18 + $0x6a8] sm:$0xff]   ;;  %v9280_v29 = vld [vmem:[%s12010_s18 + $0x630] sm:$0xff]  }
0x253a   :  { %7303 = vmatmul.mubr.bf16.vlgmr.msra.gmra.mrb[120].mxu1 %v11685_v52  ;;  %7343 = vmatmul.mubr.bf16.vlgmr.msra.gmra.mrb[140].mxu0 %v11687_v50  ;;  %v9261_v52 = vld [vmem:[%s12010_s18 + $0x688] sm:$0xff]   ;;  %v9262_v50 = vld [vmem:[%s12010_s18 + $0x650] sm:$0xff]  }
0x253b   :  { %8801 = vmatpush3.bf16.msra.mxu1 %v9256_v14  ;;  %7382 = vmatprep.mubr.bf16.mxu1 %v6150_v42  ;;  %v9281_v46 = vld [vmem:[%s12010_s18 + $0x6b0] sm:$0xff]   ;;  %v9282_v42 = vld [vmem:[%s12010_s18 + $0x678] sm:$0xff]  }
0x253c   :  { %8823 = vmatpush3.bf16.msra.mxu0 %v9257_v13  ;;  %7422 = vmatprep.mubr.bf16.mxu0 %v6152_v23  ;;  %v9283_v23 = vld [vmem:[%s12010_s18 + $0x6f8] sm:$0xff]  }
0x253d   :  { %8802 = vmatprep.subr.bf16.mxu1 %v9258_v24  ;;  %8824 = vmatprep.subr.bf16.mxu0 %v9259_v1  ;;  %v9284_v14 = vld [vmem:[%s12010_s18 + $0x638] sm:$0xff]   ;;  %v9286_v24 = vld [vmem:[%s12010_s18 + $0x740] sm:$0xff]  }
0x253e   :  { %v9285_v13 = vld [vmem:[%s12010_s18 + $0x6b8] sm:$0xff]   ;;  %v9287_v1 = vld [vmem:[%s12010_s18 + $0x7c0] sm:$0xff]  }
0x253f   :  { %v6057_v54 = vpop.f32.mrb[112].mxu1  ;;  %v6100_v22 = vpop.f32.mrb[132].mxu0  ;;  %8803 = vmatpush3.bf16.msra.mxu1 %v9260_v48  ;;  %v9288_v48 = vld [vmem:[%s12010_s18 + $0x700] sm:$0xff]  }
0x2540   :  { %v6058_v25 = vadd.f32 %v6057_v54, %v5413_v6  ;;  %v6101_v45 = vadd.f32 %v6100_v22, %v5421_v40  ;;  %8825 = vmatpush3.bf16.msra.mxu0 %v9261_v52  ;;  %v6059_v56 = vpop.f32.mrb[113].mxu1  ;;  %v6102_v62 = vpop.f32.mrb[133].mxu0  ;;  %8804 = vmatprep.subr.bf16.mxu1 %v9262_v50  ;;  %v9291_v52 = vld [vmem:[%s12010_s18 + $0x7c8] sm:$0xff]   ;;  %v9298_v54 = vld [vmem:[%s12010_s18 + $0x758] sm:$0xff]  }
0x2541   :  { %v6060_v9 = vadd.f32 %v6059_v56, %v5417_v61  ;;  %v6103_v57 = vadd.f32 %v6102_v62, %v5425_v36  ;;  %v6061_v51 = vpop.f32.mrb[114].mxu1  ;;  %v6104_v43 = vpop.f32.mrb[134].mxu0  ;;  %8826 = vmatprep.subr.bf16.mxu0 %v9263_v19  ;;  %v9292_v50 = vld [vmem:[%s12010_s18 + $0x708] sm:$0xff]   ;;  %v9297_v19 = vld [vmem:[%s12010_s18 + $0x790] sm:$0xff]   ;;  %v9299_v22 = vld [vmem:[%s12010_s18 + $0x7d8] sm:$0xff]  }
0x2542   :  { %v6062_v31 = vadd.f32 %v6061_v51, %v5413_v6  ;;  %v6105_v21 = vadd.f32 %v6104_v43, %v5421_v40  ;;  %v6063_v18 = vpop.f32.mrb[115].mxu1  ;;  %v6106_v35 = vpop.f32.mrb[135].mxu0  ;;  %v6121_v17 = vmax.f32 %v6058_v25, 0.0  ;;  %v6123_v20 = vmax.f32 %v6101_v45, 0.0  ;;  %v9289_v6 = vld [vmem:[%s12010_s18 + $0x780] sm:$0xff]   ;;  %v9290_v40 = vld [vmem:[%s12010_s18 + $0x748] sm:$0xff]  }
0x2543   :  { %v6064_v38 = vadd.f32 %v6063_v18, %v5417_v61  ;;  %v6107_v30 = vadd.f32 %v6106_v35, %v5425_v36  ;;  %8805 = vmatpush3.bf16.msra.mxu1 %v9264_v2  ;;  %v6122_v33 = vmax.f32 %v6060_v9, 0.0  ;;  %v6124_v16 = vmax.f32 %v6103_v57, 0.0  ;;  %v9293_v61 = vld [vmem:[%s12010_s18 + $0x788] sm:$0xff]   ;;  %v9296_v36 = vld [vmem:[%s12010_s18 + $0x710] sm:$0xff]   ;;  %v9300_v2 = vld [vmem:[%s12010_s18 + $0x718] sm:$0xff]  }
0x2544   :  { %v6137_v49 = vmax.f32 %v6062_v31, 0.0  ;;  %v6139_v63 = vmax.f32 %v6105_v21, 0.0  ;;  %8827 = vmatpush3.bf16.msra.mxu0 %v9265_v60  ;;  %8806 = vmatprep.subr.bf16.mxu1 %v9266_v53  ;;  %v9301_v25 = vld [vmem:[%s12010_s18 + $0x798] sm:$0xff]   ;;  %v9302_v45 = vld [vmem:[%s12010_s18 + $0x760] sm:$0xff]   ;;  %v9306_v53 = vld [vmem:[%s12010_s18 + $0x768] sm:$0xff]  }
0x2545   :  { %v6138_v59 = vmax.f32 %v6064_v38, 0.0  ;;  %v6140_v4 = vmax.f32 %v6107_v30, 0.0  ;;  %8828 = vmatprep.subr.bf16.mxu0 %v9267_v8  ;;  %v9303_v56 = vld [vmem:[%s12010_s18 + $0x7e0] sm:$0xff]   ;;  %v9307_v9 = vld [vmem:[%s12010_s18 + $0x7e8] sm:$0xff]   ;;  %v9310_v43 = vld [vmem:[%s12010_s18 + $0x770] sm:$0xff]  }
0x2546   :  { %v11812_v39 = vpack.c.bf16 %v6137_v49, %v6121_v17  ;;  %v11814_v26 = vpack.c.bf16 %v6139_v63, %v6123_v20  ;;  %v9304_v62 = vld [vmem:[%s12010_s18 + $0x720] sm:$0xff]   ;;  %v9308_v57 = vld [vmem:[%s12010_s18 + $0x728] sm:$0xff]   ;;  %v9311_v8 = vld [vmem:[%s12010_s18 + $0x7f0] sm:$0xff]  }
0x2547   :  { %v6154_v15 = vpack.c.bf16 %v6138_v59, %v6122_v33  ;;  %v6156_v55 = vpack.c.bf16 %v6140_v4, %v6124_v16  ;;  %8807 = vmatpush3.bf16.msra.mxu1 %v9268_v5  ;;  %v9305_v60 = vld [vmem:[%s12010_s18 + $0x7a0] sm:$0xff]   ;;  %v9309_v51 = vld [vmem:[%s12010_s18 + $0x7a8] sm:$0xff]   ;;  %v9312_v31 = vld [vmem:[%s12010_s18 + $0x730] sm:$0xff]  }
0x2548   :  { %8829 = vmatpush3.bf16.msra.mxu0 %v9269_v27  ;;  %8808 = vmatprep.subr.bf16.mxu1 %v9270_v7  ;;  %v9313_v21 = vld [vmem:[%s12010_s18 + $0x7b0] sm:$0xff]   ;;  %v9314_v18 = vld [vmem:[%s12010_s18 + $0x778] sm:$0xff]   ;;  %v8369_v7 = vld [vmem:[%s12014_s19 + $0x1] ss:$0 sm:$0xff] }
0x2549   :  { %8830 = vmatprep.subr.bf16.mxu0 %v9271_v10  ;;  %v9315_v35 = vld [vmem:[%s12010_s18 + $0x7f8] sm:$0xff]  }
0x254a   :  { %v9316_v38 = vld [vmem:[%s12010_s18 + $0x738] sm:$0xff]  }
0x254b   :  { %8809 = vmatpush3.bf16.msra.mxu1 %v9272_v28  ;;  %v9317_v30 = vld [vmem:[%s12010_s18 + $0x7b8] sm:$0xff]  }
0x254c   :  { %8831 = vmatpush3.bf16.msra.mxu0 %v9273_v32  ;;  %8810 = vmatprep.subr.bf16.mxu1 %v9274_v11 }
0x254d   :  { %8832 = vmatprep.subr.bf16.mxu0 %v9275_v44 }
0x254f   :  { %8811 = vmatpush3.bf16.msra.mxu1 %v9276_v12 }
0x2550   :  { %8833 = vmatpush3.bf16.msra.mxu0 %v9277_v58  ;;  %8812 = vmatprep.subr.bf16.mxu1 %v9278_v41 }
0x2551   :  { %8834 = vmatprep.subr.bf16.mxu0 %v9279_v34 }
0x2553   :  { %8813 = vmatpush3.bf16.msra.mxu1 %v9280_v29 }
0x2554   :  { %8835 = vmatpush3.bf16.msra.mxu0 %v9281_v46  ;;  %8814 = vmatprep.subr.bf16.mxu1 %v9282_v42 }
0x2555   :  { %8836 = vmatprep.subr.bf16.mxu0 %v9283_v23 }
0x2557   :  { %8815 = vmatpush3.bf16.msra.mxu1 %v9284_v14 }
0x2558   :  { %8837 = vmatpush3.bf16.msra.mxu0 %v9285_v13  ;;  %8844 = vmatprep.subr.bf16.mxu1 %v9286_v24 }
0x2559   :  { %8866 = vmatprep.subr.bf16.mxu0 %v9287_v1 }
0x255a   :  { %7383 = vmatmul.mubr.bf16.vlgmr.msra.gmra.mrb[124].mxu1 %v11750_v37  ;;  %v9294_v37 = vld [vmem:[%s12010_s18 + $0x750] sm:$0xff]  }
0x255b   :  { %7423 = vmatmul.mubr.bf16.vlgmr.msra.gmra.mrb[144].mxu0 %v11752_v47  ;;  %8845 = vmatpush3.bf16.msra.mxu1 %v9288_v48  ;;  %v9295_v47 = vld [vmem:[%s12010_s18 + $0x7d0] sm:$0xff]  }
0x255c   :  { %7462 = vmatprep.mubr.bf16.mxu1 %v6154_v15  ;;  %8867 = vmatpush3.bf16.msra.mxu0 %v9289_v6 }
0x255d   :  { %7502 = vmatprep.mubr.bf16.mxu0 %v6156_v55  ;;  %8846 = vmatprep.subr.bf16.mxu1 %v9290_v40 }
0x255e   :  { %8868 = vmatprep.subr.bf16.mxu0 %v9291_v52 }
0x255f   :  { %8847 = vmatpush3.bf16.msra.mxu1 %v9292_v50 }
0x2560   :  { %8869 = vmatpush3.bf16.msra.mxu0 %v9293_v61  ;;  %8848 = vmatprep.subr.bf16.mxu1 %v9294_v37 }
0x2561   :  { %8870 = vmatprep.subr.bf16.mxu0 %v9295_v47 }
0x2563   :  { %8849 = vmatpush3.bf16.msra.mxu1 %v9296_v36 }
0x2564   :  { %8871 = vmatpush3.bf16.msra.mxu0 %v9297_v19  ;;  %8850 = vmatprep.subr.bf16.mxu1 %v9298_v54 }
0x2565   :  { %8872 = vmatprep.subr.bf16.mxu0 %v9299_v22 }
0x2567   :  { %8851 = vmatpush3.bf16.msra.mxu1 %v9300_v2 }
0x2568   :  { %8873 = vmatpush3.bf16.msra.mxu0 %v9301_v25  ;;  %8852 = vmatprep.subr.bf16.mxu1 %v9302_v45 }
0x2569   :  { %8874 = vmatprep.subr.bf16.mxu0 %v9303_v56 }
0x256b   :  { %8853 = vmatpush3.bf16.msra.mxu1 %v9304_v62 }
0x256c   :  { %8875 = vmatpush3.bf16.msra.mxu0 %v9305_v60  ;;  %8854 = vmatprep.subr.bf16.mxu1 %v9306_v53 }
0x256d   :  { %8876 = vmatprep.subr.bf16.mxu0 %v9307_v9 }
0x256f   :  { %8855 = vmatpush3.bf16.msra.mxu1 %v9308_v57 }
0x2570   :  { %8877 = vmatpush3.bf16.msra.mxu0 %v9309_v51  ;;  %8856 = vmatprep.subr.bf16.mxu1 %v9310_v43 }
0x2571   :  { %8878 = vmatprep.subr.bf16.mxu0 %v9311_v8 }
0x2573   :  { %8857 = vmatpush3.bf16.msra.mxu1 %v9312_v31  ;;  %v9318_v31 = vld [vmem:[%s12017_s22] sm:$0xff]  }
0x2574   :  { %8879 = vmatpush3.bf16.msra.mxu0 %v9313_v21  ;;  %8858 = vmatprep.subr.bf16.mxu1 %v9314_v18  ;;  %v9320_v21 = vld [vmem:[%s12017_s22 + $0x10] sm:$0xff]   ;;  %v9321_v18 = vld [vmem:[%s12017_s22 + $0x18] sm:$0xff]  }
0x2575   :  { %8880 = vmatprep.subr.bf16.mxu0 %v9315_v35  ;;  %v29_v35 = vstv %s12018_s23 }
0x2576   :  { %30 = vst [vmem:[#allocation3] sm:$0x1] %v29_v35 }
0x2577   :  { %8859 = vmatpush3.bf16.msra.mxu1 %v9316_v38 }
0x2578   :  { %8881 = vmatpush3.bf16.msra.mxu0 %v9317_v30  ;;  %8973 = vmatprep.subr.bf16.mxu1 %v9490_v0 }
0x257a   :  { %7463 = vmatmul.mubr.bf16.vlgmr.msra.gmra.mrb[128].mxu1 %v11812_v39 }
0x257b   :  { %7503 = vmatmul.mubr.bf16.vlgmr.msra.gmra.mrb[148].mxu0 %v11814_v26  ;;  %8981 = vmatprep.mubr.msk.bf16.mxu1 %vm9491_vm4, %v9490_v0 }
0x257c   :  { %8974 = vmatpush3.bf16.msra.mxu1 %v9318_v31 }
0x257d   :  { %8975 = vmatprep.subr.bf16.mxu1 %v9490_v0 }
0x25ed   :  { %v8728_v5 = vpop.f32.mrb[116].mxu1  ;;  %v8750_v17 = vpop.f32.mrb[136].mxu0 }
0x25ee   :  { %v8729_v20 = vpop.f32.mrb[117].mxu1  ;;  %v8751_v49 = vpop.f32.mrb[137].mxu0 }
0x25ef   :  { %v8731_v63 = vpop.f32.mrb[118].mxu1  ;;  %v8753_v27 = vpop.f32.mrb[138].mxu0  ;;  %v8500_v20 = vld [vmem:[%s12015_s20 + $0x1] ss:$0 sm:$0xff] }
0x25f0   :  { %v8732_v33 = vpop.f32.mrb[119].mxu1  ;;  %v8754_v16 = vpop.f32.mrb[139].mxu0 }
0x25f1   :  { %v8733_v59 = vadd.f32 %v8732_v33, %v8731_v63  ;;  %v8755_v4 = vadd.f32 %v8754_v16, %v8753_v27  ;;  %v8502_v16 = vld [vmem:[#allocation3] ss:$0 sm:$0xff] }
0x25f3   :  { %v7227_v10 = vadd.f32 %v8733_v59, %v8369_v7 }
0x25f5   :  { %v7267_v39 = vadd.f32 %v8755_v4, %v7227_v10 }
0x260d   :  { %v8772_v26 = vpop.f32.mrb[120].mxu1  ;;  %v8794_v15 = vpop.f32.mrb[140].mxu0 }
0x260e   :  { %v8773_v55 = vpop.f32.mrb[121].mxu1  ;;  %v8795_v28 = vpop.f32.mrb[141].mxu0 }
0x260f   :  { %v8775_v32 = vpop.f32.mrb[122].mxu1  ;;  %v8797_v11 = vpop.f32.mrb[142].mxu0 }
0x2610   :  { %v8776_v44 = vpop.f32.mrb[123].mxu1  ;;  %v8798_v12 = vpop.f32.mrb[143].mxu0 }
0x2611   :  { %v8777_v58 = vadd.f32 %v8776_v44, %v8775_v32  ;;  %v8799_v41 = vadd.f32 %v8798_v12, %v8797_v11 }
0x2613   :  { %v7307_v34 = vadd.f32 %v8777_v58, %v7267_v39 }
0x2615   :  { %v7347_v29 = vadd.f32 %v8799_v41, %v7307_v34 }
0x262d   :  { %v8816_v46 = vpop.f32.mrb[124].mxu1 }
0x262e   :  { %v8838_v42 = vpop.f32.mrb[144].mxu0  ;;  %v8817_v23 = vpop.f32.mrb[125].mxu1 }
0x262f   :  { %v8839_v14 = vpop.f32.mrb[145].mxu0  ;;  %v8819_v13 = vpop.f32.mrb[126].mxu1 }
0x2630   :  { %v8841_v24 = vpop.f32.mrb[146].mxu0  ;;  %v8820_v1 = vpop.f32.mrb[127].mxu1 }
0x2631   :  { %v8821_v48 = vadd.f32 %v8820_v1, %v8819_v13  ;;  %v8842_v6 = vpop.f32.mrb[147].mxu0 }
0x2632   :  { %v8843_v40 = vadd.f32 %v8842_v6, %v8841_v24 }
0x2633   :  { %v7387_v52 = vadd.f32 %v8821_v48, %v7347_v29 }
0x2635   :  { %v7427_v50 = vadd.f32 %v8843_v40, %v7387_v52 }
0x264d   :  { %v8860_v61 = vpop.f32.mrb[128].mxu1 }
0x264e   :  { %v8882_v37 = vpop.f32.mrb[148].mxu0  ;;  %v8861_v47 = vpop.f32.mrb[129].mxu1 }
0x264f   :  { %v8883_v36 = vpop.f32.mrb[149].mxu0  ;;  %v8863_v19 = vpop.f32.mrb[130].mxu1 }
0x2650   :  { %v8885_v54 = vpop.f32.mrb[150].mxu0  ;;  %v8864_v22 = vpop.f32.mrb[131].mxu1 }
0x2651   :  { %v8865_v2 = vadd.f32 %v8864_v22, %v8863_v19  ;;  %v8886_v25 = vpop.f32.mrb[151].mxu0 }
0x2652   :  { %v8887_v45 = vadd.f32 %v8886_v25, %v8885_v54 }
0x2653   :  { %v7467_v56 = vadd.f32 %v8865_v2, %v7427_v50 }
0x2655   :  { %v7507_v62 = vadd.f32 %v8887_v45, %v7467_v56 }
0x2657   :  { %v7514_v60 = vadd.f32 %v7507_v62, %v11377_v3  ;;  %v9319_v3 = vld [vmem:[%s12017_s22 + $0x8] sm:$0xff]  }
0x2658   :  { %8976 = vmatpush3.bf16.msra.mxu1 %v9319_v3 }
0x2659   :  { %v7515_v53 = vsel %vm255_vm2, %v7514_v60, 0.0  ;;  %8977 = vmatprep.subr.bf16.mxu1 %v9490_v0 }
0x265a   :  { %7516 = vadd.xlane.f32.xlu1 %v7515_v53 }
0x265c   :  { %8978 = vmatpush3.bf16.msra.mxu1 %v9320_v21 }
0x265d   :  { %8979 = vmatprep.subr.bf16.mxu1 %v9490_v0  ;;  %v8501_v0 = vld [vmem:[%s12016_s21 + $0x1] ss:$0 sm:$0xff] }
0x2660   :  { %8980 = vmatpush3.bf16.msra.mxu1 %v9321_v18 }
0x26e7   :  { %v7517_v9 = vpop.xlane.xlu1 %7516 }
0x26e8   :  { %v7518_v57 = vmul.f32 0.015625, %v7517_v9 }
0x26ea   :  { %v7519_v51 = vsub.f32 %v7514_v60, %v7518_v57 }
0x26ec   :  { %v7520_v43 = vmul.f32 %v7519_v51, %v7519_v51 }
0x26ee   :  { %v7521_v8 = vsel %vm255_vm2, %v7520_v43, 0.0 }
0x26ef   :  { %7522 = vadd.xlane.f32.xlu0 %v7521_v8 }
0x277c   :  { %v7523_v38 = vpop.xlane.xlu0 %7522 }
0x277d   :  { %v7524_v30 = vmul.f32 0.015625, %v7523_v38 }
0x277f   :  { %v7525_v5 = vadd.f32 1e-05, %v7524_v30 }
0x2781   :  { %9462 = vrsqrt.f32 %v7525_v5 }
0x278b   :  { %v9463_v17 = vpop.eup %9462 }
0x278c   :  { %v7527_v49 = vmul.f32 %v9463_v17, %v7519_v51 }
0x278e   :  { %v7534_v63 = vmul.f32 %v8500_v20, %v7527_v49 }
0x2790   :  { %v7541_v27 = vadd.f32 %v8501_v0, %v7534_v63 }
0x2792   :  { %v7542_v7 = vpack.c.bf16 %v7541_v27, %v7541_v27 }
0x2794   :  { %v7559_v33 = vrot.slane %v7542_v7, 3 }
0x2796   :  { %8982 = vmatmul.mubr.msk.bf16.vlgmr.msra.gmra.mrb[132].mxu1 %vm255_vm2, %v7559_v33 }
0x2869   :  { %v7621_v59 = vpop.f32.mrb[132].mxu1 }
0x286a   :  { %v7622_v4 = vadd.f32 %v8502_v16, %v7621_v59  ;;  %v8983_v10 = vpop.f32.mrb[133].mxu1 }
0x286b   :  { %v7624_v39 = vpop.f32.mrb[134].mxu1 }
0x286c   :  { %7628 = vst.msk [vmem:[%s12019_s24] sm:$0x3] %vm7627_vm9, %v7622_v4  ;;  %v8984_v26 = vpop.f32.mrb[135].mxu1 }

</bundles_post_ra>
